<compile_context>
chip_gen: v7x
topology: tpu7x:2x2x1
jax: 0.10.0
libtpu: 0.0.40
codegen_flags: <defaults>
</compile_context>

<pallas_src>
import jax
import jax.numpy as jnp
from jax.experimental import pallas as pl
from jax.experimental.pallas import tpu as pltpu

# ----------------------- small, consistent model dims -----------------------
B = 2              # batch
S = 8              # sequence_length (= in_channels of the primary Conv1d)
V = 50             # num_embeddings
E = 32             # embedding_dim
H = 44             # lstm_dim (so Lout = H - K + 1 = 36 = 6*6)
HP = 128           # per-gate lane padding for the LSTM (aligned 128-lane gate blocks)
NC1 = 4            # primary_num_capsules
D1 = 8             # primary_capsule_dim (= Conv1d out_channels)
K = 9              # primary_kernel_size, stride 1
NC2 = 4            # secondary_num_capsules
DOUT = D1          # secondary out_channels = primary_capsule_dim
L = H - K + 1      # 36
N_ROUTE = D1 * L   # 288 == primary_capsule_dim * 6 * 6
NUM_ITERS = 3      # routing iterations
EPS = 1e-9         # squash zero-vector guard

VMEM_SPEC = pl.BlockSpec(memory_space=pltpu.MemorySpace.VMEM)
SMEM_SPEC = pl.BlockSpec(memory_space=pltpu.MemorySpace.SMEM)


# ------------------------------ fused kernel --------------------------------
def capsule_kernel(tok_ref, wcomb_ref, whh_ref, b_ref, wconv_ref, bconv_ref,
                   wroute_ref, out_ref, priors_ref):
    # tok_ref:    (S*B,) int32 in SMEM, time-major (t*B + b)
    # wcomb_ref:  (V, 4*HP)   bf16   emb @ W_ih, per-gate columns padded to 128 lanes
    # whh_ref:    (HP, 4*HP)  bf16   W_hh, rows padded to 128, per-gate 128-lane blocks
    # b_ref:      (1, 4*HP)   f32    b_ih + b_hh, padded the same way
    # wconv_ref:  (D1*NC1, K*S) bf16 im2col conv weights, rows (d,c), cols (k,s)
    # bconv_ref:  (D1*NC1, 1) f32
    # wroute_ref: (NC1, NC2, DOUT, N_ROUTE) f32   route weights, nodes lane-dense
    # out_ref:    (NC2*B, DOUT) f32               routed capsule vectors
    # priors_ref: (NC2*B, DOUT, N_ROUTE) f32      VMEM scratch (explicit, lane-dense)
    f32 = jnp.float32
    bf16 = jnp.bfloat16

    # ---------- embedding fused with LSTM input projection (one MXU pass) ----------
    row = jax.lax.broadcasted_iota(jnp.int32, (S * B, V), 0)
    col = jax.lax.broadcasted_iota(jnp.int32, (S * B, V), 1)
    onehot = jnp.zeros((S * B, V), f32)
    for r in range(S * B):
        onehot = onehot + jnp.where((row == r) & (col == tok_ref[r]), 1.0, 0.0)

    xproj = jnp.dot(onehot.astype(bf16), wcomb_ref[...],
                    preferred_element_type=f32) + b_ref[...]               # (S*B, 4*HP)

    # ----------------------------- LSTM recurrence -----------------------------
    whh = whh_ref[...]                                                     # (HP, 4*HP) bf16
    h = jnp.zeros((B, HP), f32)
    c = jnp.zeros((B, HP), f32)
    hs = []
    for t in range(S):  # serial recurrence; only h @ Whh is on the critical path
        gates = xproj[t * B:(t + 1) * B, :] + jnp.dot(
            h.astype(bf16), whh, preferred_element_type=f32)               # (B, 4*HP)
        i_g = jax.nn.sigmoid(gates[:, 0 * HP:1 * HP])                      # aligned 128-lane slices
        f_g = jax.nn.sigmoid(gates[:, 1 * HP:2 * HP])
        g_g = jnp.tanh(gates[:, 2 * HP:3 * HP])
        o_g = jax.nn.sigmoid(gates[:, 3 * HP:4 * HP])
        c = f_g * c + i_g * g_g        # padding lanes stay exactly 0
        h = o_g * jnp.tanh(c)
        hs.append(h)                   # (B, HP), lanes >= H are 0

    # ------ primary capsules: all NC1 Conv1d's as ONE im2col MXU matmul ------
    rhs_parts = []
    for bb in range(B):
        xb = jnp.concatenate([hs[t][bb:bb + 1, :] for t in range(S)], axis=0)  # (S, HP)
        kparts = []
        for k in range(K):
            xk = xb if k == 0 else pltpu.roll(xb, shift=HP - k, axis=1)        # lane l -> xb[:, l+k]
            kparts.append(xk[:, :L])                                           # (S, L)
        rhs_parts.append(jnp.concatenate(kparts, axis=0))                      # (K*S, L)
    rhs = jnp.concatenate(rhs_parts, axis=1)                                   # (K*S, B*L)

    conv = jnp.dot(wconv_ref[...], rhs.astype(bf16),
                   preferred_element_type=f32) + bconv_ref[...]                # (D1*NC1, B*L)

    # flatten to lane-dense route nodes: u[b, c, d*L + l]
    u_rows = []
    for bb in range(B):
        dparts = [conv[d * NC1:(d + 1) * NC1, bb * L:(bb + 1) * L] for d in range(D1)]
        u_rows.append(jnp.concatenate(dparts, axis=1))                         # (NC1, N_ROUTE)
    u = jnp.stack(u_rows, axis=0)                                              # (B, NC1, N_ROUTE)

    # squash over the NC1 capsule axis (per route node)
    sn = jnp.sum(u * u, axis=1, keepdims=True)                                 # (B, 1, N_ROUTE)
    u_sq = u * (sn * jax.lax.rsqrt(sn + EPS) / (1.0 + sn))                     # (B, NC1, N_ROUTE)

    # ---- secondary capsules: lane-dense priors in VMEM scratch + dynamic routing ----
    for cc in range(NC1):  # contraction over the NC1 capsule axis, vectorized over (j,b,o,n)
        contrib = (wroute_ref[cc][:, None, :, :] *
                   u_sq[None, :, cc, None, :]).reshape(NC2 * B, DOUT, N_ROUTE)
        if cc == 0:
            priors_ref[...] = contrib
        else:
            priors_ref[...] = priors_ref[...] + contrib

    logits = jnp.zeros((NC2 * B, N_ROUTE), f32)
    v = jnp.zeros((NC2 * B, DOUT), f32)
    for it in range(NUM_ITERS):
        m = jnp.max(logits, axis=-1, keepdims=True)                            # softmax over route nodes
        e = jnp.exp(logits - m)
        probs = e * (1.0 / jnp.sum(e, axis=-1, keepdims=True))                 # exact reciprocal
        pr = priors_ref[...]                                                   # (NC2*B, DOUT, N_ROUTE)
        s = jnp.sum(probs[:, None, :] * pr, axis=-1)                           # (NC2*B, DOUT)
        s2 = jnp.sum(s * s, axis=-1, keepdims=True)                            # (NC2*B, 1)
        v = s * (s2 * jax.lax.rsqrt(s2 + EPS) / (1.0 + s2))                    # squash over DOUT
        if it != NUM_ITERS - 1:
            logits = logits + jnp.sum(pr * v[:, :, None], axis=1)              # (NC2*B, N_ROUTE)

    out_ref[...] = v                                                           # (NC2*B, DOUT)


# --------------------------- params / one-time prep -------------------------
def init_params(key):
    ks = jax.random.split(key, 8)
    return dict(
        emb=jax.random.normal(ks[0], (V, E), jnp.float32),                      # nn.Embedding weight
        w_ih=0.1 * jax.random.normal(ks[1], (4 * H, E), jnp.float32),           # LSTM weight_ih_l0 (i,f,g,o)
        w_hh=0.1 * jax.random.normal(ks[2], (4 * H, H), jnp.float32),           # LSTM weight_hh_l0
        b_ih=0.1 * jax.random.normal(ks[3], (4 * H,), jnp.float32),
        b_hh=0.1 * jax.random.normal(ks[4], (4 * H,), jnp.float32),
        w_conv=0.1 * jax.random.normal(ks[5], (NC1, D1, S, K), jnp.float32),    # NC1 x Conv1d(out=D1,in=S,k=K)
        b_conv=0.1 * jax.random.normal(ks[6], (NC1, D1), jnp.float32),
        w_route=jax.random.normal(ks[7], (NC2, N_ROUTE, NC1, DOUT), jnp.float32),  # route_weights
    )


def prepare_params(p):
    """One-time weight re-layouts / precombination, kept OUT of the per-step forward path."""
    wih_t = jnp.transpose(p["w_ih"])                      # (E, 4H), gate blocks i|f|g|o
    whh_t = jnp.transpose(p["w_hh"])                      # (H, 4H)
    bias = (p["b_ih"] + p["b_hh"]).reshape(1, 4 * H)      # (1, 4H)
    wcomb = p["emb"] @ wih_t                              # (V, 4H): embedding fused into W_ih

    def pad_gate_cols(m):                                 # (..., 4H) -> (..., 4*HP)
        blocks = []
        for g in range(4):
            blk = m[..., g * H:(g + 1) * H]
            pad = jnp.zeros(m.shape[:-1] + (HP - H,), m.dtype)
            blocks.append(jnp.concatenate([blk, pad], axis=-1))
        return jnp.concatenate(blocks, axis=-1)

    whh_p = jnp.zeros((HP, 4 * HP), jnp.float32).at[:H, :].set(pad_gate_cols(whh_t))

    return dict(
        wcomb=pad_gate_cols(wcomb).astype(jnp.bfloat16),                        # (V, 4*HP)
        whh=whh_p.astype(jnp.bfloat16),                                         # (HP, 4*HP)
        bias=pad_gate_cols(bias).astype(jnp.float32),                           # (1, 4*HP)
        # conv im2col weights: rows (d, c), cols (k, s)
        wconv=jnp.transpose(p["w_conv"], (1, 0, 3, 2))
                 .reshape(D1 * NC1, K * S).astype(jnp.bfloat16),                # (32, 72)
        bconv=jnp.transpose(p["b_conv"], (1, 0)).reshape(D1 * NC1, 1)
                 .astype(jnp.float32),                                          # (32, 1)
        # (NC2, N_ROUTE, NC1, DOUT) -> (NC1, NC2, DOUT, N_ROUTE): route nodes lane-dense
        wroute=jnp.transpose(p["w_route"], (2, 0, 3, 1)).astype(jnp.float32),
    )


# ------------------------------ forward glue ---------------------------------
def capsule_encoder_forward(tokens, prep):
    # time-major token ids (t*B + b) as a small SMEM vector; everything else is in-kernel.
    tok_tm = jnp.transpose(tokens, (1, 0)).reshape(S * B)
    v = pl.pallas_call(
        capsule_kernel,
        out_shape=jax.ShapeDtypeStruct((NC2 * B, DOUT), jnp.float32),
        in_specs=[SMEM_SPEC] + [VMEM_SPEC] * 6,
        out_specs=VMEM_SPEC,
        scratch_shapes=[pltpu.VMEM((NC2 * B, DOUT, N_ROUTE), jnp.float32)],
    )(tok_tm, prep["wcomb"], prep["whh"], prep["bias"],
      prep["wconv"], prep["bconv"], prep["wroute"])
    # PyTorch secondary-capsule output shape: (NC2, B, 1, 1, DOUT)  (free metadata reshape)
    return v.reshape(NC2, B, 1, 1, DOUT)


if __name__ == "__main__":
    key = jax.random.PRNGKey(0)
    pkey, dkey = jax.random.split(key)
    params = init_params(pkey)
    prep = prepare_params(params)          # one-time re-layouts (not part of the forward step)
    tokens = jax.random.randint(dkey, (B, S), 0, V, dtype=jnp.int32)

    fwd = jax.jit(capsule_encoder_forward)
    out = jax.block_until_ready(fwd(tokens, prep))

    assert out.shape == (NC2, B, 1, 1, DOUT), out.shape
    assert bool(jnp.all(jnp.isfinite(out)))
    print("KERNEL_OK")
</pallas_src>

<mosaic_0001>
module attributes {stable_mosaic.version = 11 : i64} {
  func.func @capsule_kernel(%arg0: memref<16xi32, #tpu.memory_space<smem>>, %arg1: memref<50x512xbf16, #tpu.memory_space<vmem>>, %arg2: memref<128x512xbf16, #tpu.memory_space<vmem>>, %arg3: memref<1x512xf32, #tpu.memory_space<vmem>>, %arg4: memref<32x72xbf16, #tpu.memory_space<vmem>>, %arg5: memref<32x1xf32, #tpu.memory_space<vmem>>, %arg6: memref<4x4x8x288xf32, #tpu.memory_space<vmem>>, %arg7: memref<8x8xf32, #tpu.memory_space<vmem>>, %arg8: memref<8x8x288xf32, #tpu.memory_space<vmem>>) attributes {dimension_semantics = [], scalar_prefetch = 0 : i64, scratch_operands = 1 : i64, tpu.core_type = #tpu.core_type<tc>} {
    %0 = tpu.iota {dimensions = array<i32: 0>} : vector<16x50xi32>
    %1 = tpu.iota {dimensions = array<i32: 1>} : vector<16x50xi32>
    %cst = arith.constant 0.000000e+00 : f32
    %2 = vector.broadcast %cst : f32 to vector<16x50xf32>
    %c0_i32 = arith.constant 0 : i32
    %3 = vector.broadcast %c0_i32 : i32 to vector<16x50xi32>
    %4 = arith.cmpi eq, %0, %3 : vector<16x50xi32>
    %c0 = arith.constant 0 : index
    %5 = memref.load %arg0[%c0] : memref<16xi32, #tpu.memory_space<smem>>
    %6 = vector.broadcast %5 : i32 to vector<16x50xi32>
    %7 = arith.cmpi eq, %1, %6 : vector<16x50xi32>
    %8 = arith.andi %4, %7 : vector<16x50xi1>
    %cst_0 = arith.constant 1.000000e+00 : f32
    %cst_1 = arith.constant 0.000000e+00 : f32
    %9 = vector.broadcast %cst_0 : f32 to vector<16x50xf32>
    %10 = vector.broadcast %cst_1 : f32 to vector<16x50xf32>
    %11 = arith.select %8, %9, %10 : vector<16x50xi1>, vector<16x50xf32>
    %12 = arith.addf %2, %11 : vector<16x50xf32>
    %c1_i32 = arith.constant 1 : i32
    %13 = vector.broadcast %c1_i32 : i32 to vector<16x50xi32>
    %14 = arith.cmpi eq, %0, %13 : vector<16x50xi32>
    %c1 = arith.constant 1 : index
    %15 = memref.load %arg0[%c1] : memref<16xi32, #tpu.memory_space<smem>>
    %16 = vector.broadcast %15 : i32 to vector<16x50xi32>
    %17 = arith.cmpi eq, %1, %16 : vector<16x50xi32>
    %18 = arith.andi %14, %17 : vector<16x50xi1>
    %cst_2 = arith.constant 1.000000e+00 : f32
    %cst_3 = arith.constant 0.000000e+00 : f32
    %19 = vector.broadcast %cst_2 : f32 to vector<16x50xf32>
    %20 = vector.broadcast %cst_3 : f32 to vector<16x50xf32>
    %21 = arith.select %18, %19, %20 : vector<16x50xi1>, vector<16x50xf32>
    %22 = arith.addf %12, %21 : vector<16x50xf32>
    %c2_i32 = arith.constant 2 : i32
    %23 = vector.broadcast %c2_i32 : i32 to vector<16x50xi32>
    %24 = arith.cmpi eq, %0, %23 : vector<16x50xi32>
    %c2 = arith.constant 2 : index
    %25 = memref.load %arg0[%c2] : memref<16xi32, #tpu.memory_space<smem>>
    %26 = vector.broadcast %25 : i32 to vector<16x50xi32>
    %27 = arith.cmpi eq, %1, %26 : vector<16x50xi32>
    %28 = arith.andi %24, %27 : vector<16x50xi1>
    %cst_4 = arith.constant 1.000000e+00 : f32
    %cst_5 = arith.constant 0.000000e+00 : f32
    %29 = vector.broadcast %cst_4 : f32 to vector<16x50xf32>
    %30 = vector.broadcast %cst_5 : f32 to vector<16x50xf32>
    %31 = arith.select %28, %29, %30 : vector<16x50xi1>, vector<16x50xf32>
    %32 = arith.addf %22, %31 : vector<16x50xf32>
    %c3_i32 = arith.constant 3 : i32
    %33 = vector.broadcast %c3_i32 : i32 to vector<16x50xi32>
    %34 = arith.cmpi eq, %0, %33 : vector<16x50xi32>
    %c3 = arith.constant 3 : index
    %35 = memref.load %arg0[%c3] : memref<16xi32, #tpu.memory_space<smem>>
    %36 = vector.broadcast %35 : i32 to vector<16x50xi32>
    %37 = arith.cmpi eq, %1, %36 : vector<16x50xi32>
    %38 = arith.andi %34, %37 : vector<16x50xi1>
    %cst_6 = arith.constant 1.000000e+00 : f32
    %cst_7 = arith.constant 0.000000e+00 : f32
    %39 = vector.broadcast %cst_6 : f32 to vector<16x50xf32>
    %40 = vector.broadcast %cst_7 : f32 to vector<16x50xf32>
    %41 = arith.select %38, %39, %40 : vector<16x50xi1>, vector<16x50xf32>
    %42 = arith.addf %32, %41 : vector<16x50xf32>
    %c4_i32 = arith.constant 4 : i32
    %43 = vector.broadcast %c4_i32 : i32 to vector<16x50xi32>
    %44 = arith.cmpi eq, %0, %43 : vector<16x50xi32>
    %c4 = arith.constant 4 : index
    %45 = memref.load %arg0[%c4] : memref<16xi32, #tpu.memory_space<smem>>
    %46 = vector.broadcast %45 : i32 to vector<16x50xi32>
    %47 = arith.cmpi eq, %1, %46 : vector<16x50xi32>
    %48 = arith.andi %44, %47 : vector<16x50xi1>
    %cst_8 = arith.constant 1.000000e+00 : f32
    %cst_9 = arith.constant 0.000000e+00 : f32
    %49 = vector.broadcast %cst_8 : f32 to vector<16x50xf32>
    %50 = vector.broadcast %cst_9 : f32 to vector<16x50xf32>
    %51 = arith.select %48, %49, %50 : vector<16x50xi1>, vector<16x50xf32>
    %52 = arith.addf %42, %51 : vector<16x50xf32>
    %c5_i32 = arith.constant 5 : i32
    %53 = vector.broadcast %c5_i32 : i32 to vector<16x50xi32>
    %54 = arith.cmpi eq, %0, %53 : vector<16x50xi32>
    %c5 = arith.constant 5 : index
    %55 = memref.load %arg0[%c5] : memref<16xi32, #tpu.memory_space<smem>>
    %56 = vector.broadcast %55 : i32 to vector<16x50xi32>
    %57 = arith.cmpi eq, %1, %56 : vector<16x50xi32>
    %58 = arith.andi %54, %57 : vector<16x50xi1>
    %cst_10 = arith.constant 1.000000e+00 : f32
    %cst_11 = arith.constant 0.000000e+00 : f32
    %59 = vector.broadcast %cst_10 : f32 to vector<16x50xf32>
    %60 = vector.broadcast %cst_11 : f32 to vector<16x50xf32>
    %61 = arith.select %58, %59, %60 : vector<16x50xi1>, vector<16x50xf32>
    %62 = arith.addf %52, %61 : vector<16x50xf32>
    %c6_i32 = arith.constant 6 : i32
    %63 = vector.broadcast %c6_i32 : i32 to vector<16x50xi32>
    %64 = arith.cmpi eq, %0, %63 : vector<16x50xi32>
    %c6 = arith.constant 6 : index
    %65 = memref.load %arg0[%c6] : memref<16xi32, #tpu.memory_space<smem>>
    %66 = vector.broadcast %65 : i32 to vector<16x50xi32>
    %67 = arith.cmpi eq, %1, %66 : vector<16x50xi32>
    %68 = arith.andi %64, %67 : vector<16x50xi1>
    %cst_12 = arith.constant 1.000000e+00 : f32
    %cst_13 = arith.constant 0.000000e+00 : f32
    %69 = vector.broadcast %cst_12 : f32 to vector<16x50xf32>
    %70 = vector.broadcast %cst_13 : f32 to vector<16x50xf32>
    %71 = arith.select %68, %69, %70 : vector<16x50xi1>, vector<16x50xf32>
    %72 = arith.addf %62, %71 : vector<16x50xf32>
    %c7_i32 = arith.constant 7 : i32
    %73 = vector.broadcast %c7_i32 : i32 to vector<16x50xi32>
    %74 = arith.cmpi eq, %0, %73 : vector<16x50xi32>
    %c7 = arith.constant 7 : index
    %75 = memref.load %arg0[%c7] : memref<16xi32, #tpu.memory_space<smem>>
    %76 = vector.broadcast %75 : i32 to vector<16x50xi32>
    %77 = arith.cmpi eq, %1, %76 : vector<16x50xi32>
    %78 = arith.andi %74, %77 : vector<16x50xi1>
    %cst_14 = arith.constant 1.000000e+00 : f32
    %cst_15 = arith.constant 0.000000e+00 : f32
    %79 = vector.broadcast %cst_14 : f32 to vector<16x50xf32>
    %80 = vector.broadcast %cst_15 : f32 to vector<16x50xf32>
    %81 = arith.select %78, %79, %80 : vector<16x50xi1>, vector<16x50xf32>
    %82 = arith.addf %72, %81 : vector<16x50xf32>
    %c8_i32 = arith.constant 8 : i32
    %83 = vector.broadcast %c8_i32 : i32 to vector<16x50xi32>
    %84 = arith.cmpi eq, %0, %83 : vector<16x50xi32>
    %c8 = arith.constant 8 : index
    %85 = memref.load %arg0[%c8] : memref<16xi32, #tpu.memory_space<smem>>
    %86 = vector.broadcast %85 : i32 to vector<16x50xi32>
    %87 = arith.cmpi eq, %1, %86 : vector<16x50xi32>
    %88 = arith.andi %84, %87 : vector<16x50xi1>
    %cst_16 = arith.constant 1.000000e+00 : f32
    %cst_17 = arith.constant 0.000000e+00 : f32
    %89 = vector.broadcast %cst_16 : f32 to vector<16x50xf32>
    %90 = vector.broadcast %cst_17 : f32 to vector<16x50xf32>
    %91 = arith.select %88, %89, %90 : vector<16x50xi1>, vector<16x50xf32>
    %92 = arith.addf %82, %91 : vector<16x50xf32>
    %c9_i32 = arith.constant 9 : i32
    %93 = vector.broadcast %c9_i32 : i32 to vector<16x50xi32>
    %94 = arith.cmpi eq, %0, %93 : vector<16x50xi32>
    %c9 = arith.constant 9 : index
    %95 = memref.load %arg0[%c9] : memref<16xi32, #tpu.memory_space<smem>>
    %96 = vector.broadcast %95 : i32 to vector<16x50xi32>
    %97 = arith.cmpi eq, %1, %96 : vector<16x50xi32>
    %98 = arith.andi %94, %97 : vector<16x50xi1>
    %cst_18 = arith.constant 1.000000e+00 : f32
    %cst_19 = arith.constant 0.000000e+00 : f32
    %99 = vector.broadcast %cst_18 : f32 to vector<16x50xf32>
    %100 = vector.broadcast %cst_19 : f32 to vector<16x50xf32>
    %101 = arith.select %98, %99, %100 : vector<16x50xi1>, vector<16x50xf32>
    %102 = arith.addf %92, %101 : vector<16x50xf32>
    %c10_i32 = arith.constant 10 : i32
    %103 = vector.broadcast %c10_i32 : i32 to vector<16x50xi32>
    %104 = arith.cmpi eq, %0, %103 : vector<16x50xi32>
    %c10 = arith.constant 10 : index
    %105 = memref.load %arg0[%c10] : memref<16xi32, #tpu.memory_space<smem>>
    %106 = vector.broadcast %105 : i32 to vector<16x50xi32>
    %107 = arith.cmpi eq, %1, %106 : vector<16x50xi32>
    %108 = arith.andi %104, %107 : vector<16x50xi1>
    %cst_20 = arith.constant 1.000000e+00 : f32
    %cst_21 = arith.constant 0.000000e+00 : f32
    %109 = vector.broadcast %cst_20 : f32 to vector<16x50xf32>
    %110 = vector.broadcast %cst_21 : f32 to vector<16x50xf32>
    %111 = arith.select %108, %109, %110 : vector<16x50xi1>, vector<16x50xf32>
    %112 = arith.addf %102, %111 : vector<16x50xf32>
    %c11_i32 = arith.constant 11 : i32
    %113 = vector.broadcast %c11_i32 : i32 to vector<16x50xi32>
    %114 = arith.cmpi eq, %0, %113 : vector<16x50xi32>
    %c11 = arith.constant 11 : index
    %115 = memref.load %arg0[%c11] : memref<16xi32, #tpu.memory_space<smem>>
    %116 = vector.broadcast %115 : i32 to vector<16x50xi32>
    %117 = arith.cmpi eq, %1, %116 : vector<16x50xi32>
    %118 = arith.andi %114, %117 : vector<16x50xi1>
    %cst_22 = arith.constant 1.000000e+00 : f32
    %cst_23 = arith.constant 0.000000e+00 : f32
    %119 = vector.broadcast %cst_22 : f32 to vector<16x50xf32>
    %120 = vector.broadcast %cst_23 : f32 to vector<16x50xf32>
    %121 = arith.select %118, %119, %120 : vector<16x50xi1>, vector<16x50xf32>
    %122 = arith.addf %112, %121 : vector<16x50xf32>
    %c12_i32 = arith.constant 12 : i32
    %123 = vector.broadcast %c12_i32 : i32 to vector<16x50xi32>
    %124 = arith.cmpi eq, %0, %123 : vector<16x50xi32>
    %c12 = arith.constant 12 : index
    %125 = memref.load %arg0[%c12] : memref<16xi32, #tpu.memory_space<smem>>
    %126 = vector.broadcast %125 : i32 to vector<16x50xi32>
    %127 = arith.cmpi eq, %1, %126 : vector<16x50xi32>
    %128 = arith.andi %124, %127 : vector<16x50xi1>
    %cst_24 = arith.constant 1.000000e+00 : f32
    %cst_25 = arith.constant 0.000000e+00 : f32
    %129 = vector.broadcast %cst_24 : f32 to vector<16x50xf32>
    %130 = vector.broadcast %cst_25 : f32 to vector<16x50xf32>
    %131 = arith.select %128, %129, %130 : vector<16x50xi1>, vector<16x50xf32>
    %132 = arith.addf %122, %131 : vector<16x50xf32>
    %c13_i32 = arith.constant 13 : i32
    %133 = vector.broadcast %c13_i32 : i32 to vector<16x50xi32>
    %134 = arith.cmpi eq, %0, %133 : vector<16x50xi32>
    %c13 = arith.constant 13 : index
    %135 = memref.load %arg0[%c13] : memref<16xi32, #tpu.memory_space<smem>>
    %136 = vector.broadcast %135 : i32 to vector<16x50xi32>
    %137 = arith.cmpi eq, %1, %136 : vector<16x50xi32>
    %138 = arith.andi %134, %137 : vector<16x50xi1>
    %cst_26 = arith.constant 1.000000e+00 : f32
    %cst_27 = arith.constant 0.000000e+00 : f32
    %139 = vector.broadcast %cst_26 : f32 to vector<16x50xf32>
    %140 = vector.broadcast %cst_27 : f32 to vector<16x50xf32>
    %141 = arith.select %138, %139, %140 : vector<16x50xi1>, vector<16x50xf32>
    %142 = arith.addf %132, %141 : vector<16x50xf32>
    %c14_i32 = arith.constant 14 : i32
    %143 = vector.broadcast %c14_i32 : i32 to vector<16x50xi32>
    %144 = arith.cmpi eq, %0, %143 : vector<16x50xi32>
    %c14 = arith.constant 14 : index
    %145 = memref.load %arg0[%c14] : memref<16xi32, #tpu.memory_space<smem>>
    %146 = vector.broadcast %145 : i32 to vector<16x50xi32>
    %147 = arith.cmpi eq, %1, %146 : vector<16x50xi32>
    %148 = arith.andi %144, %147 : vector<16x50xi1>
    %cst_28 = arith.constant 1.000000e+00 : f32
    %cst_29 = arith.constant 0.000000e+00 : f32
    %149 = vector.broadcast %cst_28 : f32 to vector<16x50xf32>
    %150 = vector.broadcast %cst_29 : f32 to vector<16x50xf32>
    %151 = arith.select %148, %149, %150 : vector<16x50xi1>, vector<16x50xf32>
    %152 = arith.addf %142, %151 : vector<16x50xf32>
    %c15_i32 = arith.constant 15 : i32
    %153 = vector.broadcast %c15_i32 : i32 to vector<16x50xi32>
    %154 = arith.cmpi eq, %0, %153 : vector<16x50xi32>
    %c15 = arith.constant 15 : index
    %155 = memref.load %arg0[%c15] : memref<16xi32, #tpu.memory_space<smem>>
    %156 = vector.broadcast %155 : i32 to vector<16x50xi32>
    %157 = arith.cmpi eq, %1, %156 : vector<16x50xi32>
    %158 = arith.andi %154, %157 : vector<16x50xi1>
    %cst_30 = arith.constant 1.000000e+00 : f32
    %cst_31 = arith.constant 0.000000e+00 : f32
    %159 = vector.broadcast %cst_30 : f32 to vector<16x50xf32>
    %160 = vector.broadcast %cst_31 : f32 to vector<16x50xf32>
    %161 = arith.select %158, %159, %160 : vector<16x50xi1>, vector<16x50xf32>
    %162 = arith.addf %152, %161 : vector<16x50xf32>
    %163 = arith.truncf %162 : vector<16x50xf32> to vector<16x50xbf16>
    %c0_32 = arith.constant 0 : index
    %c0_33 = arith.constant 0 : index
    %164 = vector.load %arg1[%c0_32, %c0_33] : memref<50x512xbf16, #tpu.memory_space<vmem>>, vector<50x512xbf16>
    %cst_34 = arith.constant dense<0.000000e+00> : vector<16x512xf32>
    %165 = tpu.matmul %163, %164, %cst_34 {dimension_numbers = #tpu.dot_dimension_numbers<[1], [0], [0], [1], [0, 0, 1, 1], [], []>} : vector<16x50xbf16>, vector<50x512xbf16>, vector<16x512xf32> -> vector<16x512xf32>
    %c0_35 = arith.constant 0 : index
    %c0_36 = arith.constant 0 : index
    %166 = vector.load %arg3[%c0_35, %c0_36] : memref<1x512xf32, #tpu.memory_space<vmem>>, vector<1x512xf32>
    %167 = vector.broadcast %166 : vector<1x512xf32> to vector<16x512xf32>
    %168 = arith.addf %165, %167 : vector<16x512xf32>
    %c0_37 = arith.constant 0 : index
    %c0_38 = arith.constant 0 : index
    %169 = vector.load %arg2[%c0_37, %c0_38] : memref<128x512xbf16, #tpu.memory_space<vmem>>, vector<128x512xbf16>
    %cst_39 = arith.constant 0.000000e+00 : f32
    %170 = vector.broadcast %cst_39 : f32 to vector<2x128xf32>
    %cst_40 = arith.constant 0.000000e+00 : f32
    %171 = vector.broadcast %cst_40 : f32 to vector<2x128xf32>
    %172 = vector.extract_strided_slice %168 {offsets = [0, 0], sizes = [2, 512], strides = [1, 1]} : vector<16x512xf32> to vector<2x512xf32>
    %173 = arith.truncf %170 : vector<2x128xf32> to vector<2x128xbf16>
    %cst_41 = arith.constant dense<0.000000e+00> : vector<2x512xf32>
    %174 = tpu.matmul %173, %169, %cst_41 {dimension_numbers = #tpu.dot_dimension_numbers<[1], [0], [0], [1], [0, 0, 1, 1], [], []>} : vector<2x128xbf16>, vector<128x512xbf16>, vector<2x512xf32> -> vector<2x512xf32>
    %175 = arith.addf %172, %174 : vector<2x512xf32>
    %176 = vector.extract_strided_slice %175 {offsets = [0, 0], sizes = [2, 128], strides = [1, 1]} : vector<2x512xf32> to vector<2x128xf32>
    %177 = arith.negf %176 : vector<2x128xf32>
    %178 = math.exp %177 : vector<2x128xf32>
    %cst_42 = arith.constant 1.000000e+00 : f32
    %179 = vector.broadcast %cst_42 : f32 to vector<2x128xf32>
    %180 = arith.addf %179, %178 : vector<2x128xf32>
    %181 = arith.divf %179, %180 : vector<2x128xf32>
    %182 = vector.extract_strided_slice %175 {offsets = [0, 128], sizes = [2, 128], strides = [1, 1]} : vector<2x512xf32> to vector<2x128xf32>
    %183 = arith.negf %182 : vector<2x128xf32>
    %184 = math.exp %183 : vector<2x128xf32>
    %cst_43 = arith.constant 1.000000e+00 : f32
    %185 = vector.broadcast %cst_43 : f32 to vector<2x128xf32>
    %186 = arith.addf %185, %184 : vector<2x128xf32>
    %187 = arith.divf %185, %186 : vector<2x128xf32>
    %188 = vector.extract_strided_slice %175 {offsets = [0, 256], sizes = [2, 128], strides = [1, 1]} : vector<2x512xf32> to vector<2x128xf32>
    %189 = math.tanh %188 : vector<2x128xf32>
    %190 = vector.extract_strided_slice %175 {offsets = [0, 384], sizes = [2, 128], strides = [1, 1]} : vector<2x512xf32> to vector<2x128xf32>
    %191 = arith.negf %190 : vector<2x128xf32>
    %192 = math.exp %191 : vector<2x128xf32>
    %cst_44 = arith.constant 1.000000e+00 : f32
    %193 = vector.broadcast %cst_44 : f32 to vector<2x128xf32>
    %194 = arith.addf %193, %192 : vector<2x128xf32>
    %195 = arith.divf %193, %194 : vector<2x128xf32>
    %196 = arith.mulf %187, %171 : vector<2x128xf32>
    %197 = arith.mulf %181, %189 : vector<2x128xf32>
    %198 = arith.addf %196, %197 : vector<2x128xf32>
    %199 = math.tanh %198 : vector<2x128xf32>
    %200 = arith.mulf %195, %199 : vector<2x128xf32>
    %201 = vector.extract_strided_slice %168 {offsets = [2, 0], sizes = [2, 512], strides = [1, 1]} : vector<16x512xf32> to vector<2x512xf32>
    %202 = arith.truncf %200 : vector<2x128xf32> to vector<2x128xbf16>
    %cst_45 = arith.constant dense<0.000000e+00> : vector<2x512xf32>
    %203 = tpu.matmul %202, %169, %cst_45 {dimension_numbers = #tpu.dot_dimension_numbers<[1], [0], [0], [1], [0, 0, 1, 1], [], []>} : vector<2x128xbf16>, vector<128x512xbf16>, vector<2x512xf32> -> vector<2x512xf32>
    %204 = arith.addf %201, %203 : vector<2x512xf32>
    %205 = vector.extract_strided_slice %204 {offsets = [0, 0], sizes = [2, 128], strides = [1, 1]} : vector<2x512xf32> to vector<2x128xf32>
    %206 = arith.negf %205 : vector<2x128xf32>
    %207 = math.exp %206 : vector<2x128xf32>
    %cst_46 = arith.constant 1.000000e+00 : f32
    %208 = vector.broadcast %cst_46 : f32 to vector<2x128xf32>
    %209 = arith.addf %208, %207 : vector<2x128xf32>
    %210 = arith.divf %208, %209 : vector<2x128xf32>
    %211 = vector.extract_strided_slice %204 {offsets = [0, 128], sizes = [2, 128], strides = [1, 1]} : vector<2x512xf32> to vector<2x128xf32>
    %212 = arith.negf %211 : vector<2x128xf32>
    %213 = math.exp %212 : vector<2x128xf32>
    %cst_47 = arith.constant 1.000000e+00 : f32
    %214 = vector.broadcast %cst_47 : f32 to vector<2x128xf32>
    %215 = arith.addf %214, %213 : vector<2x128xf32>
    %216 = arith.divf %214, %215 : vector<2x128xf32>
    %217 = vector.extract_strided_slice %204 {offsets = [0, 256], sizes = [2, 128], strides = [1, 1]} : vector<2x512xf32> to vector<2x128xf32>
    %218 = math.tanh %217 : vector<2x128xf32>
    %219 = vector.extract_strided_slice %204 {offsets = [0, 384], sizes = [2, 128], strides = [1, 1]} : vector<2x512xf32> to vector<2x128xf32>
    %220 = arith.negf %219 : vector<2x128xf32>
    %221 = math.exp %220 : vector<2x128xf32>
    %cst_48 = arith.constant 1.000000e+00 : f32
    %222 = vector.broadcast %cst_48 : f32 to vector<2x128xf32>
    %223 = arith.addf %222, %221 : vector<2x128xf32>
    %224 = arith.divf %222, %223 : vector<2x128xf32>
    %225 = arith.mulf %216, %198 : vector<2x128xf32>
    %226 = arith.mulf %210, %218 : vector<2x128xf32>
    %227 = arith.addf %225, %226 : vector<2x128xf32>
    %228 = math.tanh %227 : vector<2x128xf32>
    %229 = arith.mulf %224, %228 : vector<2x128xf32>
    %230 = vector.extract_strided_slice %168 {offsets = [4, 0], sizes = [2, 512], strides = [1, 1]} : vector<16x512xf32> to vector<2x512xf32>
    %231 = arith.truncf %229 : vector<2x128xf32> to vector<2x128xbf16>
    %cst_49 = arith.constant dense<0.000000e+00> : vector<2x512xf32>
    %232 = tpu.matmul %231, %169, %cst_49 {dimension_numbers = #tpu.dot_dimension_numbers<[1], [0], [0], [1], [0, 0, 1, 1], [], []>} : vector<2x128xbf16>, vector<128x512xbf16>, vector<2x512xf32> -> vector<2x512xf32>
    %233 = arith.addf %230, %232 : vector<2x512xf32>
    %234 = vector.extract_strided_slice %233 {offsets = [0, 0], sizes = [2, 128], strides = [1, 1]} : vector<2x512xf32> to vector<2x128xf32>
    %235 = arith.negf %234 : vector<2x128xf32>
    %236 = math.exp %235 : vector<2x128xf32>
    %cst_50 = arith.constant 1.000000e+00 : f32
    %237 = vector.broadcast %cst_50 : f32 to vector<2x128xf32>
    %238 = arith.addf %237, %236 : vector<2x128xf32>
    %239 = arith.divf %237, %238 : vector<2x128xf32>
    %240 = vector.extract_strided_slice %233 {offsets = [0, 128], sizes = [2, 128], strides = [1, 1]} : vector<2x512xf32> to vector<2x128xf32>
    %241 = arith.negf %240 : vector<2x128xf32>
    %242 = math.exp %241 : vector<2x128xf32>
    %cst_51 = arith.constant 1.000000e+00 : f32
    %243 = vector.broadcast %cst_51 : f32 to vector<2x128xf32>
    %244 = arith.addf %243, %242 : vector<2x128xf32>
    %245 = arith.divf %243, %244 : vector<2x128xf32>
    %246 = vector.extract_strided_slice %233 {offsets = [0, 256], sizes = [2, 128], strides = [1, 1]} : vector<2x512xf32> to vector<2x128xf32>
    %247 = math.tanh %246 : vector<2x128xf32>
    %248 = vector.extract_strided_slice %233 {offsets = [0, 384], sizes = [2, 128], strides = [1, 1]} : vector<2x512xf32> to vector<2x128xf32>
    %249 = arith.negf %248 : vector<2x128xf32>
    %250 = math.exp %249 : vector<2x128xf32>
    %cst_52 = arith.constant 1.000000e+00 : f32
    %251 = vector.broadcast %cst_52 : f32 to vector<2x128xf32>
    %252 = arith.addf %251, %250 : vector<2x128xf32>
    %253 = arith.divf %251, %252 : vector<2x128xf32>
    %254 = arith.mulf %245, %227 : vector<2x128xf32>
    %255 = arith.mulf %239, %247 : vector<2x128xf32>
    %256 = arith.addf %254, %255 : vector<2x128xf32>
    %257 = math.tanh %256 : vector<2x128xf32>
    %258 = arith.mulf %253, %257 : vector<2x128xf32>
    %259 = vector.extract_strided_slice %168 {offsets = [6, 0], sizes = [2, 512], strides = [1, 1]} : vector<16x512xf32> to vector<2x512xf32>
    %260 = arith.truncf %258 : vector<2x128xf32> to vector<2x128xbf16>
    %cst_53 = arith.constant dense<0.000000e+00> : vector<2x512xf32>
    %261 = tpu.matmul %260, %169, %cst_53 {dimension_numbers = #tpu.dot_dimension_numbers<[1], [0], [0], [1], [0, 0, 1, 1], [], []>} : vector<2x128xbf16>, vector<128x512xbf16>, vector<2x512xf32> -> vector<2x512xf32>
    %262 = arith.addf %259, %261 : vector<2x512xf32>
    %263 = vector.extract_strided_slice %262 {offsets = [0, 0], sizes = [2, 128], strides = [1, 1]} : vector<2x512xf32> to vector<2x128xf32>
    %264 = arith.negf %263 : vector<2x128xf32>
    %265 = math.exp %264 : vector<2x128xf32>
    %cst_54 = arith.constant 1.000000e+00 : f32
    %266 = vector.broadcast %cst_54 : f32 to vector<2x128xf32>
    %267 = arith.addf %266, %265 : vector<2x128xf32>
    %268 = arith.divf %266, %267 : vector<2x128xf32>
    %269 = vector.extract_strided_slice %262 {offsets = [0, 128], sizes = [2, 128], strides = [1, 1]} : vector<2x512xf32> to vector<2x128xf32>
    %270 = arith.negf %269 : vector<2x128xf32>
    %271 = math.exp %270 : vector<2x128xf32>
    %cst_55 = arith.constant 1.000000e+00 : f32
    %272 = vector.broadcast %cst_55 : f32 to vector<2x128xf32>
    %273 = arith.addf %272, %271 : vector<2x128xf32>
    %274 = arith.divf %272, %273 : vector<2x128xf32>
    %275 = vector.extract_strided_slice %262 {offsets = [0, 256], sizes = [2, 128], strides = [1, 1]} : vector<2x512xf32> to vector<2x128xf32>
    %276 = math.tanh %275 : vector<2x128xf32>
    %277 = vector.extract_strided_slice %262 {offsets = [0, 384], sizes = [2, 128], strides = [1, 1]} : vector<2x512xf32> to vector<2x128xf32>
    %278 = arith.negf %277 : vector<2x128xf32>
    %279 = math.exp %278 : vector<2x128xf32>
    %cst_56 = arith.constant 1.000000e+00 : f32
    %280 = vector.broadcast %cst_56 : f32 to vector<2x128xf32>
    %281 = arith.addf %280, %279 : vector<2x128xf32>
    %282 = arith.divf %280, %281 : vector<2x128xf32>
    %283 = arith.mulf %274, %256 : vector<2x128xf32>
    %284 = arith.mulf %268, %276 : vector<2x128xf32>
    %285 = arith.addf %283, %284 : vector<2x128xf32>
    %286 = math.tanh %285 : vector<2x128xf32>
    %287 = arith.mulf %282, %286 : vector<2x128xf32>
    %288 = vector.extract_strided_slice %168 {offsets = [8, 0], sizes = [2, 512], strides = [1, 1]} : vector<16x512xf32> to vector<2x512xf32>
    %289 = arith.truncf %287 : vector<2x128xf32> to vector<2x128xbf16>
    %cst_57 = arith.constant dense<0.000000e+00> : vector<2x512xf32>
    %290 = tpu.matmul %289, %169, %cst_57 {dimension_numbers = #tpu.dot_dimension_numbers<[1], [0], [0], [1], [0, 0, 1, 1], [], []>} : vector<2x128xbf16>, vector<128x512xbf16>, vector<2x512xf32> -> vector<2x512xf32>
    %291 = arith.addf %288, %290 : vector<2x512xf32>
    %292 = vector.extract_strided_slice %291 {offsets = [0, 0], sizes = [2, 128], strides = [1, 1]} : vector<2x512xf32> to vector<2x128xf32>
    %293 = arith.negf %292 : vector<2x128xf32>
    %294 = math.exp %293 : vector<2x128xf32>
    %cst_58 = arith.constant 1.000000e+00 : f32
    %295 = vector.broadcast %cst_58 : f32 to vector<2x128xf32>
    %296 = arith.addf %295, %294 : vector<2x128xf32>
    %297 = arith.divf %295, %296 : vector<2x128xf32>
    %298 = vector.extract_strided_slice %291 {offsets = [0, 128], sizes = [2, 128], strides = [1, 1]} : vector<2x512xf32> to vector<2x128xf32>
    %299 = arith.negf %298 : vector<2x128xf32>
    %300 = math.exp %299 : vector<2x128xf32>
    %cst_59 = arith.constant 1.000000e+00 : f32
    %301 = vector.broadcast %cst_59 : f32 to vector<2x128xf32>
    %302 = arith.addf %301, %300 : vector<2x128xf32>
    %303 = arith.divf %301, %302 : vector<2x128xf32>
    %304 = vector.extract_strided_slice %291 {offsets = [0, 256], sizes = [2, 128], strides = [1, 1]} : vector<2x512xf32> to vector<2x128xf32>
    %305 = math.tanh %304 : vector<2x128xf32>
    %306 = vector.extract_strided_slice %291 {offsets = [0, 384], sizes = [2, 128], strides = [1, 1]} : vector<2x512xf32> to vector<2x128xf32>
    %307 = arith.negf %306 : vector<2x128xf32>
    %308 = math.exp %307 : vector<2x128xf32>
    %cst_60 = arith.constant 1.000000e+00 : f32
    %309 = vector.broadcast %cst_60 : f32 to vector<2x128xf32>
    %310 = arith.addf %309, %308 : vector<2x128xf32>
    %311 = arith.divf %309, %310 : vector<2x128xf32>
    %312 = arith.mulf %303, %285 : vector<2x128xf32>
    %313 = arith.mulf %297, %305 : vector<2x128xf32>
    %314 = arith.addf %312, %313 : vector<2x128xf32>
    %315 = math.tanh %314 : vector<2x128xf32>
    %316 = arith.mulf %311, %315 : vector<2x128xf32>
    %317 = vector.extract_strided_slice %168 {offsets = [10, 0], sizes = [2, 512], strides = [1, 1]} : vector<16x512xf32> to vector<2x512xf32>
    %318 = arith.truncf %316 : vector<2x128xf32> to vector<2x128xbf16>
    %cst_61 = arith.constant dense<0.000000e+00> : vector<2x512xf32>
    %319 = tpu.matmul %318, %169, %cst_61 {dimension_numbers = #tpu.dot_dimension_numbers<[1], [0], [0], [1], [0, 0, 1, 1], [], []>} : vector<2x128xbf16>, vector<128x512xbf16>, vector<2x512xf32> -> vector<2x512xf32>
    %320 = arith.addf %317, %319 : vector<2x512xf32>
    %321 = vector.extract_strided_slice %320 {offsets = [0, 0], sizes = [2, 128], strides = [1, 1]} : vector<2x512xf32> to vector<2x128xf32>
    %322 = arith.negf %321 : vector<2x128xf32>
    %323 = math.exp %322 : vector<2x128xf32>
    %cst_62 = arith.constant 1.000000e+00 : f32
    %324 = vector.broadcast %cst_62 : f32 to vector<2x128xf32>
    %325 = arith.addf %324, %323 : vector<2x128xf32>
    %326 = arith.divf %324, %325 : vector<2x128xf32>
    %327 = vector.extract_strided_slice %320 {offsets = [0, 128], sizes = [2, 128], strides = [1, 1]} : vector<2x512xf32> to vector<2x128xf32>
    %328 = arith.negf %327 : vector<2x128xf32>
    %329 = math.exp %328 : vector<2x128xf32>
    %cst_63 = arith.constant 1.000000e+00 : f32
    %330 = vector.broadcast %cst_63 : f32 to vector<2x128xf32>
    %331 = arith.addf %330, %329 : vector<2x128xf32>
    %332 = arith.divf %330, %331 : vector<2x128xf32>
    %333 = vector.extract_strided_slice %320 {offsets = [0, 256], sizes = [2, 128], strides = [1, 1]} : vector<2x512xf32> to vector<2x128xf32>
    %334 = math.tanh %333 : vector<2x128xf32>
    %335 = vector.extract_strided_slice %320 {offsets = [0, 384], sizes = [2, 128], strides = [1, 1]} : vector<2x512xf32> to vector<2x128xf32>
    %336 = arith.negf %335 : vector<2x128xf32>
    %337 = math.exp %336 : vector<2x128xf32>
    %cst_64 = arith.constant 1.000000e+00 : f32
    %338 = vector.broadcast %cst_64 : f32 to vector<2x128xf32>
    %339 = arith.addf %338, %337 : vector<2x128xf32>
    %340 = arith.divf %338, %339 : vector<2x128xf32>
    %341 = arith.mulf %332, %314 : vector<2x128xf32>
    %342 = arith.mulf %326, %334 : vector<2x128xf32>
    %343 = arith.addf %341, %342 : vector<2x128xf32>
    %344 = math.tanh %343 : vector<2x128xf32>
    %345 = arith.mulf %340, %344 : vector<2x128xf32>
    %346 = vector.extract_strided_slice %168 {offsets = [12, 0], sizes = [2, 512], strides = [1, 1]} : vector<16x512xf32> to vector<2x512xf32>
    %347 = arith.truncf %345 : vector<2x128xf32> to vector<2x128xbf16>
    %cst_65 = arith.constant dense<0.000000e+00> : vector<2x512xf32>
    %348 = tpu.matmul %347, %169, %cst_65 {dimension_numbers = #tpu.dot_dimension_numbers<[1], [0], [0], [1], [0, 0, 1, 1], [], []>} : vector<2x128xbf16>, vector<128x512xbf16>, vector<2x512xf32> -> vector<2x512xf32>
    %349 = arith.addf %346, %348 : vector<2x512xf32>
    %350 = vector.extract_strided_slice %349 {offsets = [0, 0], sizes = [2, 128], strides = [1, 1]} : vector<2x512xf32> to vector<2x128xf32>
    %351 = arith.negf %350 : vector<2x128xf32>
    %352 = math.exp %351 : vector<2x128xf32>
    %cst_66 = arith.constant 1.000000e+00 : f32
    %353 = vector.broadcast %cst_66 : f32 to vector<2x128xf32>
    %354 = arith.addf %353, %352 : vector<2x128xf32>
    %355 = arith.divf %353, %354 : vector<2x128xf32>
    %356 = vector.extract_strided_slice %349 {offsets = [0, 128], sizes = [2, 128], strides = [1, 1]} : vector<2x512xf32> to vector<2x128xf32>
    %357 = arith.negf %356 : vector<2x128xf32>
    %358 = math.exp %357 : vector<2x128xf32>
    %cst_67 = arith.constant 1.000000e+00 : f32
    %359 = vector.broadcast %cst_67 : f32 to vector<2x128xf32>
    %360 = arith.addf %359, %358 : vector<2x128xf32>
    %361 = arith.divf %359, %360 : vector<2x128xf32>
    %362 = vector.extract_strided_slice %349 {offsets = [0, 256], sizes = [2, 128], strides = [1, 1]} : vector<2x512xf32> to vector<2x128xf32>
    %363 = math.tanh %362 : vector<2x128xf32>
    %364 = vector.extract_strided_slice %349 {offsets = [0, 384], sizes = [2, 128], strides = [1, 1]} : vector<2x512xf32> to vector<2x128xf32>
    %365 = arith.negf %364 : vector<2x128xf32>
    %366 = math.exp %365 : vector<2x128xf32>
    %cst_68 = arith.constant 1.000000e+00 : f32
    %367 = vector.broadcast %cst_68 : f32 to vector<2x128xf32>
    %368 = arith.addf %367, %366 : vector<2x128xf32>
    %369 = arith.divf %367, %368 : vector<2x128xf32>
    %370 = arith.mulf %361, %343 : vector<2x128xf32>
    %371 = arith.mulf %355, %363 : vector<2x128xf32>
    %372 = arith.addf %370, %371 : vector<2x128xf32>
    %373 = math.tanh %372 : vector<2x128xf32>
    %374 = arith.mulf %369, %373 : vector<2x128xf32>
    %375 = vector.extract_strided_slice %168 {offsets = [14, 0], sizes = [2, 512], strides = [1, 1]} : vector<16x512xf32> to vector<2x512xf32>
    %376 = arith.truncf %374 : vector<2x128xf32> to vector<2x128xbf16>
    %cst_69 = arith.constant dense<0.000000e+00> : vector<2x512xf32>
    %377 = tpu.matmul %376, %169, %cst_69 {dimension_numbers = #tpu.dot_dimension_numbers<[1], [0], [0], [1], [0, 0, 1, 1], [], []>} : vector<2x128xbf16>, vector<128x512xbf16>, vector<2x512xf32> -> vector<2x512xf32>
    %378 = arith.addf %375, %377 : vector<2x512xf32>
    %379 = vector.extract_strided_slice %378 {offsets = [0, 0], sizes = [2, 128], strides = [1, 1]} : vector<2x512xf32> to vector<2x128xf32>
    %380 = arith.negf %379 : vector<2x128xf32>
    %381 = math.exp %380 : vector<2x128xf32>
    %cst_70 = arith.constant 1.000000e+00 : f32
    %382 = vector.broadcast %cst_70 : f32 to vector<2x128xf32>
    %383 = arith.addf %382, %381 : vector<2x128xf32>
    %384 = arith.divf %382, %383 : vector<2x128xf32>
    %385 = vector.extract_strided_slice %378 {offsets = [0, 128], sizes = [2, 128], strides = [1, 1]} : vector<2x512xf32> to vector<2x128xf32>
    %386 = arith.negf %385 : vector<2x128xf32>
    %387 = math.exp %386 : vector<2x128xf32>
    %cst_71 = arith.constant 1.000000e+00 : f32
    %388 = vector.broadcast %cst_71 : f32 to vector<2x128xf32>
    %389 = arith.addf %388, %387 : vector<2x128xf32>
    %390 = arith.divf %388, %389 : vector<2x128xf32>
    %391 = vector.extract_strided_slice %378 {offsets = [0, 256], sizes = [2, 128], strides = [1, 1]} : vector<2x512xf32> to vector<2x128xf32>
    %392 = math.tanh %391 : vector<2x128xf32>
    %393 = vector.extract_strided_slice %378 {offsets = [0, 384], sizes = [2, 128], strides = [1, 1]} : vector<2x512xf32> to vector<2x128xf32>
    %394 = arith.negf %393 : vector<2x128xf32>
    %395 = math.exp %394 : vector<2x128xf32>
    %cst_72 = arith.constant 1.000000e+00 : f32
    %396 = vector.broadcast %cst_72 : f32 to vector<2x128xf32>
    %397 = arith.addf %396, %395 : vector<2x128xf32>
    %398 = arith.divf %396, %397 : vector<2x128xf32>
    %399 = arith.mulf %390, %372 : vector<2x128xf32>
    %400 = arith.mulf %384, %392 : vector<2x128xf32>
    %401 = arith.addf %399, %400 : vector<2x128xf32>
    %402 = math.tanh %401 : vector<2x128xf32>
    %403 = arith.mulf %398, %402 : vector<2x128xf32>
    %404 = vector.extract_strided_slice %200 {offsets = [0, 0], sizes = [1, 128], strides = [1, 1]} : vector<2x128xf32> to vector<1x128xf32>
    %405 = vector.extract_strided_slice %229 {offsets = [0, 0], sizes = [1, 128], strides = [1, 1]} : vector<2x128xf32> to vector<1x128xf32>
    %406 = vector.extract_strided_slice %258 {offsets = [0, 0], sizes = [1, 128], strides = [1, 1]} : vector<2x128xf32> to vector<1x128xf32>
    %407 = vector.extract_strided_slice %287 {offsets = [0, 0], sizes = [1, 128], strides = [1, 1]} : vector<2x128xf32> to vector<1x128xf32>
    %408 = vector.extract_strided_slice %316 {offsets = [0, 0], sizes = [1, 128], strides = [1, 1]} : vector<2x128xf32> to vector<1x128xf32>
    %409 = vector.extract_strided_slice %345 {offsets = [0, 0], sizes = [1, 128], strides = [1, 1]} : vector<2x128xf32> to vector<1x128xf32>
    %410 = vector.extract_strided_slice %374 {offsets = [0, 0], sizes = [1, 128], strides = [1, 1]} : vector<2x128xf32> to vector<1x128xf32>
    %411 = vector.extract_strided_slice %403 {offsets = [0, 0], sizes = [1, 128], strides = [1, 1]} : vector<2x128xf32> to vector<1x128xf32>
    %412 = tpu.concatenate %404, %405, %406, %407, %408, %409, %410, %411 in 0 : vector<1x128xf32>, vector<1x128xf32>, vector<1x128xf32>, vector<1x128xf32>, vector<1x128xf32>, vector<1x128xf32>, vector<1x128xf32>, vector<1x128xf32> -> vector<8x128xf32>
    %413 = vector.extract_strided_slice %412 {offsets = [0, 0], sizes = [8, 36], strides = [1, 1]} : vector<8x128xf32> to vector<8x36xf32>
    %c127_i32 = arith.constant 127 : i32
    %414 = tpu.dynamic_rotate %412 by %c127_i32 dim 1 : vector<8x128xf32>, i32 -> vector<8x128xf32>
    %415 = vector.extract_strided_slice %414 {offsets = [0, 0], sizes = [8, 36], strides = [1, 1]} : vector<8x128xf32> to vector<8x36xf32>
    %c126_i32 = arith.constant 126 : i32
    %416 = tpu.dynamic_rotate %412 by %c126_i32 dim 1 : vector<8x128xf32>, i32 -> vector<8x128xf32>
    %417 = vector.extract_strided_slice %416 {offsets = [0, 0], sizes = [8, 36], strides = [1, 1]} : vector<8x128xf32> to vector<8x36xf32>
    %c125_i32 = arith.constant 125 : i32
    %418 = tpu.dynamic_rotate %412 by %c125_i32 dim 1 : vector<8x128xf32>, i32 -> vector<8x128xf32>
    %419 = vector.extract_strided_slice %418 {offsets = [0, 0], sizes = [8, 36], strides = [1, 1]} : vector<8x128xf32> to vector<8x36xf32>
    %c124_i32 = arith.constant 124 : i32
    %420 = tpu.dynamic_rotate %412 by %c124_i32 dim 1 : vector<8x128xf32>, i32 -> vector<8x128xf32>
    %421 = vector.extract_strided_slice %420 {offsets = [0, 0], sizes = [8, 36], strides = [1, 1]} : vector<8x128xf32> to vector<8x36xf32>
    %c123_i32 = arith.constant 123 : i32
    %422 = tpu.dynamic_rotate %412 by %c123_i32 dim 1 : vector<8x128xf32>, i32 -> vector<8x128xf32>
    %423 = vector.extract_strided_slice %422 {offsets = [0, 0], sizes = [8, 36], strides = [1, 1]} : vector<8x128xf32> to vector<8x36xf32>
    %c122_i32 = arith.constant 122 : i32
    %424 = tpu.dynamic_rotate %412 by %c122_i32 dim 1 : vector<8x128xf32>, i32 -> vector<8x128xf32>
    %425 = vector.extract_strided_slice %424 {offsets = [0, 0], sizes = [8, 36], strides = [1, 1]} : vector<8x128xf32> to vector<8x36xf32>
    %c121_i32 = arith.constant 121 : i32
    %426 = tpu.dynamic_rotate %412 by %c121_i32 dim 1 : vector<8x128xf32>, i32 -> vector<8x128xf32>
    %427 = vector.extract_strided_slice %426 {offsets = [0, 0], sizes = [8, 36], strides = [1, 1]} : vector<8x128xf32> to vector<8x36xf32>
    %c120_i32 = arith.constant 120 : i32
    %428 = tpu.dynamic_rotate %412 by %c120_i32 dim 1 : vector<8x128xf32>, i32 -> vector<8x128xf32>
    %429 = vector.extract_strided_slice %428 {offsets = [0, 0], sizes = [8, 36], strides = [1, 1]} : vector<8x128xf32> to vector<8x36xf32>
    %430 = tpu.concatenate %413, %415, %417, %419, %421, %423, %425, %427, %429 in 0 : vector<8x36xf32>, vector<8x36xf32>, vector<8x36xf32>, vector<8x36xf32>, vector<8x36xf32>, vector<8x36xf32>, vector<8x36xf32>, vector<8x36xf32>, vector<8x36xf32> -> vector<72x36xf32>
    %431 = vector.extract_strided_slice %200 {offsets = [1, 0], sizes = [1, 128], strides = [1, 1]} : vector<2x128xf32> to vector<1x128xf32>
    %432 = vector.extract_strided_slice %229 {offsets = [1, 0], sizes = [1, 128], strides = [1, 1]} : vector<2x128xf32> to vector<1x128xf32>
    %433 = vector.extract_strided_slice %258 {offsets = [1, 0], sizes = [1, 128], strides = [1, 1]} : vector<2x128xf32> to vector<1x128xf32>
    %434 = vector.extract_strided_slice %287 {offsets = [1, 0], sizes = [1, 128], strides = [1, 1]} : vector<2x128xf32> to vector<1x128xf32>
    %435 = vector.extract_strided_slice %316 {offsets = [1, 0], sizes = [1, 128], strides = [1, 1]} : vector<2x128xf32> to vector<1x128xf32>
    %436 = vector.extract_strided_slice %345 {offsets = [1, 0], sizes = [1, 128], strides = [1, 1]} : vector<2x128xf32> to vector<1x128xf32>
    %437 = vector.extract_strided_slice %374 {offsets = [1, 0], sizes = [1, 128], strides = [1, 1]} : vector<2x128xf32> to vector<1x128xf32>
    %438 = vector.extract_strided_slice %403 {offsets = [1, 0], sizes = [1, 128], strides = [1, 1]} : vector<2x128xf32> to vector<1x128xf32>
    %439 = tpu.concatenate %431, %432, %433, %434, %435, %436, %437, %438 in 0 : vector<1x128xf32>, vector<1x128xf32>, vector<1x128xf32>, vector<1x128xf32>, vector<1x128xf32>, vector<1x128xf32>, vector<1x128xf32>, vector<1x128xf32> -> vector<8x128xf32>
    %440 = vector.extract_strided_slice %439 {offsets = [0, 0], sizes = [8, 36], strides = [1, 1]} : vector<8x128xf32> to vector<8x36xf32>
    %c127_i32_73 = arith.constant 127 : i32
    %441 = tpu.dynamic_rotate %439 by %c127_i32_73 dim 1 : vector<8x128xf32>, i32 -> vector<8x128xf32>
    %442 = vector.extract_strided_slice %441 {offsets = [0, 0], sizes = [8, 36], strides = [1, 1]} : vector<8x128xf32> to vector<8x36xf32>
    %c126_i32_74 = arith.constant 126 : i32
    %443 = tpu.dynamic_rotate %439 by %c126_i32_74 dim 1 : vector<8x128xf32>, i32 -> vector<8x128xf32>
    %444 = vector.extract_strided_slice %443 {offsets = [0, 0], sizes = [8, 36], strides = [1, 1]} : vector<8x128xf32> to vector<8x36xf32>
    %c125_i32_75 = arith.constant 125 : i32
    %445 = tpu.dynamic_rotate %439 by %c125_i32_75 dim 1 : vector<8x128xf32>, i32 -> vector<8x128xf32>
    %446 = vector.extract_strided_slice %445 {offsets = [0, 0], sizes = [8, 36], strides = [1, 1]} : vector<8x128xf32> to vector<8x36xf32>
    %c124_i32_76 = arith.constant 124 : i32
    %447 = tpu.dynamic_rotate %439 by %c124_i32_76 dim 1 : vector<8x128xf32>, i32 -> vector<8x128xf32>
    %448 = vector.extract_strided_slice %447 {offsets = [0, 0], sizes = [8, 36], strides = [1, 1]} : vector<8x128xf32> to vector<8x36xf32>
    %c123_i32_77 = arith.constant 123 : i32
    %449 = tpu.dynamic_rotate %439 by %c123_i32_77 dim 1 : vector<8x128xf32>, i32 -> vector<8x128xf32>
    %450 = vector.extract_strided_slice %449 {offsets = [0, 0], sizes = [8, 36], strides = [1, 1]} : vector<8x128xf32> to vector<8x36xf32>
    %c122_i32_78 = arith.constant 122 : i32
    %451 = tpu.dynamic_rotate %439 by %c122_i32_78 dim 1 : vector<8x128xf32>, i32 -> vector<8x128xf32>
    %452 = vector.extract_strided_slice %451 {offsets = [0, 0], sizes = [8, 36], strides = [1, 1]} : vector<8x128xf32> to vector<8x36xf32>
    %c121_i32_79 = arith.constant 121 : i32
    %453 = tpu.dynamic_rotate %439 by %c121_i32_79 dim 1 : vector<8x128xf32>, i32 -> vector<8x128xf32>
    %454 = vector.extract_strided_slice %453 {offsets = [0, 0], sizes = [8, 36], strides = [1, 1]} : vector<8x128xf32> to vector<8x36xf32>
    %c120_i32_80 = arith.constant 120 : i32
    %455 = tpu.dynamic_rotate %439 by %c120_i32_80 dim 1 : vector<8x128xf32>, i32 -> vector<8x128xf32>
    %456 = vector.extract_strided_slice %455 {offsets = [0, 0], sizes = [8, 36], strides = [1, 1]} : vector<8x128xf32> to vector<8x36xf32>
    %457 = tpu.concatenate %440, %442, %444, %446, %448, %450, %452, %454, %456 in 0 : vector<8x36xf32>, vector<8x36xf32>, vector<8x36xf32>, vector<8x36xf32>, vector<8x36xf32>, vector<8x36xf32>, vector<8x36xf32>, vector<8x36xf32>, vector<8x36xf32> -> vector<72x36xf32>
    %458 = tpu.concatenate %430, %457 in 1 : vector<72x36xf32>, vector<72x36xf32> -> vector<72x72xf32>
    %c0_81 = arith.constant 0 : index
    %c0_82 = arith.constant 0 : index
    %459 = vector.load %arg4[%c0_81, %c0_82] : memref<32x72xbf16, #tpu.memory_space<vmem>>, vector<32x72xbf16>
    %460 = arith.truncf %458 : vector<72x72xf32> to vector<72x72xbf16>
    %cst_83 = arith.constant dense<0.000000e+00> : vector<32x72xf32>
    %461 = tpu.matmul %459, %460, %cst_83 {dimension_numbers = #tpu.dot_dimension_numbers<[1], [0], [0], [1], [0, 0, 1, 1], [], []>} : vector<32x72xbf16>, vector<72x72xbf16>, vector<32x72xf32> -> vector<32x72xf32>
    %c0_84 = arith.constant 0 : index
    %c0_85 = arith.constant 0 : index
    %462 = vector.load %arg5[%c0_84, %c0_85] : memref<32x1xf32, #tpu.memory_space<vmem>>, vector<32x1xf32>
    %463 = vector.broadcast %462 : vector<32x1xf32> to vector<32x72xf32>
    %464 = arith.addf %461, %463 : vector<32x72xf32>
    %465 = vector.extract_strided_slice %464 {offsets = [0, 0], sizes = [4, 36], strides = [1, 1]} : vector<32x72xf32> to vector<4x36xf32>
    %466 = vector.extract_strided_slice %464 {offsets = [4, 0], sizes = [4, 36], strides = [1, 1]} : vector<32x72xf32> to vector<4x36xf32>
    %467 = vector.extract_strided_slice %464 {offsets = [8, 0], sizes = [4, 36], strides = [1, 1]} : vector<32x72xf32> to vector<4x36xf32>
    %468 = vector.extract_strided_slice %464 {offsets = [12, 0], sizes = [4, 36], strides = [1, 1]} : vector<32x72xf32> to vector<4x36xf32>
    %469 = vector.extract_strided_slice %464 {offsets = [16, 0], sizes = [4, 36], strides = [1, 1]} : vector<32x72xf32> to vector<4x36xf32>
    %470 = vector.extract_strided_slice %464 {offsets = [20, 0], sizes = [4, 36], strides = [1, 1]} : vector<32x72xf32> to vector<4x36xf32>
    %471 = vector.extract_strided_slice %464 {offsets = [24, 0], sizes = [4, 36], strides = [1, 1]} : vector<32x72xf32> to vector<4x36xf32>
    %472 = vector.extract_strided_slice %464 {offsets = [28, 0], sizes = [4, 36], strides = [1, 1]} : vector<32x72xf32> to vector<4x36xf32>
    %473 = tpu.concatenate %465, %466, %467, %468, %469, %470, %471, %472 in 1 : vector<4x36xf32>, vector<4x36xf32>, vector<4x36xf32>, vector<4x36xf32>, vector<4x36xf32>, vector<4x36xf32>, vector<4x36xf32>, vector<4x36xf32> -> vector<4x288xf32>
    %474 = vector.extract_strided_slice %464 {offsets = [0, 36], sizes = [4, 36], strides = [1, 1]} : vector<32x72xf32> to vector<4x36xf32>
    %475 = vector.extract_strided_slice %464 {offsets = [4, 36], sizes = [4, 36], strides = [1, 1]} : vector<32x72xf32> to vector<4x36xf32>
    %476 = vector.extract_strided_slice %464 {offsets = [8, 36], sizes = [4, 36], strides = [1, 1]} : vector<32x72xf32> to vector<4x36xf32>
    %477 = vector.extract_strided_slice %464 {offsets = [12, 36], sizes = [4, 36], strides = [1, 1]} : vector<32x72xf32> to vector<4x36xf32>
    %478 = vector.extract_strided_slice %464 {offsets = [16, 36], sizes = [4, 36], strides = [1, 1]} : vector<32x72xf32> to vector<4x36xf32>
    %479 = vector.extract_strided_slice %464 {offsets = [20, 36], sizes = [4, 36], strides = [1, 1]} : vector<32x72xf32> to vector<4x36xf32>
    %480 = vector.extract_strided_slice %464 {offsets = [24, 36], sizes = [4, 36], strides = [1, 1]} : vector<32x72xf32> to vector<4x36xf32>
    %481 = vector.extract_strided_slice %464 {offsets = [28, 36], sizes = [4, 36], strides = [1, 1]} : vector<32x72xf32> to vector<4x36xf32>
    %482 = tpu.concatenate %474, %475, %476, %477, %478, %479, %480, %481 in 1 : vector<4x36xf32>, vector<4x36xf32>, vector<4x36xf32>, vector<4x36xf32>, vector<4x36xf32>, vector<4x36xf32>, vector<4x36xf32>, vector<4x36xf32> -> vector<4x288xf32>
    %483 = vector.shape_cast %473 : vector<4x288xf32> to vector<1x4x288xf32>
    %484 = vector.shape_cast %482 : vector<4x288xf32> to vector<1x4x288xf32>
    %485 = tpu.concatenate %483, %484 in 0 : vector<1x4x288xf32>, vector<1x4x288xf32> -> vector<2x4x288xf32>
    %486 = arith.mulf %485, %485 : vector<2x4x288xf32>
    %cst_86 = arith.constant dense<0.000000e+00> : vector<2x288xf32>
    %487 = vector.multi_reduction <add>, %486, %cst_86 [1] : vector<2x4x288xf32> to vector<2x288xf32>
    %488 = vector.shape_cast %487 : vector<2x288xf32> to vector<2x1x288xf32>
    %cst_87 = arith.constant 9.99999971E-10 : f32
    %489 = vector.broadcast %cst_87 : f32 to vector<2x1x288xf32>
    %490 = arith.addf %488, %489 : vector<2x1x288xf32>
    %491 = math.rsqrt %490 : vector<2x1x288xf32>
    %492 = arith.mulf %488, %491 : vector<2x1x288xf32>
    %cst_88 = arith.constant 1.000000e+00 : f32
    %493 = vector.broadcast %cst_88 : f32 to vector<2x1x288xf32>
    %494 = arith.addf %493, %488 : vector<2x1x288xf32>
    %495 = arith.divf %492, %494 : vector<2x1x288xf32>
    %496 = vector.broadcast %495 : vector<2x1x288xf32> to vector<2x4x288xf32>
    %497 = arith.mulf %485, %496 : vector<2x4x288xf32>
    %c0_89 = arith.constant 0 : index
    %c0_90 = arith.constant 0 : index
    %c0_91 = arith.constant 0 : index
    %c0_92 = arith.constant 0 : index
    %498 = vector.load %arg6[%c0_89, %c0_90, %c0_91, %c0_92] : memref<4x4x8x288xf32, #tpu.memory_space<vmem>>, vector<1x4x8x288xf32>
    %499 = vector.shape_cast %498 : vector<1x4x8x288xf32> to vector<4x8x288xf32>
    %500 = vector.shape_cast %499 : vector<4x8x288xf32> to vector<4x1x8x288xf32>
    %501 = vector.extract_strided_slice %497 {offsets = [0, 0, 0], sizes = [2, 1, 288], strides = [1, 1, 1]} : vector<2x4x288xf32> to vector<2x1x288xf32>
    %502 = vector.shape_cast %501 : vector<2x1x288xf32> to vector<2x288xf32>
    %503 = vector.shape_cast %502 : vector<2x288xf32> to vector<1x2x1x288xf32>
    %504 = vector.broadcast %500 : vector<4x1x8x288xf32> to vector<4x2x8x288xf32>
    %505 = vector.broadcast %503 : vector<1x2x1x288xf32> to vector<4x2x8x288xf32>
    %506 = arith.mulf %504, %505 : vector<4x2x8x288xf32>
    %507 = vector.shape_cast %506 : vector<4x2x8x288xf32> to vector<8x8x288xf32>
    %c0_93 = arith.constant 0 : index
    %c0_94 = arith.constant 0 : index
    %c0_95 = arith.constant 0 : index
    %508 = vector.load %arg8[%c0_93, %c0_94, %c0_95] : memref<8x8x288xf32, #tpu.memory_space<vmem>>, vector<8x8x288xf32>
    tpu.vector_store %arg8[%c0_93, %c0_94, %c0_95], %507 {strides = array<i32>} : memref<8x8x288xf32, #tpu.memory_space<vmem>>, vector<8x8x288xf32>,
    %c1_96 = arith.constant 1 : index
    %c0_97 = arith.constant 0 : index
    %c0_98 = arith.constant 0 : index
    %c0_99 = arith.constant 0 : index
    %509 = vector.load %arg6[%c1_96, %c0_97, %c0_98, %c0_99] : memref<4x4x8x288xf32, #tpu.memory_space<vmem>>, vector<1x4x8x288xf32>
    %510 = vector.shape_cast %509 : vector<1x4x8x288xf32> to vector<4x8x288xf32>
    %511 = vector.shape_cast %510 : vector<4x8x288xf32> to vector<4x1x8x288xf32>
    %512 = vector.extract_strided_slice %497 {offsets = [0, 1, 0], sizes = [2, 1, 288], strides = [1, 1, 1]} : vector<2x4x288xf32> to vector<2x1x288xf32>
    %513 = vector.shape_cast %512 : vector<2x1x288xf32> to vector<2x288xf32>
    %514 = vector.shape_cast %513 : vector<2x288xf32> to vector<1x2x1x288xf32>
    %515 = vector.broadcast %511 : vector<4x1x8x288xf32> to vector<4x2x8x288xf32>
    %516 = vector.broadcast %514 : vector<1x2x1x288xf32> to vector<4x2x8x288xf32>
    %517 = arith.mulf %515, %516 : vector<4x2x8x288xf32>
    %518 = vector.shape_cast %517 : vector<4x2x8x288xf32> to vector<8x8x288xf32>
    %c0_100 = arith.constant 0 : index
    %c0_101 = arith.constant 0 : index
    %c0_102 = arith.constant 0 : index
    %519 = vector.load %arg8[%c0_100, %c0_101, %c0_102] : memref<8x8x288xf32, #tpu.memory_space<vmem>>, vector<8x8x288xf32>
    %520 = arith.addf %519, %518 : vector<8x8x288xf32>
    %c0_103 = arith.constant 0 : index
    %c0_104 = arith.constant 0 : index
    %c0_105 = arith.constant 0 : index
    %521 = vector.load %arg8[%c0_103, %c0_104, %c0_105] : memref<8x8x288xf32, #tpu.memory_space<vmem>>, vector<8x8x288xf32>
    tpu.vector_store %arg8[%c0_103, %c0_104, %c0_105], %520 {strides = array<i32>} : memref<8x8x288xf32, #tpu.memory_space<vmem>>, vector<8x8x288xf32>,
    %c2_106 = arith.constant 2 : index
    %c0_107 = arith.constant 0 : index
    %c0_108 = arith.constant 0 : index
    %c0_109 = arith.constant 0 : index
    %522 = vector.load %arg6[%c2_106, %c0_107, %c0_108, %c0_109] : memref<4x4x8x288xf32, #tpu.memory_space<vmem>>, vector<1x4x8x288xf32>
    %523 = vector.shape_cast %522 : vector<1x4x8x288xf32> to vector<4x8x288xf32>
    %524 = vector.shape_cast %523 : vector<4x8x288xf32> to vector<4x1x8x288xf32>
    %525 = vector.extract_strided_slice %497 {offsets = [0, 2, 0], sizes = [2, 1, 288], strides = [1, 1, 1]} : vector<2x4x288xf32> to vector<2x1x288xf32>
    %526 = vector.shape_cast %525 : vector<2x1x288xf32> to vector<2x288xf32>
    %527 = vector.shape_cast %526 : vector<2x288xf32> to vector<1x2x1x288xf32>
    %528 = vector.broadcast %524 : vector<4x1x8x288xf32> to vector<4x2x8x288xf32>
    %529 = vector.broadcast %527 : vector<1x2x1x288xf32> to vector<4x2x8x288xf32>
    %530 = arith.mulf %528, %529 : vector<4x2x8x288xf32>
    %531 = vector.shape_cast %530 : vector<4x2x8x288xf32> to vector<8x8x288xf32>
    %c0_110 = arith.constant 0 : index
    %c0_111 = arith.constant 0 : index
    %c0_112 = arith.constant 0 : index
    %532 = vector.load %arg8[%c0_110, %c0_111, %c0_112] : memref<8x8x288xf32, #tpu.memory_space<vmem>>, vector<8x8x288xf32>
    %533 = arith.addf %532, %531 : vector<8x8x288xf32>
    %c0_113 = arith.constant 0 : index
    %c0_114 = arith.constant 0 : index
    %c0_115 = arith.constant 0 : index
    %534 = vector.load %arg8[%c0_113, %c0_114, %c0_115] : memref<8x8x288xf32, #tpu.memory_space<vmem>>, vector<8x8x288xf32>
    tpu.vector_store %arg8[%c0_113, %c0_114, %c0_115], %533 {strides = array<i32>} : memref<8x8x288xf32, #tpu.memory_space<vmem>>, vector<8x8x288xf32>,
    %c3_116 = arith.constant 3 : index
    %c0_117 = arith.constant 0 : index
    %c0_118 = arith.constant 0 : index
    %c0_119 = arith.constant 0 : index
    %535 = vector.load %arg6[%c3_116, %c0_117, %c0_118, %c0_119] : memref<4x4x8x288xf32, #tpu.memory_space<vmem>>, vector<1x4x8x288xf32>
    %536 = vector.shape_cast %535 : vector<1x4x8x288xf32> to vector<4x8x288xf32>
    %537 = vector.shape_cast %536 : vector<4x8x288xf32> to vector<4x1x8x288xf32>
    %538 = vector.extract_strided_slice %497 {offsets = [0, 3, 0], sizes = [2, 1, 288], strides = [1, 1, 1]} : vector<2x4x288xf32> to vector<2x1x288xf32>
    %539 = vector.shape_cast %538 : vector<2x1x288xf32> to vector<2x288xf32>
    %540 = vector.shape_cast %539 : vector<2x288xf32> to vector<1x2x1x288xf32>
    %541 = vector.broadcast %537 : vector<4x1x8x288xf32> to vector<4x2x8x288xf32>
    %542 = vector.broadcast %540 : vector<1x2x1x288xf32> to vector<4x2x8x288xf32>
    %543 = arith.mulf %541, %542 : vector<4x2x8x288xf32>
    %544 = vector.shape_cast %543 : vector<4x2x8x288xf32> to vector<8x8x288xf32>
    %c0_120 = arith.constant 0 : index
    %c0_121 = arith.constant 0 : index
    %c0_122 = arith.constant 0 : index
    %545 = vector.load %arg8[%c0_120, %c0_121, %c0_122] : memref<8x8x288xf32, #tpu.memory_space<vmem>>, vector<8x8x288xf32>
    %546 = arith.addf %545, %544 : vector<8x8x288xf32>
    %c0_123 = arith.constant 0 : index
    %c0_124 = arith.constant 0 : index
    %c0_125 = arith.constant 0 : index
    %547 = vector.load %arg8[%c0_123, %c0_124, %c0_125] : memref<8x8x288xf32, #tpu.memory_space<vmem>>, vector<8x8x288xf32>
    tpu.vector_store %arg8[%c0_123, %c0_124, %c0_125], %546 {strides = array<i32>} : memref<8x8x288xf32, #tpu.memory_space<vmem>>, vector<8x8x288xf32>,
    %cst_126 = arith.constant 0.000000e+00 : f32
    %548 = vector.broadcast %cst_126 : f32 to vector<8x288xf32>
    %cst_127 = arith.constant dense<0xFF800000> : vector<8xf32>
    %549 = vector.multi_reduction <maximumf>, %548, %cst_127 [1] : vector<8x288xf32> to vector<8xf32>
    %550 = vector.shape_cast %549 : vector<8xf32> to vector<8x1xf32>
    %551 = vector.broadcast %550 : vector<8x1xf32> to vector<8x288xf32>
    %552 = arith.subf %548, %551 : vector<8x288xf32>
    %553 = math.exp %552 : vector<8x288xf32>
    %cst_128 = arith.constant dense<0.000000e+00> : vector<8xf32>
    %554 = vector.multi_reduction <add>, %553, %cst_128 [1] : vector<8x288xf32> to vector<8xf32>
    %555 = vector.shape_cast %554 : vector<8xf32> to vector<8x1xf32>
    %cst_129 = arith.constant 1.000000e+00 : f32
    %556 = vector.broadcast %cst_129 : f32 to vector<8x1xf32>
    %557 = arith.divf %556, %555 : vector<8x1xf32>
    %558 = vector.broadcast %557 : vector<8x1xf32> to vector<8x288xf32>
    %559 = arith.mulf %553, %558 : vector<8x288xf32>
    %c0_130 = arith.constant 0 : index
    %c0_131 = arith.constant 0 : index
    %c0_132 = arith.constant 0 : index
    %560 = vector.load %arg8[%c0_130, %c0_131, %c0_132] : memref<8x8x288xf32, #tpu.memory_space<vmem>>, vector<8x8x288xf32>
    %561 = vector.shape_cast %559 : vector<8x288xf32> to vector<8x1x288xf32>
    %562 = vector.broadcast %561 : vector<8x1x288xf32> to vector<8x8x288xf32>
    %563 = arith.mulf %562, %560 : vector<8x8x288xf32>
    %cst_133 = arith.constant dense<0.000000e+00> : vector<8x8xf32>
    %564 = vector.multi_reduction <add>, %563, %cst_133 [2] : vector<8x8x288xf32> to vector<8x8xf32>
    %565 = arith.mulf %564, %564 : vector<8x8xf32>
    %cst_134 = arith.constant dense<0.000000e+00> : vector<8xf32>
    %566 = vector.multi_reduction <add>, %565, %cst_134 [1] : vector<8x8xf32> to vector<8xf32>
    %567 = vector.shape_cast %566 : vector<8xf32> to vector<8x1xf32>
    %cst_135 = arith.constant 9.99999971E-10 : f32
    %568 = vector.broadcast %cst_135 : f32 to vector<8x1xf32>
    %569 = arith.addf %567, %568 : vector<8x1xf32>
    %570 = math.rsqrt %569 : vector<8x1xf32>
    %571 = arith.mulf %567, %570 : vector<8x1xf32>
    %cst_136 = arith.constant 1.000000e+00 : f32
    %572 = vector.broadcast %cst_136 : f32 to vector<8x1xf32>
    %573 = arith.addf %572, %567 : vector<8x1xf32>
    %574 = arith.divf %571, %573 : vector<8x1xf32>
    %575 = vector.broadcast %574 : vector<8x1xf32> to vector<8x8xf32>
    %576 = arith.mulf %564, %575 : vector<8x8xf32>
    %577 = vector.shape_cast %576 : vector<8x8xf32> to vector<8x8x1xf32>
    %578 = vector.broadcast %577 : vector<8x8x1xf32> to vector<8x8x288xf32>
    %579 = arith.mulf %560, %578 : vector<8x8x288xf32>
    %cst_137 = arith.constant dense<0.000000e+00> : vector<8x288xf32>
    %580 = vector.multi_reduction <add>, %579, %cst_137 [1] : vector<8x8x288xf32> to vector<8x288xf32>
    %581 = arith.addf %548, %580 : vector<8x288xf32>
    %cst_138 = arith.constant dense<0xFF800000> : vector<8xf32>
    %582 = vector.multi_reduction <maximumf>, %581, %cst_138 [1] : vector<8x288xf32> to vector<8xf32>
    %583 = vector.shape_cast %582 : vector<8xf32> to vector<8x1xf32>
    %584 = vector.broadcast %583 : vector<8x1xf32> to vector<8x288xf32>
    %585 = arith.subf %581, %584 : vector<8x288xf32>
    %586 = math.exp %585 : vector<8x288xf32>
    %cst_139 = arith.constant dense<0.000000e+00> : vector<8xf32>
    %587 = vector.multi_reduction <add>, %586, %cst_139 [1] : vector<8x288xf32> to vector<8xf32>
    %588 = vector.shape_cast %587 : vector<8xf32> to vector<8x1xf32>
    %cst_140 = arith.constant 1.000000e+00 : f32
    %589 = vector.broadcast %cst_140 : f32 to vector<8x1xf32>
    %590 = arith.divf %589, %588 : vector<8x1xf32>
    %591 = vector.broadcast %590 : vector<8x1xf32> to vector<8x288xf32>
    %592 = arith.mulf %586, %591 : vector<8x288xf32>
    %c0_141 = arith.constant 0 : index
    %c0_142 = arith.constant 0 : index
    %c0_143 = arith.constant 0 : index
    %593 = vector.load %arg8[%c0_141, %c0_142, %c0_143] : memref<8x8x288xf32, #tpu.memory_space<vmem>>, vector<8x8x288xf32>
    %594 = vector.shape_cast %592 : vector<8x288xf32> to vector<8x1x288xf32>
    %595 = vector.broadcast %594 : vector<8x1x288xf32> to vector<8x8x288xf32>
    %596 = arith.mulf %595, %593 : vector<8x8x288xf32>
    %cst_144 = arith.constant dense<0.000000e+00> : vector<8x8xf32>
    %597 = vector.multi_reduction <add>, %596, %cst_144 [2] : vector<8x8x288xf32> to vector<8x8xf32>
    %598 = arith.mulf %597, %597 : vector<8x8xf32>
    %cst_145 = arith.constant dense<0.000000e+00> : vector<8xf32>
    %599 = vector.multi_reduction <add>, %598, %cst_145 [1] : vector<8x8xf32> to vector<8xf32>
    %600 = vector.shape_cast %599 : vector<8xf32> to vector<8x1xf32>
    %cst_146 = arith.constant 9.99999971E-10 : f32
    %601 = vector.broadcast %cst_146 : f32 to vector<8x1xf32>
    %602 = arith.addf %600, %601 : vector<8x1xf32>
    %603 = math.rsqrt %602 : vector<8x1xf32>
    %604 = arith.mulf %600, %603 : vector<8x1xf32>
    %cst_147 = arith.constant 1.000000e+00 : f32
    %605 = vector.broadcast %cst_147 : f32 to vector<8x1xf32>
    %606 = arith.addf %605, %600 : vector<8x1xf32>
    %607 = arith.divf %604, %606 : vector<8x1xf32>
    %608 = vector.broadcast %607 : vector<8x1xf32> to vector<8x8xf32>
    %609 = arith.mulf %597, %608 : vector<8x8xf32>
    %610 = vector.shape_cast %609 : vector<8x8xf32> to vector<8x8x1xf32>
    %611 = vector.broadcast %610 : vector<8x8x1xf32> to vector<8x8x288xf32>
    %612 = arith.mulf %593, %611 : vector<8x8x288xf32>
    %cst_148 = arith.constant dense<0.000000e+00> : vector<8x288xf32>
    %613 = vector.multi_reduction <add>, %612, %cst_148 [1] : vector<8x8x288xf32> to vector<8x288xf32>
    %614 = arith.addf %581, %613 : vector<8x288xf32>
    %cst_149 = arith.constant dense<0xFF800000> : vector<8xf32>
    %615 = vector.multi_reduction <maximumf>, %614, %cst_149 [1] : vector<8x288xf32> to vector<8xf32>
    %616 = vector.shape_cast %615 : vector<8xf32> to vector<8x1xf32>
    %617 = vector.broadcast %616 : vector<8x1xf32> to vector<8x288xf32>
    %618 = arith.subf %614, %617 : vector<8x288xf32>
    %619 = math.exp %618 : vector<8x288xf32>
    %cst_150 = arith.constant dense<0.000000e+00> : vector<8xf32>
    %620 = vector.multi_reduction <add>, %619, %cst_150 [1] : vector<8x288xf32> to vector<8xf32>
    %621 = vector.shape_cast %620 : vector<8xf32> to vector<8x1xf32>
    %cst_151 = arith.constant 1.000000e+00 : f32
    %622 = vector.broadcast %cst_151 : f32 to vector<8x1xf32>
    %623 = arith.divf %622, %621 : vector<8x1xf32>
    %624 = vector.broadcast %623 : vector<8x1xf32> to vector<8x288xf32>
    %625 = arith.mulf %619, %624 : vector<8x288xf32>
    %c0_152 = arith.constant 0 : index
    %c0_153 = arith.constant 0 : index
    %c0_154 = arith.constant 0 : index
    %626 = vector.load %arg8[%c0_152, %c0_153, %c0_154] : memref<8x8x288xf32, #tpu.memory_space<vmem>>, vector<8x8x288xf32>
    %627 = vector.shape_cast %625 : vector<8x288xf32> to vector<8x1x288xf32>
    %628 = vector.broadcast %627 : vector<8x1x288xf32> to vector<8x8x288xf32>
    %629 = arith.mulf %628, %626 : vector<8x8x288xf32>
    %cst_155 = arith.constant dense<0.000000e+00> : vector<8x8xf32>
    %630 = vector.multi_reduction <add>, %629, %cst_155 [2] : vector<8x8x288xf32> to vector<8x8xf32>
    %631 = arith.mulf %630, %630 : vector<8x8xf32>
    %cst_156 = arith.constant dense<0.000000e+00> : vector<8xf32>
    %632 = vector.multi_reduction <add>, %631, %cst_156 [1] : vector<8x8xf32> to vector<8xf32>
    %633 = vector.shape_cast %632 : vector<8xf32> to vector<8x1xf32>
    %cst_157 = arith.constant 9.99999971E-10 : f32
    %634 = vector.broadcast %cst_157 : f32 to vector<8x1xf32>
    %635 = arith.addf %633, %634 : vector<8x1xf32>
    %636 = math.rsqrt %635 : vector<8x1xf32>
    %637 = arith.mulf %633, %636 : vector<8x1xf32>
    %cst_158 = arith.constant 1.000000e+00 : f32
    %638 = vector.broadcast %cst_158 : f32 to vector<8x1xf32>
    %639 = arith.addf %638, %633 : vector<8x1xf32>
    %640 = arith.divf %637, %639 : vector<8x1xf32>
    %641 = vector.broadcast %640 : vector<8x1xf32> to vector<8x8xf32>
    %642 = arith.mulf %630, %641 : vector<8x8xf32>
    %c0_159 = arith.constant 0 : index
    %c0_160 = arith.constant 0 : index
    %643 = vector.load %arg7[%c0_159, %c0_160] : memref<8x8xf32, #tpu.memory_space<vmem>>, vector<8x8xf32>
    tpu.vector_store %arg7[%c0_159, %c0_160], %642 {strides = array<i32>} : memref<8x8xf32, #tpu.memory_space<vmem>>, vector<8x8xf32>,
    return
  }
}

</mosaic_0001>

<bundles_post_ra>
// kernel: capsule_encoder_forward.1
= control target key start
LH: loop header
LB: loop body
LE: loop exit
PB: predicated region body
PF: predicated region fallthrough
CT: control target
= control target key end

     0   :  { %12 = vsyncpa [#allocation6], 0  ;;  %s7219_s0 = inlined_call_operand.vmem [shape: s32[16], index: 0, kind: input, shape index: {}]   ;;  %s7220_s1 = inlined_call_operand.hbm [shape: bf16[50,512], index: 1, kind: input, shape index: {}]   ;;  %s7221_s2 = inlined_call_operand.hbm [shape: bf16[128,512], index: 2, kind: input, shape index: {}]   ;;  %s7222_s3 = inlined_call_operand.vmem [shape: f32[1,512], index: 3, kind: input, shape index: {}]   ;;  %s7223_s4 = inlined_call_operand.vmem [shape: bf16[32,72], index: 4, kind: input, shape index: {}]   ;;  %s7224_s5 = inlined_call_operand.vmem [shape: f32[32,1], index: 5, kind: input, shape index: {}]   ;;  %s7225_s6 = inlined_call_operand.hbm [shape: f32[4,4,8,288], index: 6, kind: input, shape index: {}]   ;;  %s7226_s7 = inlined_call_operand.hbm [shape: f32[8,8], index: 7, kind: output, shape index: {}]  }
   0x1   :  { %13 = vsyncpa [#allocation4], 0 }
   0x2   :  { %14 = vsyncpa [#allocation9], 0 }
   0x3   :  { %15 = vsyncpa [#allocation5], 0  ;;  %s22_s26 = sshll.u32 %s7219_s0, 4  ;;  %s5077_s27 = smov [#allocation8]   ;;  %s23_s26 = int_to_ptr.vmem [resolvable:$true] %s22_s26 }
   0x4   :  { %s43_s28 = sshll.u32 %s5077_s27, 4  ;;  %s4969_s8 = scalar_lea.hbm %s7221_s2, 4096  ;;  %s44_s28 = int_to_ptr.vmem [resolvable:$true] %s43_s28 }
   0x5   :  { %p4970_p0 = scmp.ne.s32.totalorder %s7221_s2, %s4969_s8  ;;  %p4973_p1 = scmp.lt.u32.totalorder %s4969_s8, %s7221_s2 }
   0x7   :  { %p4975_p2 = pnand %p4973_p1, %p4970_p0 }
   0x9   :  { %4978 = shalt.err (!%p4975_p2)
}
   0xa   :  { %s4979_s13 = scalar_lea.vmem %s44_s28, 4096  ;;  %p4984_p4 = scmp.lt.s32.totalorder %s44_s28, %s44_s28 }
   0xb   :  { %p4980_p3 = scmp.ne.s32.totalorder %s44_s28, %s4979_s13  ;;  %p4985_p5 = scmp.lt.s32.totalorder %s4979_s13, %s4979_s13 }
   0xd   :  { %p4986_p6 = por %p4985_p5, %p4984_p4 }
   0xf   :  { %p4987_p7 = pnand %p4986_p6, %p4980_p3 }
  0x11   :  { %4990 = shalt.err (!%p4987_p7)
}
  0x12   :  { %s5078_s0 = smov 256   ;;  %s5079_s14 = smov 16  }
  0x13   :  { %49 = dma.hbm_to_vmem [thread:$0]  %s7221_s2, 4096, %s44_s28, [#allocation9], %s5078_s0, %s5078_s0, %s5079_s14  }
  0x14   :  { %s4991_s17 = scalar_lea.vmem %s23_s26, 16  ;;  %p4996_p9 = scmp.lt.s32.totalorder %s23_s26, %s23_s26 }
  0x15   :  { %p4992_p8 = scmp.ne.s32.totalorder %s23_s26, %s4991_s17  ;;  %p4997_p10 = scmp.lt.s32.totalorder %s4991_s17, %s4991_s17 }
  0x17   :  { %p4998_p11 = por %p4997_p10, %p4996_p9 }
  0x19   :  { %p4999_p12 = pnand %p4998_p11, %p4992_p8 }
  0x1b   :  { %5002 = shalt.err (!%p4999_p12)
}
  0x1c   :  { %s5080_s18 = smov [#allocation3]   ;;  %s5081_s19 = smov [#allocation7]  }
  0x1d   :  { %25 = dma.vmem_to_smem %s23_s26, 16, %s5080_s18, [#allocation6]  }
  0x1e   :  { %s31_s20 = sshll.u32 %s5081_s19, 4  ;;  %s5082_s21 = smov [#allocation10]   ;;  %s32_s20 = int_to_ptr.vmem [resolvable:$true] %s31_s20 }
  0x1f   :  { %s61_s22 = sshll.u32 %s5082_s21, 4  ;;  %s5003_s2 = scalar_lea.hbm %s7220_s1, 1792  ;;  %s5160_s22 = int_to_ptr.vmem [resolvable:$true] %s61_s22 }
  0x20   :  { %p5004_p13 = scmp.ne.s32.totalorder %s7220_s1, %s5003_s2  ;;  %p5007_p0 = scmp.lt.u32.totalorder %s5003_s2, %s7220_s1 }
  0x22   :  { %p5009_p1 = pnand %p5007_p0, %p5004_p13 }
  0x24   :  { %5012 = shalt.err (!%p5009_p1)
}
  0x25   :  { %s5013_s26 = scalar_lea.vmem %s32_s20, 1792  ;;  %p5018_p3 = scmp.lt.s32.totalorder %s32_s20, %s32_s20 }
  0x26   :  { %p5014_p2 = scmp.ne.s32.totalorder %s32_s20, %s5013_s26  ;;  %p5019_p4 = scmp.lt.s32.totalorder %s5013_s26, %s5013_s26 }
  0x28   :  { %p5020_p5 = por %p5019_p4, %p5018_p3 }
  0x2a   :  { %p5021_p6 = pnand %p5020_p5, %p5014_p2 }
  0x2c   :  { %5024 = shalt.err (!%p5021_p6)
}
  0x2d   :  { %37 = dma.hbm_to_vmem [thread:$0]  %s7220_s1, 1792, %s32_s20, [#allocation4], %s5078_s0, %s5078_s0, %s5079_s14  }
  0x2e   :  { %s5025_s11 = scalar_lea.hbm %s7225_s6, 6144 }
  0x2f   :  { %p5026_p7 = scmp.ne.s32.totalorder %s7225_s6, %s5025_s11  ;;  %p5029_p8 = scmp.lt.u32.totalorder %s5025_s11, %s7225_s6 }
  0x31   :  { %p5031_p9 = pnand %p5029_p8, %p5026_p7 }
  0x33   :  { %5034 = shalt.err (!%p5031_p9)
}
  0x34   :  { %s5035_s17 = scalar_lea.vmem %s5160_s22, 6144  ;;  %p5040_p11 = scmp.lt.s32.totalorder %s5160_s22, %s5160_s22 }
  0x35   :  { %p5036_p10 = scmp.ne.s32.totalorder %s5160_s22, %s5035_s17  ;;  %p5041_p12 = scmp.lt.s32.totalorder %s5035_s17, %s5035_s17 }
  0x37   :  { %p5042_p13 = por %p5041_p12, %p5040_p11 }
  0x39   :  { %p5043_p0 = pnand %p5042_p13, %p5036_p10 }
  0x3b   :  { %5046 = shalt.err (!%p5043_p0)
}
  0x3c   :  { %s5083_s1 = smov 384   ;;  %s5084_s0 = smov 24  }
  0x3d   :  { %67 = dma.hbm_to_vmem [thread:$0]  %s7225_s6, 6144, %s5160_s22, [#allocation9], %s5083_s1, %s5083_s1, %s5084_s0  }
  0x3e   :  { %5069 = dma.done.wait [#allocation6], 16  }
  0x3f   :  { %5070 = vsyncadd [#allocation6], 4294967280 }
  0x40   :  { %5071 = dma.done.wait [#allocation4], 1792  }
  0x41   :  { %5072 = vsyncadd [#allocation4], 4294965504 }
  0x42   :  { %5073 = dma.done.wait [#allocation9], 10240  }
  0x43   :  { %5074 = vsyncadd [#allocation9], 4294957056 }
  0x44   :  { %80 = sfence }
  0x45   :  { %v5194_v0 = vld [vmem:[#allocation8 + $0x4] ss:$16 sps:$4 sm:$0xff]   ;;  %v5196_v1 = vld [vmem:[#allocation8] ss:$16 sps:$4 sm:$0xff]   ;;  %v7228_v2 = vmov 0   ;;  %s5199_s20 = sld [smem:[#allocation3]]  ;;  %v82_v7 = vlaneseq }
  0x46   :  { %419 = vmatprep.mubr.bf16.mxu1 %v7228_v2  ;;  %697 = vmatprep.mubr.bf16.mxu0 %v7228_v2  ;;  %v5203_v3 = vld [vmem:[#allocation8 + $0x24] ss:$16 sps:$4 sm:$0xff]   ;;  %v5205_v4 = vld [vmem:[#allocation8 + $0x20] ss:$16 sps:$4 sm:$0xff]   ;;  %s5224_s6 = sld [smem:[#allocation3 + $0x1]]  ;;  %s5226_s21 = sld [smem:[#allocation3 + $0x2]] }
  0x47   :  { %665 = vmatprep.subr.bf16.mxu0 %v5194_v0  ;;  %4551 = vset.pattern.permute.xlu1 %v7228_v2  ;;  %v4559_v5 = vld [vmem:[#allocation7 + $0x4] ss:$16 sps:$4 sm:$0xff]   ;;  %v4561_v6 = vld [vmem:[#allocation7] ss:$16 sps:$4 sm:$0xff]   ;;  %v5213_v11 = vand.u32 127, %v82_v7  ;;  %v5220_v14 = vshrl.u32 %v82_v7, 7 }
  0x48   :  { %666 = vmatpush1.bf16.msra.mxu0 %v5196_v1  ;;  %4552 = vset.pattern.permute.xlu0 %v7228_v2  ;;  %v5211_v8 = vld [vmem:[#allocation8 + $0x44] ss:$16 sps:$4 sm:$0xff]   ;;  %v4567_v10 = vld [vmem:[#allocation7 + $0x20] ss:$16 sps:$4 sm:$0xff]   ;;  %s5233_s22 = sld [smem:[#allocation3 + $0x3]]  ;;  %vm374_vm2 = vcmask 1040384  }
  0x49   :  { %667 = vmatprep.subr.bf16.mxu0 %v5203_v3  ;;  %387 = vmatprep.subr.bf16.mxu1 %v4559_v5  ;;  %v4565_v9 = vld [vmem:[#allocation7 + $0x24] ss:$16 sps:$4 sm:$0xff]   ;;  %7268 = vst [vmem:[#allocation16_spill] sm:$0xff] %v5213_v11  ;;  %v5216_v12 = vld [vmem:[#allocation8 + $0x40] ss:$16 sps:$4 sm:$0xff]   ;;  %7269 = vst [vmem:[#allocation17_spill] sm:$0xff] %v5220_v14 }
  0x4a   :  { %388 = vmatpush1.bf16.msra.mxu1 %v4561_v6  ;;  %v5218_v13 = vld [vmem:[#allocation8 + $0x64] ss:$16 sps:$4 sm:$0xff]   ;;  %v4573_v17 = vld [vmem:[#allocation7 + $0x40] ss:$16 sps:$4 sm:$0xff]   ;;  %vm87_vm0 = vcmp.eq.s32.totalorder %v5220_v14, 0  ;;  %vm98_vm4 = vcmp.eq.s32.totalorder %v5220_v14, 1 }
  0x4b   :  { %v90_v15 = vstv %s5199_s20  ;;  %389 = vmatprep.subr.bf16.mxu1 %v4565_v9  ;;  %v4571_v16 = vld [vmem:[#allocation7 + $0x44] ss:$16 sps:$4 sm:$0xff]   ;;  %v5231_v19 = vld [vmem:[#allocation8 + $0x60] ss:$16 sps:$4 sm:$0xff]   ;;  %vm109_vm5 = vcmp.eq.s32.totalorder %v5220_v14, 2  ;;  %vm120_vm6 = vcmp.eq.s32.totalorder %v5220_v14, 3 }
  0x4c   :  { %668 = vmatpush1.bf16.msra.mxu0 %v5205_v4  ;;  %v276_v18 = vld [vmem:[#allocation7 + $0x60] sm:$0x11]  ;;  %vm91_vm1 = vcmp.eq.s32.totalorder %v5213_v11, %v90_v15  ;;  %v4584_v24 = vld [vmem:[#allocation7 + $0xc] ss:$16 sps:$4 sm:$0xff]   ;;  %v101_v25 = vstv %s5224_s6  ;;  %s5244_s23 = sld [smem:[#allocation3 + $0x4]]  ;;  %s5246_s24 = sld [smem:[#allocation3 + $0x5]]  ;;  %v112_v29 = vstv %s5226_s21 }
  0x4d   :  { %669 = vmatprep.subr.bf16.mxu0 %v5211_v8  ;;  %v4417_v20 = vcombine.high %v276_v18, %v276_v18  ;;  %v4416_v21 = vcombine.low %v276_v18, %v276_v18  ;;  %v5236_v22 = vld [vmem:[#allocation8 + $0x84] ss:$16 sps:$4 sm:$0xff]   ;;  %v5238_v23 = vld [vmem:[#allocation8 + $0x80] ss:$16 sps:$4 sm:$0xff]   ;;  %vm92_vm3 = vmand %vm87_vm0, %vm91_vm1  ;;  %v7227_v27 = vmov 0.0   ;;  %vm102_vm7 = vcmp.eq.s32.totalorder %v5213_v11, %v101_v25  ;;  %s5254_s2 = sld [smem:[#allocation3 + $0x6]] }
  0x4e   :  { %390 = vmatpush1.bf16.msra.mxu1 %v4567_v10  ;;  %v94_v28 = vsel %vm92_vm3, 1.0, %v7227_v27  ;;  %s5256_s25 = sld [smem:[#allocation3 + $0x7]]  ;;  %v5259_v30 = vld [vmem:[#allocation8 + $0xa4] ss:$16 sps:$4 sm:$0xff]   ;;  %vm103_vm8 = vmand %vm98_vm4, %vm102_vm7  ;;  %vm113_vm9 = vcmp.eq.s32.totalorder %v5213_v11, %v112_v29  ;;  %s5264_s27 = sld [smem:[#allocation3 + $0x8]]  ;;  %v123_v32 = vstv %s5233_s22  ;;  %v5277_v33 = vadd.s32 8, %v5220_v14 }
  0x4f   :  { %391 = vmatprep.subr.bf16.mxu1 %v4571_v16  ;;  %v376_v26 = vsel %vm374_vm2, %v4416_v21, 0  ;;  %s5266_s28 = sld [smem:[#allocation3 + $0x9]]  ;;  %v105_v31 = vsel %vm103_vm8, 1.0, %v7227_v27  ;;  %vm114_vm10 = vmand %vm109_vm5, %vm113_vm9  ;;  %s5272_s29 = sld [smem:[#allocation3 + $0xa]]  ;;  %vm124_vm11 = vcmp.eq.s32.totalorder %v5213_v11, %v123_v32  ;;  %v5286_v36 = vld [vmem:[#allocation8 + $0xa0] ss:$16 sps:$4 sm:$0xff]  }
  0x50   :  { %670 = vmatpush1.bf16.msra.mxu0 %v5216_v12  ;;  %s5274_s26 = sld [smem:[#allocation3 + $0xb]]  ;;  %v107_v34 = vadd.f32 %v105_v31, %v94_v28  ;;  %v116_v35 = vsel %vm114_vm10, 1.0, %v7227_v27  ;;  %s5281_s30 = sld [smem:[#allocation3 + $0xc]]  ;;  %vm125_vm12 = vmand %vm120_vm6, %vm124_vm11  ;;  %vm131_vm13 = vcmp.eq.s32.totalorder %v5220_v14, 4  ;;  %vm142_vm14 = vcmp.eq.s32.totalorder %v5220_v14, 5 }
  0x51   :  { %671 = vmatprep.subr.bf16.mxu0 %v5218_v13  ;;  %s5283_s8 = sld [smem:[#allocation3 + $0xd]]  ;;  %s5292_s9 = sld [smem:[#allocation3 + $0xe]]  ;;  %v127_v38 = vsel %vm125_vm12, 1.0, %v7227_v27  ;;  %v5298_v41 = vld [vmem:[#allocation8 + $0xc4] ss:$16 sps:$4 sm:$0xff]   ;;  %vm153_vm1 = vcmp.eq.s32.totalorder %v5220_v14, 6 }
  0x52   :  { %392 = vmatpush1.bf16.msra.mxu1 %v4573_v17  ;;  %v118_v37 = vadd.f32 %v116_v35, %v107_v34  ;;  %v134_v39 = vstv %s5244_s23  ;;  %v145_v40 = vstv %s5246_s24  ;;  %s5308_s10 = sld [smem:[#allocation3 + $0xf]]  ;;  %vm164_vm5 = vcmp.eq.s32.totalorder %v5220_v14, 7  ;;  %v5326_v50 = vld [vmem:[#allocation8 + $0xc0] ss:$16 sps:$4 sm:$0xff]   ;;  %v5345_v54 = vld [vmem:[#allocation8 + $0xe4] ss:$16 sps:$4 sm:$0xff]  }
  0x53   :  { %4420 = vmatprep.subr.msk.bf16.mxu1 %vm374_vm2, %v4417_v20  ;;  %vm135_vm15 = vcmp.eq.s32.totalorder %v5213_v11, %v134_v39  ;;  %vm5302_vm0 = vcmp.eq.s32.totalorder %v5213_v11, %v145_v40  ;;  %v156_v43 = vstv %s5254_s2  ;;  %vm176_vm6 = vcmp.eq.s32.totalorder %v5277_v33, 8  ;;  %v5387_v7 = vld [vmem:[#allocation8 + $0xe0] ss:$16 sps:$4 sm:$0xff]   ;;  %v4582_v40 = vld [vmem:[#allocation7 + $0x8] ss:$16 sps:$4 sm:$0xff]   ;;  %s5088_s13 = smov 127  }
  0x54   :  { %672 = vmatpush1.bf16.msra.mxu0 %v5231_v19  ;;  %vm136_vm3 = vmand %vm131_vm13, %vm135_vm15  ;;  %vm5311_vm4 = vcmp.eq.s32.totalorder %v5213_v11, %v156_v43  ;;  %v178_v45 = vstv %s5264_s27  ;;  %v129_v46 = vadd.f32 %v127_v38, %v118_v37  ;;  %vm187_vm9 = vcmp.eq.s32.totalorder %v5277_v33, 9  ;;  %v4590_v43 = vld [vmem:[#allocation7 + $0x2c] ss:$16 sps:$4 sm:$0xff]   ;;  %v4588_v44 = vld [vmem:[#allocation7 + $0x28] ss:$16 sps:$4 sm:$0xff]   ;;  %s5089_s15 = smov 124  }
  0x55   :  { %673 = vmatprep.subr.bf16.mxu0 %v5236_v22  ;;  %vm5320_vm7 = vcmp.eq.s32.totalorder %v5213_v11, %v178_v45  ;;  %v189_v48 = vstv %s5266_s28  ;;  %v200_v49 = vstv %s5272_s29  ;;  %v138_v51 = vsel %vm136_vm3, 1.0, %v7227_v27  ;;  %vm5333_vm8 = vmand %vm142_vm14, %vm5302_vm0  ;;  %v4596_v45 = vld [vmem:[#allocation7 + $0x4c] ss:$16 sps:$4 sm:$0xff]   ;;  %v4594_v47 = vld [vmem:[#allocation7 + $0x48] ss:$16 sps:$4 sm:$0xff]   ;;  %s5090_s16 = smov 126  }
  0x56   :  { %394 = vmatpush1.bf16.msra.mxu1 %v376_v26  ;;  %vm5339_vm10 = vcmp.eq.s32.totalorder %v5213_v11, %v189_v48  ;;  %vm198_vm11 = vcmp.eq.s32.totalorder %v5277_v33, 10  ;;  %vm5351_vm12 = vmand %vm153_vm1, %vm5311_vm4  ;;  %vm5356_vm13 = vcmp.eq.s32.totalorder %v5213_v11, %v200_v49  ;;  %v211_v57 = vstv %s5274_s26  ;;  %v5444_v52 = vld [vmem:[#allocation8 + $0xc] ss:$16 sps:$4 sm:$0xff]   ;;  %v5448_v53 = vld [vmem:[#allocation8 + $0x8] ss:$16 sps:$4 sm:$0xff]   ;;  %s5091_s17 = smov 122  }
  0x57   :  { %430 = vmatprep.subr.bf16.mxu1 %v4584_v24  ;;  %v222_v58 = vstv %s5281_s30  ;;  %v233_v59 = vstv %s5283_s8  ;;  %v167_v60 = vstv %s5256_s25  ;;  %vm181_vm14 = vmand %vm176_vm6, %vm5320_vm7  ;;  %vm209_vm15 = vcmp.eq.s32.totalorder %v5277_v33, 11  ;;  %v5451_v55 = vld [vmem:[#allocation8 + $0x2c] ss:$16 sps:$4 sm:$0xff]   ;;  %v5457_v56 = vld [vmem:[#allocation8 + $0x28] ss:$16 sps:$4 sm:$0xff]   ;;  %s5092_s1 = smov 123  }
  0x58   :  { %674 = vmatpush1.bf16.msra.mxu0 %v5238_v23  ;;  %vm5370_vm0 = vcmp.eq.s32.totalorder %v5213_v11, %v211_v57  ;;  %vm220_vm1 = vcmp.eq.s32.totalorder %v5277_v33, 12  ;;  %v140_v62 = vadd.f32 %v138_v51, %v129_v46  ;;  %v183_v63 = vsel %vm181_vm14, 1.0, %v7227_v27  ;;  %vm192_vm3 = vmand %vm187_vm9, %vm5339_vm10  ;;  %v277_v46 = vld [vmem:[#allocation7 + $0x68] sm:$0x11]  ;;  %s5093_s0 = smov 120   ;;  %s5094_s18 = smov 121  }
  0x59   :  { %675 = vmatprep.subr.bf16.mxu0 %v5259_v30  ;;  %vm5381_vm4 = vcmp.eq.s32.totalorder %v5213_v11, %v222_v58  ;;  %v244_v6 = vstv %s5292_s9  ;;  %v149_v9 = vsel %vm5333_vm8, 1.0, %v7227_v27  ;;  %v194_v10 = vsel %vm192_vm3, 1.0, %v7227_v27  ;;  %vm203_vm6 = vmand %vm198_vm11, %vm5356_vm13  ;;  %v5461_v57 = vld [vmem:[#allocation8 + $0x4c] ss:$16 sps:$4 sm:$0xff]   ;;  %v5466_v58 = vld [vmem:[#allocation8 + $0x48] ss:$16 sps:$4 sm:$0xff]  }
  0x5a   :  { %vm231_vm7 = vcmp.eq.s32.totalorder %v5277_v33, 13  ;;  %vm234_vm9 = vcmp.eq.s32.totalorder %v5213_v11, %v233_v59  ;;  %vm168_vm10 = vcmp.eq.s32.totalorder %v5213_v11, %v167_v60  ;;  %v196_v15 = vadd.f32 %v194_v10, %v183_v63  ;;  %vm214_vm8 = vmand %vm209_vm15, %vm5370_vm0  ;;  %v5469_v59 = vld [vmem:[#allocation8 + $0x6c] ss:$16 sps:$4 sm:$0xff]   ;;  %v5472_v60 = vld [vmem:[#allocation8 + $0x68] ss:$16 sps:$4 sm:$0xff]   ;;  %s5095_s19 = smov 36  }
  0x5b   :  { %v205_v16 = vsel %vm203_vm6, 1.0, %v7227_v27  ;;  %v255_v17 = vstv %s5308_s10  ;;  %v216_v18 = vsel %vm214_vm8, 1.0, %v7227_v27  ;;  %vm225_vm11 = vmand %vm220_vm1, %vm5381_vm4  ;;  %vm242_vm13 = vcmp.eq.s32.totalorder %v5277_v33, 14  ;;  %v5475_v61 = vld [vmem:[#allocation8 + $0x8c] ss:$16 sps:$4 sm:$0xff]   ;;  %s5096_s26 = smov 92  }
  0x5c   :  { %676 = vmatpush1.bf16.msra.mxu0 %v5286_v36  ;;  %vm245_vm14 = vcmp.eq.s32.totalorder %v5213_v11, %v244_v6  ;;  %v151_v20 = vadd.f32 %v149_v9, %v140_v62  ;;  %v207_v21 = vadd.f32 %v205_v16, %v196_v15  ;;  %vm236_vm3 = vmand %vm231_vm7, %vm234_vm9  ;;  %v160_v24 = vsel %vm5351_vm12, 1.0, %v7227_v27  ;;  %v5478_v62 = vld [vmem:[#allocation8 + $0x88] ss:$16 sps:$4 sm:$0xff]   ;;  %v5481_v63 = vld [vmem:[#allocation8 + $0xac] ss:$16 sps:$4 sm:$0xff]   ;;  %s5097_s30 = smov 108  }
  0x5d   :  { %677 = vmatprep.subr.bf16.mxu0 %v5298_v41  ;;  %vm169_vm15 = vmand %vm164_vm5, %vm168_vm10  ;;  %v227_v25 = vsel %vm225_vm11, 1.0, %v7227_v27  ;;  %vm253_vm0 = vcmp.eq.s32.totalorder %v5277_v33, 15  ;;  %vm256_vm1 = vcmp.eq.s32.totalorder %v5213_v11, %v255_v17  ;;  %v238_v28 = vsel %vm236_vm3, 1.0, %v7227_v27  ;;  %v5484_v5 = vld [vmem:[#allocation8 + $0xa8] ss:$16 sps:$4 sm:$0xff]   ;;  %s5099_s8 = smov 72  }
  0x5e   :  { %v218_v26 = vadd.f32 %v216_v18, %v207_v21  ;;  %vm247_vm4 = vmand %vm242_vm13, %vm245_vm14  ;;  %v162_v29 = vadd.f32 %v160_v24, %v151_v20  ;;  %v171_v32 = vsel %vm169_vm15, 1.0, %v7227_v27  ;;  %vm370_vm5 = vcmask 408576   ;;  %v5487_v6 = vld [vmem:[#allocation8 + $0xcc] ss:$16 sps:$4 sm:$0xff]   ;;  %v5490_v9 = vld [vmem:[#allocation8 + $0xc8] ss:$16 sps:$4 sm:$0xff]  }
  0x5f   :  { %vm258_vm12 = vmand %vm253_vm0, %vm256_vm1  ;;  %v249_v33 = vsel %vm247_vm4, 1.0, %v7227_v27  ;;  %v4419_v48 = vcombine.high %v277_v46, %v277_v46  ;;  %v4418_v49 = vcombine.low %v277_v46, %v277_v46  ;;  %v5493_v10 = vld [vmem:[#allocation8 + $0xec] ss:$16 sps:$4 sm:$0xff]   ;;  %v5496_v15 = vld [vmem:[#allocation8 + $0xe8] ss:$16 sps:$4 sm:$0xff]   ;;  %v5520_v21 = vsub.s32 0, %v5220_v14 }
  0x60   :  { %678 = vmatpush1.bf16.msra.mxu0 %v5326_v50  ;;  %v229_v31 = vadd.f32 %v227_v25, %v218_v26  ;;  %v260_v35 = vsel %vm258_vm12, 1.0, %v7227_v27  ;;  %v173_v37 = vadd.f32 %v171_v32, %v162_v29  ;;  %v278_v24 = vld [vmem:[%s7222_s3] sm:$0xf]  ;;  %v5526_v25 = vsub.s32 1, %v5220_v14  ;;  %s5087_s3 = smov 125   ;;  %s5100_s9 = smov 88  }
  0x61   :  { %679 = vmatprep.subr.bf16.mxu0 %v5345_v54  ;;  %v382_v51 = vsel %vm374_vm2, %v4418_v49, 0  ;;  %vm1682_vm6 = vcmask 1041408   ;;  %vm1686_vm7 = vcmask 1043456   ;;  %vm1688_vm9 = vcmask 1044480  }
  0x62   :  { %v240_v34 = vadd.f32 %v238_v28, %v229_v31  ;;  %v283_v28 = vrot.slane %v278_v24, %v5520_v21  ;;  %v287_v31 = vrot.slane %v278_v24, %v5526_v25  ;;  %vm1690_vm10 = vcmask 1045504  }
  0x63   :  { %vm1692_vm8 = vcmask 1046528   ;;  %vm1837_vm11 = vcmask 588800   ;;  %vm1784_vm13 = vcmask 293888   ;;  %vm2119_vm14 = vcmask 261120  }
  0x64   :  { %680 = vmatpush1.bf16.msra.mxu0 %v5387_v7  ;;  %v251_v38 = vadd.f32 %v249_v33, %v240_v34  ;;  %vm1927_vm3 = vcmask 883712   ;;  %vm1929_vm15 = vcmask 130048   ;;  %vm1931_vm0 = vcmask 424960  }
  0x65   :  { %776 = vmatprep.subr.bf16.mxu0 %v5194_v0  ;;  %vm1933_vm1 = vcmask 719872   ;;  %vm1935_vm4 = vcmask 1014784   ;;  %vm1986_vm12 = vcmask 257024  }
  0x66   :  { %v262_v39 = vadd.f32 %v260_v35, %v251_v38  ;;  %v5538_v38 = vsub.s32 3, %v5220_v14 }
  0x67   :  { %698 = vmatmul.mubr.bf16.vlgmr.msra.gmra.mrb[0].mxu0 %v7228_v2 }
  0x68   :  { %777 = vmatpush1.bf16.msra.mxu0 %v5196_v1  ;;  %808 = vmatprep.mubr.bf16.mxu0 %v7228_v2  ;;  %v263_v42 = vpack.c.bf16 %v262_v39, %v173_v37  ;;  %v5535_v37 = vsub.s32 2, %v5220_v14  ;;  %7288 = vst [vmem:[#allocation18_spill] sm:$0xff] %v5538_v38 }
  0x69   :  { %778 = vmatprep.subr.bf16.mxu0 %v5203_v3 }
  0x6a   :  { %4421 = vmatmul.mubr.msk.bf16.vlgmr.msra.gmra.mrb[0].mxu1 %vm370_vm5, %v263_v42  ;;  %v291_v39 = vrot.slane %v278_v24, %v5535_v37 }
  0x6b   :  { %431 = vmatpush1.bf16.msra.mxu1 %v4582_v40  ;;  %462 = vmatprep.mubr.bf16.mxu1 %v7228_v2 }
  0x6c   :  { %779 = vmatpush1.bf16.msra.mxu0 %v5205_v4  ;;  %432 = vmatprep.subr.bf16.mxu1 %v4590_v43  ;;  %v295_v43 = vrot.slane %v278_v24, %v5538_v38 }
  0x6d   :  { %780 = vmatprep.subr.bf16.mxu0 %v5211_v8 }
  0x6f   :  { %433 = vmatpush1.bf16.msra.mxu1 %v4588_v44 }
  0x70   :  { %781 = vmatpush1.bf16.msra.mxu0 %v5216_v12  ;;  %434 = vmatprep.subr.bf16.mxu1 %v4596_v45 }
  0x71   :  { %782 = vmatprep.subr.bf16.mxu0 %v5218_v13 }
  0x73   :  { %435 = vmatpush1.bf16.msra.mxu1 %v4594_v47 }
  0x74   :  { %783 = vmatpush1.bf16.msra.mxu0 %v5231_v19  ;;  %4422 = vmatprep.subr.msk.bf16.mxu1 %vm374_vm2, %v4419_v48 }
  0x75   :  { %784 = vmatprep.subr.bf16.mxu0 %v5236_v22 }
  0x77   :  { %437 = vmatpush1.bf16.msra.mxu1 %v382_v51 }
  0x78   :  { %785 = vmatpush1.bf16.msra.mxu0 %v5238_v23  ;;  %706 = vmatprep.subr.bf16.mxu1 %v5444_v52 }
  0x79   :  { %786 = vmatprep.subr.bf16.mxu0 %v5259_v30 }
  0x7a   :  { %4423 = vmatmul.mubr.msk.bf16.vlgmr.msra.gmra.mrb[4].mxu1 %vm370_vm5, %v263_v42  ;;  %vm2683_vm5 = vcmask 1041409  }
  0x7b   :  { %707 = vmatpush1.bf16.msra.mxu1 %v5448_v53  ;;  %738 = vmatprep.mubr.bf16.mxu1 %v7228_v2 }
  0x7c   :  { %787 = vmatpush1.bf16.msra.mxu0 %v5286_v36  ;;  %708 = vmatprep.subr.bf16.mxu1 %v5451_v55 }
  0x7d   :  { %788 = vmatprep.subr.bf16.mxu0 %v5298_v41 }
  0x7f   :  { %709 = vmatpush1.bf16.msra.mxu1 %v5457_v56 }
  0x80   :  { %789 = vmatpush1.bf16.msra.mxu0 %v5326_v50  ;;  %710 = vmatprep.subr.bf16.mxu1 %v5461_v57 }
  0x81   :  { %790 = vmatprep.subr.bf16.mxu0 %v5345_v54 }
  0x83   :  { %711 = vmatpush1.bf16.msra.mxu1 %v5466_v58 }
  0x84   :  { %791 = vmatpush1.bf16.msra.mxu0 %v5387_v7  ;;  %712 = vmatprep.subr.bf16.mxu1 %v5469_v59 }
  0x85   :  { %905 = vmatprep.subr.bf16.mxu0 %v5194_v0 }
  0x87   :  { %713 = vmatpush1.bf16.msra.mxu1 %v5472_v60 }
  0x88   :  { %714 = vmatprep.subr.bf16.mxu1 %v5475_v61 }
  0x8b   :  { %715 = vmatpush1.bf16.msra.mxu1 %v5478_v62 }
  0x8c   :  { %716 = vmatprep.subr.bf16.mxu1 %v5481_v63 }
  0x8f   :  { %717 = vmatpush1.bf16.msra.mxu1 %v5484_v5 }
  0x90   :  { %718 = vmatprep.subr.bf16.mxu1 %v5487_v6 }
  0x93   :  { %719 = vmatpush1.bf16.msra.mxu1 %v5490_v9 }
  0x94   :  { %720 = vmatprep.subr.bf16.mxu1 %v5493_v10 }
  0x97   :  { %721 = vmatpush1.bf16.msra.mxu1 %v5496_v15 }
  0x98   :  { %817 = vmatprep.subr.bf16.mxu1 %v5444_v52 }
  0x9a   :  { %739 = vmatmul.mubr.bf16.vlgmr.msra.gmra.mrb[8].mxu1 %v7228_v2 }
  0x9b   :  { %818 = vmatpush1.bf16.msra.mxu1 %v5448_v53  ;;  %849 = vmatprep.mubr.bf16.mxu1 %v7228_v2 }
  0x9c   :  { %819 = vmatprep.subr.bf16.mxu1 %v5451_v55 }
  0x9f   :  { %820 = vmatpush1.bf16.msra.mxu1 %v5457_v56 }
  0xa0   :  { %821 = vmatprep.subr.bf16.mxu1 %v5461_v57 }
  0xa3   :  { %822 = vmatpush1.bf16.msra.mxu1 %v5466_v58 }
  0xa4   :  { %823 = vmatprep.subr.bf16.mxu1 %v5469_v59 }
  0xa7   :  { %824 = vmatpush1.bf16.msra.mxu1 %v5472_v60 }
  0xa8   :  { %825 = vmatprep.subr.bf16.mxu1 %v5475_v61 }
  0xab   :  { %826 = vmatpush1.bf16.msra.mxu1 %v5478_v62 }
  0xac   :  { %827 = vmatprep.subr.bf16.mxu1 %v5481_v63 }
  0xaf   :  { %828 = vmatpush1.bf16.msra.mxu1 %v5484_v5 }
  0xb0   :  { %829 = vmatprep.subr.bf16.mxu1 %v5487_v6 }
  0xb3   :  { %830 = vmatpush1.bf16.msra.mxu1 %v5490_v9 }
  0xb4   :  { %831 = vmatprep.subr.bf16.mxu1 %v5493_v10 }
  0xb7   :  { %832 = vmatpush1.bf16.msra.mxu1 %v5496_v15 }
  0xb8   :  { %946 = vmatprep.subr.bf16.mxu1 %v5444_v52 }
 0x13a   :  { %v699_v16 = vpop.f32.mrb[0].mxu0 }
 0x13b   :  { %v701_v17 = vpop.f32.mrb[1].mxu0 }
 0x13c   :  { %v703_v18 = vpop.f32.mrb[2].mxu0 }
 0x13d   :  { %v704_v20 = vpop.f32.mrb[3].mxu0  ;;  %v421_v26 = vpop.f32.mrb[0].mxu1 }
 0x13e   :  { %v423_v29 = vpop.f32.mrb[1].mxu1  ;;  %v5548_v49 = vadd.f32 %v421_v26, %v283_v28 }
 0x13f   :  { %v425_v32 = vpop.f32.mrb[2].mxu1  ;;  %v5546_v48 = vadd.f32 %v423_v29, %v287_v31 }
 0x140   :  { %v5530_v33 = vadd.f32 %v425_v32, %v283_v28  ;;  %v427_v34 = vpop.f32.mrb[3].mxu1  ;;  %v747_v18 = vadd.f32 %v699_v16, %v5548_v49 }
 0x141   :  { %v5532_v35 = vadd.f32 %v427_v34, %v287_v31  ;;  %v748_v51 = vadd.f32 %v701_v17, %v5546_v48 }
 0x142   :  { %v4456_v32 = vmul.f32 -1.442695, %v747_v18 }
 0x143   :  { %v4457_v20 = vmul.f32 -1.442695, %v748_v51 }
 0x145   :  { %4625 = vpow2.f32 %v4457_v20 }
 0x146   :  { %4627 = vpow2.f32 %v4456_v32 }
 0x14d   :  { %v464_v40 = vpop.f32.mrb[4].mxu1 }
 0x14e   :  { %v466_v42 = vpop.f32.mrb[5].mxu1  ;;  %v5552_v2 = vadd.f32 %v464_v40, %v291_v39 }
 0x14f   :  { %v468_v44 = vpop.f32.mrb[6].mxu1  ;;  %v4626_v34 = vpop.eup %4625 }
 0x150   :  { %v5542_v45 = vadd.f32 %v468_v44, %v291_v39  ;;  %v470_v46 = vpop.f32.mrb[7].mxu1  ;;  %v4628_v24 = vpop.eup %4627  ;;  %v760_v27 = vadd.f32 1.0, %v4626_v34 }
 0x151   :  { %v5544_v47 = vadd.f32 %v470_v46, %v295_v43  ;;  %v754_v44 = vadd.f32 1.0, %v4628_v24  ;;  %v5554_v46 = vadd.f32 %v466_v42, %v295_v43 }
 0x152   :  { %4629 = vrcp.f32 %v760_v27 }
 0x153   :  { %4631 = vrcp.f32 %v754_v44 }
 0x15c   :  { %v4630_v18 = vpop.eup %4629 }
 0x15d   :  { %v4632_v20 = vpop.eup %4631  ;;  %v770_v39 = vmul.f32 0.0, %v4630_v18 }
 0x16d   :  { %v740_v29 = vpop.f32.mrb[8].mxu1 }
 0x16e   :  { %v749_v26 = vadd.f32 %v740_v29, %v5552_v2  ;;  %v742_v28 = vpop.f32.mrb[9].mxu1 }
 0x16f   :  { %v750_v16 = vadd.f32 %v742_v28, %v5554_v46  ;;  %v744_v17 = vpop.f32.mrb[10].mxu1 }
 0x170   :  { %4633 = vtanh.f32 %v749_v26  ;;  %v745_v31 = vpop.f32.mrb[11].mxu1  ;;  %v7289_v26 = vmov 0  }
 0x171   :  { %v4458_v51 = vmul.f32 -1.442695, %v750_v16 }
 0x173   :  { %4635 = vpow2.f32 %v4458_v51 }
 0x17a   :  { %v4634_v32 = vpop.eup %4633 }
 0x17b   :  { %v771_v40 = vmul.f32 %v4634_v32, %v4632_v20 }
 0x17d   :  { %v4636_v42 = vpop.eup %4635  ;;  %v5558_v43 = vadd.f32 %v771_v40, %v770_v39 }
 0x17e   :  { %v767_v27 = vadd.f32 1.0, %v4636_v42 }
 0x17f   :  { %4637 = vtanh.f32 %v5558_v43 }
 0x180   :  { %4639 = vrcp.f32 %v767_v27 }
 0x189   :  { %v4638_v34 = vpop.eup %4637 }
 0x18a   :  { %v4640_v24 = vpop.eup %4639 }
 0x18b   :  { %v5561_v44 = vmul.f32 %v4640_v24, %v4638_v34 }
 0x18d   :  { %v775_v29 = vpack.c.bf16 %v5561_v44, %v5561_v44 }
 0x18f   :  { %809 = vmatmul.mubr.bf16.vlgmr.msra.gmra.mrb[4].mxu0 %v775_v29  ;;  %850 = vmatmul.mubr.bf16.vlgmr.msra.gmra.mrb[12].mxu1 %v775_v29 }
 0x190   :  { %906 = vmatpush1.bf16.msra.mxu0 %v5196_v1  ;;  %947 = vmatpush1.bf16.msra.mxu1 %v5448_v53 }
 0x191   :  { %907 = vmatprep.subr.bf16.mxu0 %v5203_v3  ;;  %948 = vmatprep.subr.bf16.mxu1 %v5451_v55 }
 0x192   :  { %937 = vmatprep.mubr.bf16.mxu0 %v7289_v26  ;;  %978 = vmatprep.mubr.bf16.mxu1 %v7289_v26 }
 0x194   :  { %908 = vmatpush1.bf16.msra.mxu0 %v5205_v4  ;;  %949 = vmatpush1.bf16.msra.mxu1 %v5457_v56 }
 0x195   :  { %909 = vmatprep.subr.bf16.mxu0 %v5211_v8  ;;  %950 = vmatprep.subr.bf16.mxu1 %v5461_v57 }
 0x198   :  { %910 = vmatpush1.bf16.msra.mxu0 %v5216_v12  ;;  %951 = vmatpush1.bf16.msra.mxu1 %v5466_v58 }
 0x199   :  { %911 = vmatprep.subr.bf16.mxu0 %v5218_v13  ;;  %952 = vmatprep.subr.bf16.mxu1 %v5469_v59 }
 0x19c   :  { %912 = vmatpush1.bf16.msra.mxu0 %v5231_v19  ;;  %953 = vmatpush1.bf16.msra.mxu1 %v5472_v60 }
 0x19d   :  { %913 = vmatprep.subr.bf16.mxu0 %v5236_v22  ;;  %954 = vmatprep.subr.bf16.mxu1 %v5475_v61 }
 0x1a0   :  { %914 = vmatpush1.bf16.msra.mxu0 %v5238_v23  ;;  %955 = vmatpush1.bf16.msra.mxu1 %v5478_v62 }
 0x1a1   :  { %915 = vmatprep.subr.bf16.mxu0 %v5259_v30  ;;  %956 = vmatprep.subr.bf16.mxu1 %v5481_v63 }
 0x1a4   :  { %916 = vmatpush1.bf16.msra.mxu0 %v5286_v36  ;;  %957 = vmatpush1.bf16.msra.mxu1 %v5484_v5 }
 0x1a5   :  { %917 = vmatprep.subr.bf16.mxu0 %v5298_v41  ;;  %958 = vmatprep.subr.bf16.mxu1 %v5487_v6 }
 0x1a8   :  { %918 = vmatpush1.bf16.msra.mxu0 %v5326_v50  ;;  %959 = vmatpush1.bf16.msra.mxu1 %v5490_v9 }
 0x1a9   :  { %919 = vmatprep.subr.bf16.mxu0 %v5345_v54  ;;  %960 = vmatprep.subr.bf16.mxu1 %v5493_v10 }
 0x1ac   :  { %920 = vmatpush1.bf16.msra.mxu0 %v5387_v7  ;;  %961 = vmatpush1.bf16.msra.mxu1 %v5496_v15 }
 0x1ad   :  { %1034 = vmatprep.subr.bf16.mxu0 %v5194_v0  ;;  %1075 = vmatprep.subr.bf16.mxu1 %v5444_v52 }
 0x262   :  { %v810_v28 = vpop.f32.mrb[4].mxu0  ;;  %v851_v16 = vpop.f32.mrb[12].mxu1 }
 0x263   :  { %v862_v17 = vrot.slane %v810_v28, 6  ;;  %v812_v31 = vpop.f32.mrb[5].mxu0  ;;  %v853_v51 = vpop.f32.mrb[13].mxu1  ;;  %v864_v14 = vrot.slane %v851_v16, 6 }
 0x264   :  { %v863_v18 = vrot.slane %v812_v31, 6  ;;  %v814_v20 = vpop.f32.mrb[6].mxu0  ;;  %v855_v32 = vpop.f32.mrb[14].mxu1  ;;  %v865_v29 = vrot.slane %v853_v51, 6  ;;  %v894_v51 = vrot.slane %v5558_v43, 6 }
 0x265   :  { %v870_v39 = vadd.f32 %v862_v17, %v5548_v49  ;;  %v815_v40 = vpop.f32.mrb[7].mxu0  ;;  %v856_v42 = vpop.f32.mrb[15].mxu1  ;;  %v872_v38 = vadd.f32 %v864_v14, %v5552_v2 }
 0x266   :  { %v871_v27 = vadd.f32 %v863_v18, %v5546_v48  ;;  %v873_v11 = vadd.f32 %v865_v29, %v5554_v46 }
 0x267   :  { %v4459_v34 = vmul.f32 -1.442695, %v870_v39 }
 0x268   :  { %v4460_v24 = vmul.f32 -1.442695, %v871_v27  ;;  %v4461_v28 = vmul.f32 -1.442695, %v873_v11 }
 0x269   :  { %4641 = vpow2.f32 %v4459_v34 }
 0x26a   :  { %4643 = vpow2.f32 %v4460_v24 }
 0x26b   :  { %4645 = vpow2.f32 %v4461_v28 }
 0x26c   :  { %4647 = vtanh.f32 %v872_v38 }
 0x273   :  { %v4642_v31 = vpop.eup %4641 }
 0x274   :  { %v4644_v20 = vpop.eup %4643  ;;  %v877_v32 = vadd.f32 1.0, %v4642_v31 }
 0x275   :  { %v883_v17 = vadd.f32 1.0, %v4644_v20  ;;  %v4646_v18 = vpop.eup %4645 }
 0x276   :  { %4649 = vrcp.f32 %v877_v32  ;;  %v4648_v39 = vpop.eup %4647  ;;  %v890_v34 = vadd.f32 1.0, %v4646_v18 }
 0x277   :  { %4651 = vrcp.f32 %v883_v17 }
 0x278   :  { %4653 = vrcp.f32 %v890_v34 }
 0x280   :  { %v4650_v40 = vpop.eup %4649 }
 0x281   :  { %v4652_v42 = vpop.eup %4651  ;;  %v897_v27 = vmul.f32 %v4650_v40, %v4648_v39 }
 0x282   :  { %v896_v16 = vmul.f32 %v4652_v42, %v894_v51  ;;  %v4654_v14 = vpop.eup %4653 }
 0x284   :  { %v5604_v11 = vadd.f32 %v897_v27, %v896_v16 }
 0x286   :  { %4655 = vtanh.f32 %v5604_v11 }
 0x290   :  { %v4656_v24 = vpop.eup %4655 }
 0x291   :  { %v5607_v38 = vmul.f32 %v4656_v24, %v4654_v14 }
 0x293   :  { %v901_v29 = vpack.c.bf16 %v5607_v38, %v5607_v38 }
 0x295   :  { %v903_v28 = vrot.slane %v901_v29, 1 }
 0x297   :  { %938 = vmatmul.mubr.bf16.vlgmr.msra.gmra.mrb[8].mxu0 %v903_v28  ;;  %979 = vmatmul.mubr.bf16.vlgmr.msra.gmra.mrb[16].mxu1 %v903_v28 }
 0x298   :  { %1035 = vmatpush1.bf16.msra.mxu0 %v5196_v1  ;;  %1076 = vmatpush1.bf16.msra.mxu1 %v5448_v53 }
 0x299   :  { %1036 = vmatprep.subr.bf16.mxu0 %v5203_v3  ;;  %1077 = vmatprep.subr.bf16.mxu1 %v5451_v55 }
 0x29a   :  { %1066 = vmatprep.mubr.bf16.mxu0 %v7289_v26  ;;  %1107 = vmatprep.mubr.bf16.mxu1 %v7289_v26 }
 0x29c   :  { %1037 = vmatpush1.bf16.msra.mxu0 %v5205_v4  ;;  %1078 = vmatpush1.bf16.msra.mxu1 %v5457_v56 }
 0x29d   :  { %1038 = vmatprep.subr.bf16.mxu0 %v5211_v8  ;;  %1079 = vmatprep.subr.bf16.mxu1 %v5461_v57 }
 0x2a0   :  { %1039 = vmatpush1.bf16.msra.mxu0 %v5216_v12  ;;  %1080 = vmatpush1.bf16.msra.mxu1 %v5466_v58 }
 0x2a1   :  { %1040 = vmatprep.subr.bf16.mxu0 %v5218_v13  ;;  %1081 = vmatprep.subr.bf16.mxu1 %v5469_v59 }
 0x2a4   :  { %1041 = vmatpush1.bf16.msra.mxu0 %v5231_v19  ;;  %1082 = vmatpush1.bf16.msra.mxu1 %v5472_v60 }
 0x2a5   :  { %1042 = vmatprep.subr.bf16.mxu0 %v5236_v22  ;;  %1083 = vmatprep.subr.bf16.mxu1 %v5475_v61 }
 0x2a8   :  { %1043 = vmatpush1.bf16.msra.mxu0 %v5238_v23  ;;  %1084 = vmatpush1.bf16.msra.mxu1 %v5478_v62 }
 0x2a9   :  { %1044 = vmatprep.subr.bf16.mxu0 %v5259_v30  ;;  %1085 = vmatprep.subr.bf16.mxu1 %v5481_v63 }
 0x2ac   :  { %1045 = vmatpush1.bf16.msra.mxu0 %v5286_v36  ;;  %1086 = vmatpush1.bf16.msra.mxu1 %v5484_v5 }
 0x2ad   :  { %1046 = vmatprep.subr.bf16.mxu0 %v5298_v41  ;;  %1087 = vmatprep.subr.bf16.mxu1 %v5487_v6 }
 0x2b0   :  { %1047 = vmatpush1.bf16.msra.mxu0 %v5326_v50  ;;  %1088 = vmatpush1.bf16.msra.mxu1 %v5490_v9 }
 0x2b1   :  { %1048 = vmatprep.subr.bf16.mxu0 %v5345_v54  ;;  %1089 = vmatprep.subr.bf16.mxu1 %v5493_v10 }
 0x2b4   :  { %1049 = vmatpush1.bf16.msra.mxu0 %v5387_v7  ;;  %1090 = vmatpush1.bf16.msra.mxu1 %v5496_v15 }
 0x2b5   :  { %1163 = vmatprep.subr.bf16.mxu0 %v5194_v0  ;;  %1204 = vmatprep.subr.bf16.mxu1 %v5444_v52 }
 0x36a   :  { %v939_v1 = vpop.f32.mrb[8].mxu0  ;;  %v980_v3 = vpop.f32.mrb[16].mxu1 }
 0x36b   :  { %v991_v4 = vrot.slane %v939_v1, 4  ;;  %v941_v8 = vpop.f32.mrb[9].mxu0  ;;  %v982_v12 = vpop.f32.mrb[17].mxu1  ;;  %v993_v42 = vrot.slane %v980_v3, 4 }
 0x36c   :  { %v992_v13 = vrot.slane %v941_v8, 4  ;;  %v943_v43 = vpop.f32.mrb[10].mxu0  ;;  %v984_v31 = vpop.f32.mrb[18].mxu1  ;;  %v994_v51 = vrot.slane %v982_v12, 4  ;;  %v1023_v8 = vrot.slane %v5604_v11, 6 }
 0x36d   :  { %v999_v20 = vadd.f32 %v991_v4, %v5548_v49  ;;  %v944_v32 = vpop.f32.mrb[11].mxu0  ;;  %v985_v17 = vpop.f32.mrb[19].mxu1  ;;  %v1001_v34 = vadd.f32 %v993_v42, %v5552_v2 }
 0x36e   :  { %v1000_v18 = vadd.f32 %v992_v13, %v5546_v48  ;;  %v1002_v0 = vadd.f32 %v994_v51, %v5554_v46  ;;  %v1661_v17 = vrot.slane %v5607_v38, 1 }
 0x36f   :  { %v4462_v39 = vmul.f32 -1.442695, %v999_v20 }
 0x370   :  { %v4463_v40 = vmul.f32 -1.442695, %v1000_v18  ;;  %v4464_v27 = vmul.f32 -1.442695, %v1002_v0  ;;  %v1713_v18 = vrot.slane %v5607_v38, 2  ;;  %v1681_v42 = vsel %vm374_vm2, %v5561_v44, %v1661_v17 }
 0x371   :  { %4657 = vpow2.f32 %v4462_v39  ;;  %v5663_v38 = vld [vmem:[#allocation8] ss:$16 sps:$4 sm:$0xff]  }
 0x372   :  { %4659 = vpow2.f32 %v4463_v40  ;;  %v1711_v40 = vrot.slane %v5561_v44, 1  ;;  %v5673_v44 = vld [vmem:[#allocation8 + $0x20] ss:$16 sps:$4 sm:$0xff]  }
 0x373   :  { %4661 = vpow2.f32 %v4464_v27 }
 0x374   :  { %4663 = vtanh.f32 %v1001_v34  ;;  %v1725_v27 = vsel %vm374_vm2, %v1711_v40, %v1713_v18  ;;  %vm1684_vm2 = vcmask 1042432  }
 0x37b   :  { %v4658_v16 = vpop.eup %4657 }
 0x37c   :  { %v4660_v14 = vpop.eup %4659  ;;  %v1006_v24 = vadd.f32 1.0, %v4658_v16 }
 0x37d   :  { %v1012_v29 = vadd.f32 1.0, %v4660_v14  ;;  %v4662_v28 = vpop.eup %4661 }
 0x37e   :  { %4665 = vrcp.f32 %v1006_v24  ;;  %v4664_v1 = vpop.eup %4663  ;;  %v1019_v43 = vadd.f32 1.0, %v4662_v28  ;;  %v5667_v24 = vld [vmem:[#allocation8 + $0x24] ss:$16 sps:$4 sm:$0xff]   ;;  %v5681_v28 = vld [vmem:[#allocation8 + $0x40] ss:$16 sps:$4 sm:$0xff]  }
 0x37f   :  { %4667 = vrcp.f32 %v1012_v29  ;;  %v5677_v29 = vld [vmem:[#allocation8 + $0x44] ss:$16 sps:$4 sm:$0xff]  }
 0x380   :  { %4669 = vrcp.f32 %v1019_v43 }
 0x388   :  { %v4666_v4 = vpop.eup %4665 }
 0x389   :  { %v4668_v12 = vpop.eup %4667  ;;  %v1026_v13 = vmul.f32 %v4666_v4, %v4664_v1  ;;  %v5685_v1 = vld [vmem:[#allocation8 + $0x64] ss:$16 sps:$4 sm:$0xff]  }
 0x38a   :  { %v1025_v3 = vmul.f32 %v4668_v12, %v1023_v8  ;;  %v4670_v20 = vpop.eup %4669 }
 0x38c   :  { %v5650_v31 = vadd.f32 %v1026_v13, %v1025_v3 }
 0x38e   :  { %4671 = vtanh.f32 %v5650_v31 }
 0x398   :  { %v4672_v32 = vpop.eup %4671 }
 0x399   :  { %v1029_v39 = vmul.f32 %v4672_v32, %v4670_v20 }
 0x39b   :  { %v1030_v11 = vpack.c.bf16 %v1029_v39, %v1029_v39  ;;  %v1664_v51 = vrot.slane %v1029_v39, 2  ;;  %v1715_v0 = vrot.slane %v1029_v39, 3 }
 0x39d   :  { %v1032_v34 = vrot.slane %v1030_v11, 2  ;;  %v5659_v16 = vsel %vm1682_vm6, %v1681_v42, %v1664_v51  ;;  %v5661_v14 = vsel %vm1682_vm6, %v1725_v27, %v1715_v0  ;;  %vm2685_vm6 = vcmask 1042434  }
 0x39f   :  { %1067 = vmatmul.mubr.bf16.vlgmr.msra.gmra.mrb[12].mxu0 %v1032_v34  ;;  %1108 = vmatmul.mubr.bf16.vlgmr.msra.gmra.mrb[20].mxu1 %v1032_v34  ;;  %v1152_v34 = vrot.slane %v5650_v31, 6 }
 0x3a0   :  { %1164 = vmatpush1.bf16.msra.mxu0 %v5663_v38  ;;  %1205 = vmatpush1.bf16.msra.mxu1 %v5448_v53 }
 0x3a1   :  { %1165 = vmatprep.subr.bf16.mxu0 %v5667_v24  ;;  %1206 = vmatprep.subr.bf16.mxu1 %v5451_v55 }
 0x3a2   :  { %1195 = vmatprep.mubr.bf16.mxu0 %v7289_v26  ;;  %1236 = vmatprep.mubr.bf16.mxu1 %v7289_v26 }
 0x3a4   :  { %1166 = vmatpush1.bf16.msra.mxu0 %v5673_v44  ;;  %1207 = vmatpush1.bf16.msra.mxu1 %v5457_v56 }
 0x3a5   :  { %1167 = vmatprep.subr.bf16.mxu0 %v5677_v29  ;;  %1208 = vmatprep.subr.bf16.mxu1 %v5461_v57 }
 0x3a8   :  { %1168 = vmatpush1.bf16.msra.mxu0 %v5681_v28  ;;  %1209 = vmatpush1.bf16.msra.mxu1 %v5466_v58 }
 0x3a9   :  { %1169 = vmatprep.subr.bf16.mxu0 %v5685_v1  ;;  %1210 = vmatprep.subr.bf16.mxu1 %v5469_v59 }
 0x3ac   :  { %1170 = vmatpush1.bf16.msra.mxu0 %v5231_v19  ;;  %1211 = vmatpush1.bf16.msra.mxu1 %v5472_v60  ;;  %v5707_v19 = vld [vmem:[#allocation8 + $0x4] ss:$16 sps:$4 sm:$0xff]  }
 0x3ad   :  { %1171 = vmatprep.subr.bf16.mxu0 %v5236_v22  ;;  %1212 = vmatprep.subr.bf16.mxu1 %v5475_v61 }
 0x3b0   :  { %1172 = vmatpush1.bf16.msra.mxu0 %v5238_v23  ;;  %1213 = vmatpush1.bf16.msra.mxu1 %v5478_v62 }
 0x3b1   :  { %1173 = vmatprep.subr.bf16.mxu0 %v5259_v30  ;;  %1214 = vmatprep.subr.bf16.mxu1 %v5481_v63 }
 0x3b4   :  { %1174 = vmatpush1.bf16.msra.mxu0 %v5286_v36  ;;  %1215 = vmatpush1.bf16.msra.mxu1 %v5484_v5 }
 0x3b5   :  { %1175 = vmatprep.subr.bf16.mxu0 %v5298_v41  ;;  %1216 = vmatprep.subr.bf16.mxu1 %v5487_v6 }
 0x3b8   :  { %1176 = vmatpush1.bf16.msra.mxu0 %v5326_v50  ;;  %1217 = vmatpush1.bf16.msra.mxu1 %v5490_v9 }
 0x3b9   :  { %1177 = vmatprep.subr.bf16.mxu0 %v5345_v54  ;;  %1218 = vmatprep.subr.bf16.mxu1 %v5493_v10 }
 0x3bc   :  { %1178 = vmatpush1.bf16.msra.mxu0 %v5387_v7  ;;  %1219 = vmatpush1.bf16.msra.mxu1 %v5496_v15 }
 0x3bd   :  { %1277 = vmatprep.subr.bf16.mxu0 %v5707_v19  ;;  %1318 = vmatprep.subr.bf16.mxu1 %v5444_v52 }
 0x472   :  { %v1068_v22 = vpop.f32.mrb[12].mxu0  ;;  %v1109_v23 = vpop.f32.mrb[20].mxu1 }
 0x473   :  { %v1120_v30 = vrot.slane %v1068_v22, 2  ;;  %v1070_v36 = vpop.f32.mrb[13].mxu0  ;;  %v1111_v41 = vpop.f32.mrb[21].mxu1  ;;  %v1122_v18 = vrot.slane %v1109_v23, 2 }
 0x474   :  { %v1121_v50 = vrot.slane %v1070_v36, 2  ;;  %v1072_v4 = vpop.f32.mrb[14].mxu0  ;;  %v1113_v54 = vpop.f32.mrb[22].mxu1  ;;  %v1123_v32 = vrot.slane %v1111_v41, 2 }
 0x475   :  { %v1128_v8 = vadd.f32 %v1120_v30, %v5548_v49  ;;  %v1073_v12 = vpop.f32.mrb[15].mxu0  ;;  %v1114_v13 = vpop.f32.mrb[23].mxu1  ;;  %v1130_v40 = vadd.f32 %v1122_v18, %v5552_v2  ;;  %v5767_v18 = vld [vmem:[#allocation8 + $0xe4] ss:$16 sps:$4 sm:$0xff]  }
 0x476   :  { %v1129_v43 = vadd.f32 %v1121_v50, %v5546_v48  ;;  %v1131_v17 = vadd.f32 %v1123_v32, %v5554_v46  ;;  %v5759_v32 = vld [vmem:[#allocation8 + $0xc4] ss:$16 sps:$4 sm:$0xff]  }
 0x477   :  { %v4465_v3 = vmul.f32 -1.442695, %v1128_v8 }
 0x478   :  { %v4466_v20 = vmul.f32 -1.442695, %v1129_v43  ;;  %v4467_v39 = vmul.f32 -1.442695, %v1131_v17  ;;  %v5747_v43 = vld [vmem:[#allocation8 + $0x80] ss:$16 sps:$4 sm:$0xff]  }
 0x479   :  { %4673 = vpow2.f32 %v4465_v3  ;;  %v5751_v3 = vld [vmem:[#allocation8 + $0xa4] ss:$16 sps:$4 sm:$0xff]   ;;  %v5763_v17 = vld [vmem:[#allocation8 + $0xc0] ss:$16 sps:$4 sm:$0xff]  }
 0x47a   :  { %4675 = vpow2.f32 %v4466_v20  ;;  %v5755_v20 = vld [vmem:[#allocation8 + $0xa0] ss:$16 sps:$4 sm:$0xff]  }
 0x47b   :  { %4677 = vpow2.f32 %v4467_v39 }
 0x47c   :  { %4679 = vtanh.f32 %v1130_v40 }
 0x483   :  { %v4674_v11 = vpop.eup %4673 }
 0x484   :  { %v4676_v51 = vpop.eup %4675  ;;  %v1135_v0 = vadd.f32 1.0, %v4674_v11 }
 0x485   :  { %v1141_v49 = vadd.f32 1.0, %v4676_v51  ;;  %v4678_v48 = vpop.eup %4677 }
 0x486   :  { %4681 = vrcp.f32 %v1135_v0  ;;  %v4680_v42 = vpop.eup %4679  ;;  %v1148_v46 = vadd.f32 1.0, %v4678_v48 }
 0x487   :  { %4683 = vrcp.f32 %v1141_v49 }
 0x488   :  { %4685 = vrcp.f32 %v1148_v46 }
 0x490   :  { %v4682_v27 = vpop.eup %4681 }
 0x491   :  { %v4684_v22 = vpop.eup %4683  ;;  %v1155_v30 = vmul.f32 %v4682_v27, %v4680_v42 }
 0x492   :  { %v1154_v23 = vmul.f32 %v4684_v22, %v1152_v34  ;;  %v4686_v2 = vpop.eup %4685 }
 0x494   :  { %v5716_v36 = vadd.f32 %v1155_v30, %v1154_v23 }
 0x496   :  { %4687 = vtanh.f32 %v5716_v36 }
 0x4a0   :  { %v4688_v41 = vpop.eup %4687 }
 0x4a1   :  { %v1158_v50 = vmul.f32 %v4688_v41, %v4686_v2 }
 0x4a3   :  { %v1159_v4 = vpack.c.bf16 %v1158_v50, %v1158_v50  ;;  %v1667_v54 = vrot.slane %v1158_v50, 3  ;;  %v1717_v8 = vrot.slane %v1158_v50, 4 }
 0x4a5   :  { %v1161_v12 = vrot.slane %v1159_v4, 3  ;;  %v5720_v13 = vsel %vm1684_vm2, %v5659_v16, %v1667_v54  ;;  %v5723_v31 = vsel %vm1684_vm2, %v5661_v14, %v1717_v8  ;;  %v5739_v16 = vld [vmem:[#allocation8 + $0x60] ss:$16 sps:$4 sm:$0xff]   ;;  %v5743_v14 = vld [vmem:[#allocation8 + $0x84] ss:$16 sps:$4 sm:$0xff]   ;;  %vm2687_vm2 = vcmask 1043459  }
 0x4a7   :  { %1196 = vmatmul.mubr.bf16.vlgmr.msra.gmra.mrb[16].mxu0 %v1161_v12  ;;  %1237 = vmatmul.mubr.bf16.vlgmr.msra.gmra.mrb[24].mxu1 %v1161_v12 }
 0x4a8   :  { %1278 = vmatpush1.bf16.msra.mxu0 %v5663_v38  ;;  %1319 = vmatpush1.bf16.msra.mxu1 %v5448_v53 }
 0x4a9   :  { %1279 = vmatprep.subr.bf16.mxu0 %v5667_v24  ;;  %1320 = vmatprep.subr.bf16.mxu1 %v5451_v55 }
 0x4aa   :  { %1309 = vmatprep.mubr.bf16.mxu0 %v7289_v26  ;;  %1350 = vmatprep.mubr.bf16.mxu1 %v7289_v26 }
 0x4ac   :  { %1280 = vmatpush1.bf16.msra.mxu0 %v5673_v44  ;;  %1321 = vmatpush1.bf16.msra.mxu1 %v5457_v56 }
 0x4ad   :  { %1281 = vmatprep.subr.bf16.mxu0 %v5677_v29  ;;  %1322 = vmatprep.subr.bf16.mxu1 %v5461_v57 }
 0x4b0   :  { %1282 = vmatpush1.bf16.msra.mxu0 %v5681_v28  ;;  %1323 = vmatpush1.bf16.msra.mxu1 %v5466_v58 }
 0x4b1   :  { %1283 = vmatprep.subr.bf16.mxu0 %v5685_v1  ;;  %1324 = vmatprep.subr.bf16.mxu1 %v5469_v59 }
 0x4b4   :  { %1284 = vmatpush1.bf16.msra.mxu0 %v5739_v16  ;;  %1325 = vmatpush1.bf16.msra.mxu1 %v5472_v60 }
 0x4b5   :  { %1285 = vmatprep.subr.bf16.mxu0 %v5743_v14  ;;  %1326 = vmatprep.subr.bf16.mxu1 %v5475_v61 }
 0x4b8   :  { %1286 = vmatpush1.bf16.msra.mxu0 %v5747_v43  ;;  %1327 = vmatpush1.bf16.msra.mxu1 %v5478_v62 }
 0x4b9   :  { %1287 = vmatprep.subr.bf16.mxu0 %v5751_v3  ;;  %1328 = vmatprep.subr.bf16.mxu1 %v5481_v63 }
 0x4bc   :  { %1288 = vmatpush1.bf16.msra.mxu0 %v5755_v20  ;;  %1329 = vmatpush1.bf16.msra.mxu1 %v5484_v5 }
 0x4bd   :  { %1289 = vmatprep.subr.bf16.mxu0 %v5759_v32  ;;  %1330 = vmatprep.subr.bf16.mxu1 %v5487_v6 }
 0x4c0   :  { %1290 = vmatpush1.bf16.msra.mxu0 %v5763_v17  ;;  %1331 = vmatpush1.bf16.msra.mxu1 %v5490_v9 }
 0x4c1   :  { %1291 = vmatprep.subr.bf16.mxu0 %v5767_v18  ;;  %1332 = vmatprep.subr.bf16.mxu1 %v5493_v10 }
 0x4c4   :  { %1292 = vmatpush1.bf16.msra.mxu0 %v5387_v7  ;;  %1333 = vmatpush1.bf16.msra.mxu1 %v5496_v15 }
 0x4c5   :  { %1406 = vmatprep.subr.bf16.mxu0 %v5707_v19  ;;  %1447 = vmatprep.subr.bf16.mxu1 %v5444_v52 }
 0x57a   :  { %v1197_v39 = vpop.f32.mrb[16].mxu0  ;;  %v1238_v40 = vpop.f32.mrb[24].mxu1 }
 0x57b   :  { %v1245_v11 = vadd.f32 %v1197_v39, %v5530_v33  ;;  %v1199_v51 = vpop.f32.mrb[17].mxu0  ;;  %v1240_v0 = vpop.f32.mrb[25].mxu1  ;;  %v1247_v23 = vadd.f32 %v1238_v40, %v5542_v45  ;;  %v1269_v39 = vrot.slane %v5716_v36, 6 }
 0x57c   :  { %v1246_v49 = vadd.f32 %v1199_v51, %v5532_v35  ;;  %v1201_v48 = vpop.f32.mrb[18].mxu0  ;;  %v1242_v42 = vpop.f32.mrb[26].mxu1  ;;  %v1248_v30 = vadd.f32 %v1240_v0, %v5544_v47 }
 0x57d   :  { %v4468_v27 = vmul.f32 -1.442695, %v1245_v11  ;;  %v1202_v34 = vpop.f32.mrb[19].mxu0  ;;  %v1243_v22 = vpop.f32.mrb[27].mxu1 }
 0x57e   :  { %v4469_v7 = vmul.f32 -1.442695, %v1246_v49  ;;  %v4470_v46 = vmul.f32 -1.442695, %v1248_v30 }
 0x57f   :  { %4689 = vpow2.f32 %v4468_v27 }
 0x580   :  { %4691 = vpow2.f32 %v4469_v7 }
 0x581   :  { %4693 = vpow2.f32 %v4470_v46 }
 0x582   :  { %4695 = vtanh.f32 %v1247_v23 }
 0x589   :  { %v4690_v2 = vpop.eup %4689 }
 0x58a   :  { %v4692_v41 = vpop.eup %4691  ;;  %v1252_v50 = vadd.f32 1.0, %v4690_v2 }
 0x58b   :  { %v1258_v4 = vadd.f32 1.0, %v4692_v41  ;;  %v4694_v54 = vpop.eup %4693 }
 0x58c   :  { %4697 = vrcp.f32 %v1252_v50  ;;  %v4696_v8 = vpop.eup %4695  ;;  %v1265_v49 = vadd.f32 1.0, %v4694_v54 }
 0x58d   :  { %4699 = vrcp.f32 %v1258_v4 }
 0x58e   :  { %4701 = vrcp.f32 %v1265_v49 }
 0x596   :  { %v4698_v12 = vpop.eup %4697 }
 0x597   :  { %v4700_v11 = vpop.eup %4699  ;;  %v1272_v51 = vmul.f32 %v4698_v12, %v4696_v8 }
 0x598   :  { %v1271_v0 = vmul.f32 %v4700_v11, %v1269_v39  ;;  %v4702_v40 = vpop.eup %4701 }
 0x59a   :  { %v5780_v48 = vadd.f32 %v1272_v51, %v1271_v0 }
 0x59c   :  { %4703 = vtanh.f32 %v5780_v48  ;;  %v1395_v12 = vrot.slane %v5780_v48, 6 }
 0x5a6   :  { %v4704_v42 = vpop.eup %4703 }
 0x5a7   :  { %v1275_v27 = vmul.f32 %v4704_v42, %v4702_v40 }
 0x5a9   :  { %v1276_v34 = vpack.c.bf16 %v1275_v27, %v1275_v27  ;;  %v1670_v22 = vrot.slane %v1275_v27, 4  ;;  %v1719_v7 = vrot.slane %v1275_v27, 5 }
 0x5ab   :  { %1310 = vmatmul.mubr.bf16.vlgmr.msra.gmra.mrb[20].mxu0 %v1276_v34  ;;  %v5785_v36 = vsel %vm1686_vm7, %v5720_v13, %v1670_v22  ;;  %v5789_v30 = vsel %vm1686_vm7, %v5723_v31, %v1719_v7  ;;  %1351 = vmatmul.mubr.bf16.vlgmr.msra.gmra.mrb[28].mxu1 %v1276_v34 }
 0x5ac   :  { %1407 = vmatpush1.bf16.msra.mxu0 %v5663_v38  ;;  %1448 = vmatpush1.bf16.msra.mxu1 %v5448_v53  ;;  %v5821_v53 = vld [vmem:[#allocation8 + $0xe0] ss:$16 sps:$4 sm:$0xff]  }
 0x5ad   :  { %1408 = vmatprep.subr.bf16.mxu0 %v5667_v24  ;;  %1449 = vmatprep.subr.bf16.mxu1 %v5451_v55 }
 0x5ae   :  { %1438 = vmatprep.mubr.bf16.mxu0 %v7289_v26  ;;  %1479 = vmatprep.mubr.bf16.mxu1 %v7289_v26 }
 0x5b0   :  { %1409 = vmatpush1.bf16.msra.mxu0 %v5673_v44  ;;  %1450 = vmatpush1.bf16.msra.mxu1 %v5457_v56 }
 0x5b1   :  { %1410 = vmatprep.subr.bf16.mxu0 %v5677_v29  ;;  %1451 = vmatprep.subr.bf16.mxu1 %v5461_v57 }
 0x5b4   :  { %1411 = vmatpush1.bf16.msra.mxu0 %v5681_v28  ;;  %1452 = vmatpush1.bf16.msra.mxu1 %v5466_v58 }
 0x5b5   :  { %1412 = vmatprep.subr.bf16.mxu0 %v5685_v1  ;;  %1453 = vmatprep.subr.bf16.mxu1 %v5469_v59 }
 0x5b8   :  { %1413 = vmatpush1.bf16.msra.mxu0 %v5739_v16  ;;  %1454 = vmatpush1.bf16.msra.mxu1 %v5472_v60 }
 0x5b9   :  { %1414 = vmatprep.subr.bf16.mxu0 %v5743_v14  ;;  %1455 = vmatprep.subr.bf16.mxu1 %v5475_v61 }
 0x5bc   :  { %1415 = vmatpush1.bf16.msra.mxu0 %v5747_v43  ;;  %1456 = vmatpush1.bf16.msra.mxu1 %v5478_v62 }
 0x5bd   :  { %1416 = vmatprep.subr.bf16.mxu0 %v5751_v3  ;;  %1457 = vmatprep.subr.bf16.mxu1 %v5481_v63 }
 0x5c0   :  { %1417 = vmatpush1.bf16.msra.mxu0 %v5755_v20  ;;  %1458 = vmatpush1.bf16.msra.mxu1 %v5484_v5 }
 0x5c1   :  { %1418 = vmatprep.subr.bf16.mxu0 %v5759_v32  ;;  %1459 = vmatprep.subr.bf16.mxu1 %v5487_v6 }
 0x5c4   :  { %1419 = vmatpush1.bf16.msra.mxu0 %v5763_v17  ;;  %1460 = vmatpush1.bf16.msra.mxu1 %v5490_v9 }
 0x5c5   :  { %1420 = vmatprep.subr.bf16.mxu0 %v5767_v18  ;;  %1461 = vmatprep.subr.bf16.mxu1 %v5493_v10 }
 0x5c8   :  { %1421 = vmatpush1.bf16.msra.mxu0 %v5821_v53  ;;  %1462 = vmatpush1.bf16.msra.mxu1 %v5496_v15 }
 0x5c9   :  { %1535 = vmatprep.subr.bf16.mxu0 %v5707_v19  ;;  %1576 = vmatprep.subr.bf16.mxu1 %v5444_v52 }
 0x67e   :  { %v1311_v55 = vpop.f32.mrb[20].mxu0  ;;  %v1352_v56 = vpop.f32.mrb[28].mxu1 }
 0x67f   :  { %v1363_v57 = vrot.slane %v1311_v55, 6  ;;  %v1313_v58 = vpop.f32.mrb[21].mxu0  ;;  %v1354_v59 = vpop.f32.mrb[29].mxu1  ;;  %v1365_v19 = vrot.slane %v1352_v56, 6 }
 0x680   :  { %v1364_v60 = vrot.slane %v1313_v58, 6  ;;  %v1315_v61 = vpop.f32.mrb[22].mxu0  ;;  %v1356_v62 = vpop.f32.mrb[30].mxu1  ;;  %v1366_v13 = vrot.slane %v1354_v59, 6  ;;  %v4908_v58 = vld [vmem:[#allocation8 + $0x2c] ss:$16 sps:$4 sm:$0xff]  }
 0x681   :  { %v1371_v63 = vadd.f32 %v1363_v57, %v5530_v33  ;;  %v1316_v5 = vpop.f32.mrb[23].mxu0  ;;  %v1357_v6 = vpop.f32.mrb[31].mxu1  ;;  %v1373_v46 = vadd.f32 %v1365_v19, %v5542_v45  ;;  %v4907_v57 = vld [vmem:[#allocation8 + $0x8] ss:$16 sps:$4 sm:$0xff]  }
 0x682   :  { %v1372_v9 = vadd.f32 %v1364_v60, %v5532_v35  ;;  %v1374_v52 = vadd.f32 %v1366_v13, %v5544_v47  ;;  %v4913_v59 = vld [vmem:[#allocation8 + $0x68] ss:$16 sps:$4 sm:$0xff]  }
 0x683   :  { %v4471_v10 = vmul.f32 -1.442695, %v1371_v63 }
 0x684   :  { %v4472_v15 = vmul.f32 -1.442695, %v1372_v9  ;;  %v4473_v31 = vmul.f32 -1.442695, %v1374_v52 }
 0x685   :  { %4705 = vpow2.f32 %v4471_v10 }
 0x686   :  { %4707 = vpow2.f32 %v4472_v15 }
 0x687   :  { %4709 = vpow2.f32 %v4473_v31 }
 0x688   :  { %4711 = vtanh.f32 %v1373_v46 }
 0x68f   :  { %v4706_v23 = vpop.eup %4705 }
 0x690   :  { %v4708_v2 = vpop.eup %4707  ;;  %v1378_v41 = vadd.f32 1.0, %v4706_v23 }
 0x691   :  { %v1384_v50 = vadd.f32 1.0, %v4708_v2  ;;  %v4710_v4 = vpop.eup %4709 }
 0x692   :  { %4713 = vrcp.f32 %v1378_v41  ;;  %v4712_v54 = vpop.eup %4711  ;;  %v1391_v51 = vadd.f32 1.0, %v4710_v4 }
 0x693   :  { %4715 = vrcp.f32 %v1384_v50 }
 0x694   :  { %4717 = vrcp.f32 %v1391_v51 }
 0x69c   :  { %v4714_v8 = vpop.eup %4713 }
 0x69d   :  { %v4716_v39 = vpop.eup %4715  ;;  %v1398_v11 = vmul.f32 %v4714_v8, %v4712_v54 }
 0x69e   :  { %v1397_v49 = vmul.f32 %v4716_v39, %v1395_v12  ;;  %v4718_v40 = vpop.eup %4717 }
 0x6a0   :  { %v5832_v0 = vadd.f32 %v1398_v11, %v1397_v49 }
 0x6a2   :  { %4719 = vtanh.f32 %v5832_v0  ;;  %v1524_v8 = vrot.slane %v5832_v0, 6 }
 0x6ac   :  { %v4720_v42 = vpop.eup %4719 }
 0x6ad   :  { %v1401_v27 = vmul.f32 %v4720_v42, %v4718_v40 }
 0x6af   :  { %v1402_v34 = vpack.c.bf16 %v1401_v27, %v1401_v27  ;;  %v1673_v22 = vrot.slane %v1401_v27, 5  ;;  %v1721_v7 = vrot.slane %v1401_v27, 6 }
 0x6b1   :  { %v1404_v55 = vrot.slane %v1402_v34, 1  ;;  %v5836_v56 = vsel %vm1688_vm9, %v5785_v36, %v1673_v22  ;;  %v5839_v48 = vsel %vm1688_vm9, %v5789_v30, %v1721_v7  ;;  %v4909_v36 = vld [vmem:[#allocation8 + $0x28] ss:$16 sps:$4 sm:$0xff]   ;;  %v4910_v30 = vld [vmem:[#allocation8 + $0x4c] ss:$16 sps:$4 sm:$0xff]   ;;  %vm2691_vm9 = vcmask 1045509  }
 0x6b3   :  { %1439 = vmatmul.mubr.bf16.vlgmr.msra.gmra.mrb[24].mxu0 %v1404_v55  ;;  %1480 = vmatmul.mubr.bf16.vlgmr.msra.gmra.mrb[32].mxu1 %v1404_v55 }
 0x6b4   :  { %1536 = vmatpush1.bf16.msra.mxu0 %v5663_v38  ;;  %1577 = vmatpush1.bf16.msra.mxu1 %v4907_v57  ;;  %v4911_v38 = vld [vmem:[#allocation8 + $0x48] ss:$16 sps:$4 sm:$0xff]  }
 0x6b5   :  { %1537 = vmatprep.subr.bf16.mxu0 %v5667_v24  ;;  %1578 = vmatprep.subr.bf16.mxu1 %v4908_v58  ;;  %v4912_v24 = vld [vmem:[#allocation8 + $0x6c] ss:$16 sps:$4 sm:$0xff]  }
 0x6b6   :  { %1567 = vmatprep.mubr.bf16.mxu0 %v7289_v26  ;;  %1608 = vmatprep.mubr.bf16.mxu1 %v7289_v26  ;;  %v4914_v26 = vld [vmem:[#allocation8 + $0x8c] ss:$16 sps:$4 sm:$0xff]  }
 0x6b8   :  { %1538 = vmatpush1.bf16.msra.mxu0 %v5673_v44  ;;  %1579 = vmatpush1.bf16.msra.mxu1 %v4909_v36  ;;  %v4915_v44 = vld [vmem:[#allocation8 + $0x88] ss:$16 sps:$4 sm:$0xff]  }
 0x6b9   :  { %1539 = vmatprep.subr.bf16.mxu0 %v5677_v29  ;;  %1580 = vmatprep.subr.bf16.mxu1 %v4910_v30  ;;  %v4916_v29 = vld [vmem:[#allocation8 + $0xac] ss:$16 sps:$4 sm:$0xff]  }
 0x6bc   :  { %1540 = vmatpush1.bf16.msra.mxu0 %v5681_v28  ;;  %1581 = vmatpush1.bf16.msra.mxu1 %v4911_v38  ;;  %v4917_v28 = vld [vmem:[#allocation8 + $0xa8] ss:$16 sps:$4 sm:$0xff]  }
 0x6bd   :  { %1541 = vmatprep.subr.bf16.mxu0 %v5685_v1  ;;  %1582 = vmatprep.subr.bf16.mxu1 %v4912_v24  ;;  %v4918_v1 = vld [vmem:[#allocation8 + $0xcc] ss:$16 sps:$4 sm:$0xff]  }
 0x6c0   :  { %1542 = vmatpush1.bf16.msra.mxu0 %v5739_v16  ;;  %1583 = vmatpush1.bf16.msra.mxu1 %v4913_v59  ;;  %v4919_v16 = vld [vmem:[#allocation8 + $0xc8] ss:$16 sps:$4 sm:$0xff]  }
 0x6c1   :  { %1543 = vmatprep.subr.bf16.mxu0 %v5743_v14  ;;  %1584 = vmatprep.subr.bf16.mxu1 %v4914_v26  ;;  %v4920_v14 = vld [vmem:[#allocation8 + $0xec] ss:$16 sps:$4 sm:$0xff]  }
 0x6c4   :  { %1544 = vmatpush1.bf16.msra.mxu0 %v5747_v43  ;;  %1585 = vmatpush1.bf16.msra.mxu1 %v4915_v44  ;;  %v4921_v43 = vld [vmem:[#allocation8 + $0xe8] ss:$16 sps:$4 sm:$0xff]  }
 0x6c5   :  { %1545 = vmatprep.subr.bf16.mxu0 %v5751_v3  ;;  %1586 = vmatprep.subr.bf16.mxu1 %v4916_v29 }
 0x6c8   :  { %1546 = vmatpush1.bf16.msra.mxu0 %v5755_v20  ;;  %1587 = vmatpush1.bf16.msra.mxu1 %v4917_v28 }
 0x6c9   :  { %1547 = vmatprep.subr.bf16.mxu0 %v5759_v32  ;;  %1588 = vmatprep.subr.bf16.mxu1 %v4918_v1 }
 0x6cc   :  { %1548 = vmatpush1.bf16.msra.mxu0 %v5763_v17  ;;  %1589 = vmatpush1.bf16.msra.mxu1 %v4919_v16 }
 0x6cd   :  { %1549 = vmatprep.subr.bf16.mxu0 %v5767_v18  ;;  %1590 = vmatprep.subr.bf16.mxu1 %v4920_v14 }
 0x6d0   :  { %1550 = vmatpush1.bf16.msra.mxu0 %v5821_v53  ;;  %1591 = vmatpush1.bf16.msra.mxu1 %v4921_v43 }
 0x786   :  { %v1440_v3 = vpop.f32.mrb[24].mxu0  ;;  %v1481_v20 = vpop.f32.mrb[32].mxu1 }
 0x787   :  { %v1492_v60 = vrot.slane %v1440_v3, 4  ;;  %v1442_v61 = vpop.f32.mrb[25].mxu0  ;;  %v1483_v62 = vpop.f32.mrb[33].mxu1  ;;  %v1494_v52 = vrot.slane %v1481_v20, 4 }
 0x788   :  { %v1493_v32 = vrot.slane %v1442_v61, 4  ;;  %v1444_v63 = vpop.f32.mrb[26].mxu0  ;;  %v1485_v5 = vpop.f32.mrb[34].mxu1  ;;  %v1495_v13 = vrot.slane %v1483_v62, 4 }
 0x789   :  { %v1500_v17 = vadd.f32 %v1492_v60, %v5530_v33  ;;  %v1445_v6 = vpop.f32.mrb[27].mxu0  ;;  %v1486_v9 = vpop.f32.mrb[35].mxu1  ;;  %v1502_v31 = vadd.f32 %v1494_v52, %v5542_v45 }
 0x78a   :  { %v1501_v18 = vadd.f32 %v1493_v32, %v5532_v35  ;;  %v1503_v53 = vadd.f32 %v1495_v13, %v5544_v47 }
 0x78b   :  { %v4474_v10 = vmul.f32 -1.442695, %v1500_v17 }
 0x78c   :  { %v4475_v15 = vmul.f32 -1.442695, %v1501_v18  ;;  %v4476_v19 = vmul.f32 -1.442695, %v1503_v53 }
 0x78d   :  { %4721 = vpow2.f32 %v4474_v10 }
 0x78e   :  { %4723 = vpow2.f32 %v4475_v15 }
 0x78f   :  { %4725 = vpow2.f32 %v4476_v19 }
 0x790   :  { %4727 = vtanh.f32 %v1502_v31 }
 0x797   :  { %v4722_v46 = vpop.eup %4721 }
 0x798   :  { %v4724_v23 = vpop.eup %4723  ;;  %v1507_v2 = vadd.f32 1.0, %v4722_v46 }
 0x799   :  { %v1513_v41 = vadd.f32 1.0, %v4724_v23  ;;  %v4726_v50 = vpop.eup %4725 }
 0x79a   :  { %4729 = vrcp.f32 %v1507_v2  ;;  %v4728_v4 = vpop.eup %4727  ;;  %v1520_v11 = vadd.f32 1.0, %v4726_v50 }
 0x79b   :  { %4731 = vrcp.f32 %v1513_v41 }
 0x79c   :  { %4733 = vrcp.f32 %v1520_v11 }
 0x7a4   :  { %v4730_v54 = vpop.eup %4729 }
 0x7a5   :  { %v4732_v12 = vpop.eup %4731  ;;  %v1527_v39 = vmul.f32 %v4730_v54, %v4728_v4 }
 0x7a6   :  { %v1526_v51 = vmul.f32 %v4732_v12, %v1524_v8  ;;  %v4734_v40 = vpop.eup %4733 }
 0x7a8   :  { %v1528_v49 = vadd.f32 %v1527_v39, %v1526_v51  ;;  %v4623_v39 = vld [vmem:[%s7223_s4] sm:$0xff]  }
 0x7aa   :  { %4735 = vtanh.f32 %v1528_v49  ;;  %v1653_v17 = vrot.slane %v1528_v49, 6  ;;  %v1804_v49 = vld [vmem:[%s7224_s5 + $0x8] sm:$0xff] }
 0x7b4   :  { %v4736_v42 = vpop.eup %4735 }
 0x7b5   :  { %v1530_v27 = vmul.f32 %v4736_v42, %v4734_v40  ;;  %v1803_v40 = vld [vmem:[%s7224_s5] sm:$0xff]  ;;  %v1805_v42 = vld [vmem:[%s7224_s5 + $0x10] sm:$0xff] }
 0x7b7   :  { %v1531_v34 = vpack.c.bf16 %v1530_v27, %v1530_v27  ;;  %v1676_v22 = vrot.slane %v1530_v27, 6  ;;  %v1723_v7 = vrot.slane %v1530_v27, 7  ;;  %v1806_v27 = vld [vmem:[%s7224_s5 + $0x18] sm:$0xff] }
 0x7b9   :  { %v1533_v55 = vrot.slane %v1531_v34, 2  ;;  %v1691_v57 = vsel %vm1690_vm10, %v5836_v56, %v1676_v22  ;;  %v1730_v58 = vsel %vm1690_vm10, %v5839_v48, %v1723_v7  ;;  %vm2693_vm10 = vcmask 1046534  }
 0x7bb   :  { %1568 = vmatmul.mubr.bf16.vlgmr.msra.gmra.mrb[28].mxu0 %v1533_v55  ;;  %1609 = vmatmul.mubr.bf16.vlgmr.msra.gmra.mrb[36].mxu1 %v1533_v55 }
 0x7bc   :  { %4501 = vmatprep.mubr.msk.bf16.mxu0 %vm1837_vm11, %v4623_v39 }
 0x88e   :  { %v1569_v0 = vpop.f32.mrb[28].mxu0  ;;  %v1610_v36 = vpop.f32.mrb[36].mxu1 }
 0x88f   :  { %v1621_v30 = vrot.slane %v1569_v0, 2  ;;  %v1571_v38 = vpop.f32.mrb[29].mxu0  ;;  %v1612_v24 = vpop.f32.mrb[37].mxu1  ;;  %v1623_v3 = vrot.slane %v1610_v36, 2 }
 0x890   :  { %v1622_v59 = vrot.slane %v1571_v38, 2  ;;  %v1573_v26 = vpop.f32.mrb[30].mxu0  ;;  %v1614_v44 = vpop.f32.mrb[38].mxu1  ;;  %v1624_v43 = vrot.slane %v1612_v24, 2 }
 0x891   :  { %v1629_v29 = vadd.f32 %v1621_v30, %v5530_v33  ;;  %v1574_v28 = vpop.f32.mrb[31].mxu0  ;;  %v1615_v1 = vpop.f32.mrb[39].mxu1  ;;  %v1631_v60 = vadd.f32 %v1623_v3, %v5542_v45 }
 0x892   :  { %v1630_v16 = vadd.f32 %v1622_v59, %v5532_v35  ;;  %v1632_v48 = vadd.f32 %v1624_v43, %v5544_v47 }
 0x893   :  { %v4477_v14 = vmul.f32 -1.442695, %v1629_v29 }
 0x894   :  { %v4478_v56 = vmul.f32 -1.442695, %v1630_v16  ;;  %v4479_v20 = vmul.f32 -1.442695, %v1632_v48 }
 0x895   :  { %4737 = vpow2.f32 %v4477_v14 }
 0x896   :  { %4739 = vpow2.f32 %v4478_v56 }
 0x897   :  { %4741 = vpow2.f32 %v4479_v20 }
 0x898   :  { %4743 = vtanh.f32 %v1631_v60 }
 0x89f   :  { %v4738_v61 = vpop.eup %4737 }
 0x8a0   :  { %v4740_v62 = vpop.eup %4739  ;;  %v1636_v32 = vadd.f32 1.0, %v4738_v61 }
 0x8a1   :  { %v1642_v33 = vadd.f32 1.0, %v4740_v62  ;;  %v4742_v35 = vpop.eup %4741 }
 0x8a2   :  { %4745 = vrcp.f32 %v1636_v32  ;;  %v4744_v63 = vpop.eup %4743  ;;  %v1649_v18 = vadd.f32 1.0, %v4742_v35 }
 0x8a3   :  { %4747 = vrcp.f32 %v1642_v33 }
 0x8a4   :  { %4749 = vrcp.f32 %v1649_v18 }
 0x8ac   :  { %v4746_v5 = vpop.eup %4745 }
 0x8ad   :  { %v4748_v6 = vpop.eup %4747  ;;  %v1656_v9 = vmul.f32 %v4746_v5, %v4744_v63 }
 0x8ae   :  { %v1655_v47 = vmul.f32 %v4748_v6, %v1653_v17  ;;  %v4750_v45 = vpop.eup %4749 }
 0x8b0   :  { %v1657_v10 = vadd.f32 %v1656_v9, %v1655_v47  ;;  %v4624_v47 = vld [vmem:[%s7223_s4 + $0x8] sm:$0xff]   ;;  %s5098_s4 = smov 52  }
 0x8b2   :  { %4751 = vtanh.f32 %v1657_v10 }
 0x8bc   :  { %v4752_v15 = vpop.eup %4751 }
 0x8bd   :  { %v1659_v13 = vmul.f32 %v4752_v15, %v4750_v45 }
 0x8bf   :  { %v1679_v53 = vrot.slane %v1659_v13, 7  ;;  %v1731_v52 = vsel %vm1692_vm8, %v1730_v58, %v1659_v13 }
 0x8c0   :  { %1736 = vrot.lane.b32.xlu1 %v1731_v52, %s5087_s3  ;;  %1732 = vrot.lane.b32.xlu0 %v1731_v52, %s5088_s13 }
 0x8c1   :  { %v1693_v19 = vsel %vm1692_vm8, %v1691_v57, %v1679_v53  ;;  %vm2695_vm8 = vcmask 1047559  }
 0x8c4   :  { %1738 = vrot.lane.b32.xlu1 %v1731_v52, %s5089_s15  ;;  %1734 = vrot.lane.b32.xlu0 %v1731_v52, %s5090_s16 }
 0x8c8   :  { %1742 = vrot.lane.b32.xlu1 %v1731_v52, %s5091_s17  ;;  %1740 = vrot.lane.b32.xlu0 %v1731_v52, %s5092_s1 }
 0x8cc   :  { %1746 = vrot.lane.b32.xlu1 %v1731_v52, %s5093_s0  ;;  %1744 = vrot.lane.b32.xlu0 %v1731_v52, %s5094_s18 }
 0x8d0   :  { %1698 = vrot.lane.b32.xlu1 %v1693_v19, %s5087_s3  ;;  %1694 = vrot.lane.b32.xlu0 %v1693_v19, %s5088_s13 }
 0x8d4   :  { %1696 = vrot.lane.b32.xlu0 %v1693_v19, %s5090_s16 }
 0x8d8   :  { %1702 = vrot.lane.b32.xlu0 %v1693_v19, %s5092_s1 }
 0x932   :  { %v1737_v31 = vpop.permute.xlu1 %1736  ;;  %v1733_v46 = vpop.permute.xlu0 %1732 }
 0x933   :  { %v4531_v23 = vpack.i.bf16 %v1733_v46, %v1731_v52 }
 0x935   :  { %4532 = vrot.lane.b32.xlu1 %v4531_v23, %s5095_s19 }
 0x936   :  { %v1735_v2 = vpop.permute.xlu0 %1734  ;;  %v1739_v50 = vpop.permute.xlu1 %1738 }
 0x937   :  { %v4536_v41 = vpack.i.bf16 %v1737_v31, %v1735_v2 }
 0x939   :  { %1700 = vrot.lane.b32.xlu1 %v1693_v19, %s5089_s15  ;;  %4537 = vrot.lane.b32.xlu0 %v4536_v41, %s5095_s19 }
 0x93a   :  { %v1741_v4 = vpop.permute.xlu0 %1740  ;;  %v1743_v8 = vpop.permute.xlu1 %1742 }
 0x93b   :  { %v4541_v54 = vpack.i.bf16 %v1741_v4, %v1739_v50 }
 0x93d   :  { %4542 = vrot.lane.b32.xlu1 %v4541_v54, %s5095_s19  ;;  %1704 = vrot.lane.b32.xlu0 %v1693_v19, %s5091_s17 }
 0x93e   :  { %v1745_v12 = vpop.permute.xlu0 %1744  ;;  %v1747_v51 = vpop.permute.xlu1 %1746 }
 0x93f   :  { %v4546_v11 = vpack.i.bf16 %v1745_v12, %v1743_v8  ;;  %v7290_v12 = vmov 0.0  }
 0x940   :  { %v2541_v39 = vsel %vm2119_vm14, 1.0, %v7290_v12 }
 0x941   :  { %1706 = vrot.lane.b32.xlu1 %v1693_v19, %s5094_s18  ;;  %4547 = vrot.lane.b32.xlu0 %v4546_v11, %s5095_s19  ;;  %v2542_v11 = vadd.f32 2.0, %v2541_v39 }
 0x942   :  { %v1695_v34 = vpop.permute.xlu0 %1694  ;;  %v1699_v7 = vpop.permute.xlu1 %1698 }
 0x945   :  { %1708 = vrot.lane.b32.xlu1 %v1693_v19, %s5093_s0  ;;  %1773 = vrot.lane.b32.xlu0 %v1747_v51, %s5095_s19 }
 0x946   :  { %v1697_v22 = vpop.permute.xlu0 %1696 }
 0x949   :  { %1814 = vperm.xlu1 %4551, %v1804_v49   ;;  %1809 = vperm.xlu0 %4552, %v1803_v40  }
 0x94a   :  { %v1703_v55 = vpop.permute.xlu0 %1702 }
 0x94d   :  { %1819 = vperm.xlu1 %4551, %v1805_v42  }
 0x951   :  { %1824 = vperm.xlu1 %4551, %v1806_v27  }
 0x9a7   :  { %v4533_v57 = vpop.permute.xlu1 %4532 }
 0x9a8   :  { %v4535_v58 = vunpack.i.h.bf16 %v4533_v57  ;;  %v4534_v0 = vunpack.i.l.bf16 %v4533_v57 }
 0x9aa   :  { %v1785_v36 = vsel %vm1784_vm13, %v1693_v19, %v4534_v0  ;;  %v1786_v30 = vsel %vm1784_vm13, %v1695_v34, %v4535_v58 }
 0x9ab   :  { %v1701_v38 = vpop.permute.xlu1 %1700  ;;  %v4538_v24 = vpop.permute.xlu0 %4537  ;;  %v1798_v59 = vpack.c.bf16 %v1786_v30, %v1785_v36 }
 0x9ac   :  { %v4540_v26 = vunpack.i.h.bf16 %v4538_v24  ;;  %v4539_v44 = vunpack.i.l.bf16 %v4538_v24 }
 0x9ad   :  { %4491 = vmatprep.subr.bf16.mxu0 %v1798_v59 }
 0x9ae   :  { %4492 = vmatpush3.bf16.msra.mxu0 %v1798_v59  ;;  %v1787_v29 = vsel %vm1784_vm13, %v1697_v22, %v4539_v44  ;;  %v1788_v28 = vsel %vm1784_vm13, %v1699_v7, %v4540_v26 }
 0x9af   :  { %v4543_v1 = vpop.permute.xlu1 %4542  ;;  %v1705_v16 = vpop.permute.xlu0 %1704  ;;  %v1799_v14 = vpack.c.bf16 %v1788_v28, %v1787_v29 }
 0x9b0   :  { %v4545_v56 = vunpack.i.h.bf16 %v4543_v1  ;;  %v4544_v43 = vunpack.i.l.bf16 %v4543_v1 }
 0x9b1   :  { %4493 = vmatprep.subr.bf16.mxu0 %v1799_v14 }
 0x9b2   :  { %4494 = vmatpush3.bf16.msra.mxu0 %v1799_v14  ;;  %v1789_v48 = vsel %vm1784_vm13, %v1701_v38, %v4544_v43  ;;  %v1790_v3 = vsel %vm1784_vm13, %v1703_v55, %v4545_v56 }
 0x9b3   :  { %v1707_v20 = vpop.permute.xlu1 %1706  ;;  %v4548_v60 = vpop.permute.xlu0 %4547  ;;  %v1800_v61 = vpack.c.bf16 %v1790_v3, %v1789_v48 }
 0x9b4   :  { %v4550_v62 = vunpack.i.h.bf16 %v4548_v60  ;;  %v4549_v32 = vunpack.i.l.bf16 %v4548_v60 }
 0x9b5   :  { %4495 = vmatprep.subr.bf16.mxu0 %v1800_v61 }
 0x9b6   :  { %4496 = vmatpush3.bf16.msra.mxu0 %v1800_v61  ;;  %v1791_v33 = vsel %vm1784_vm13, %v1705_v16, %v4549_v32  ;;  %v1792_v35 = vsel %vm1784_vm13, %v1707_v20, %v4550_v62 }
 0x9b7   :  { %v1709_v63 = vpop.permute.xlu1 %1708  ;;  %v1774_v5 = vpop.permute.xlu0 %1773  ;;  %v1801_v17 = vpack.c.bf16 %v1792_v35, %v1791_v33 }
 0x9b8   :  { %v1793_v6 = vsel %vm1784_vm13, %v1709_v63, %v1774_v5 }
 0x9b9   :  { %v1802_v9 = vpack.c.bf16 %v1793_v6, %v1793_v6  ;;  %4497 = vmatprep.subr.bf16.mxu0 %v1801_v17 }
 0x9ba   :  { %4498 = vmatpush3.bf16.msra.mxu0 %v1801_v17 }
 0x9bb   :  { %4505 = vmatprep.subr.msk.bf16.mxu0 %vm1686_vm7, %v1802_v9  ;;  %v1845_v18 = vsel %vm1686_vm7, %v1802_v9, 0 }
 0x9be   :  { %4500 = vmatpush3.bf16.msra.mxu0 %v1845_v18 }
 0x9c1   :  { %4502 = vmatmul.mubr.msk.bf16.vlgmr.msra.gmra.mrb[32].mxu0 %vm1837_vm11, %v4624_v47 }
 0x9c8   :  { %v1815_v10 = vpop.permute.xlu1 %1814  ;;  %v1810_v45 = vpop.permute.xlu0 %1809 }
 0x9cc   :  { %v1820_v15 = vpop.permute.xlu1 %1819 }
 0x9d0   :  { %v1825_v50 = vpop.permute.xlu1 %1824 }
 0xa94   :  { %v4503_v13 = vpop.f32.mrb[32].mxu0 }
 0xa95   :  { %v1890_v53 = vadd.f32 %v4503_v13, %v1820_v15  ;;  %v1881_v52 = vpop.f32.mrb[33].mxu0 }
 0xa96   :  { %v1882_v19 = vadd.f32 %v1881_v52, %v1810_v45  ;;  %v4504_v31 = vpop.f32.mrb[34].mxu0 }
 0xa97   :  { %1910 = vrot.lane.b32.xlu1 %v1890_v53, %s5079_s14  ;;  %v1884_v46 = vpop.f32.mrb[35].mxu0  ;;  %v1913_v2 = vrot.slane %v1890_v53, 4  ;;  %v1893_v4 = vadd.f32 %v4504_v31, %v1825_v50 }
 0xa98   :  { %1937 = vrot.lane.b32.xlu0 %v1882_v19, %s5096_s26  ;;  %v1897_v23 = vrot.slane %v1882_v19, 4  ;;  %v1885_v41 = vadd.f32 %v1884_v46, %v1815_v10 }
 0xa99   :  { %v1921_v8 = vrot.slane %v1893_v4, 4 }
 0xa9a   :  { %v1905_v54 = vrot.slane %v1885_v41, 4 }
 0xa9b   :  { %1947 = vrot.lane.b32.xlu1 %v1890_v53, %s5097_s30 }
 0xa9c   :  { %1898 = vrot.lane.b32.xlu0 %v1897_v23, %s5095_s19 }
 0xa9f   :  { %1914 = vrot.lane.b32.xlu1 %v1913_v2, %s5098_s4 }
 0xaa0   :  { %1902 = vrot.lane.b32.xlu0 %v1885_v41, %s5099_s8 }
 0xaa3   :  { %1950 = vrot.lane.b32.xlu1 %v1913_v2, %s5079_s14  ;;  %s5101_s14 = smov [#allocation11]  }
 0xaa4   :  { %1941 = vrot.lane.b32.xlu0 %v1885_v41, %s5095_s19  ;;  %s4378_s10 = sshll.u32 %s5101_s14, 4  ;;  %s4379_s10 = int_to_ptr.vmem [resolvable:$true] %s4378_s10 }
 0xaa5   :  { %s5047_s11 = scalar_lea.vmem %s4379_s10, 128  ;;  %p5052_p2 = scmp.lt.s32.totalorder %s4379_s10, %s4379_s10 }
 0xaa6   :  { %p5048_p1 = scmp.ne.s32.totalorder %s4379_s10, %s5047_s11  ;;  %p5053_p3 = scmp.lt.s32.totalorder %s5047_s11, %s5047_s11 }
 0xaa7   :  { %1918 = vrot.lane.b32.xlu1 %v1893_v4, %s5100_s9 }
 0xaa8   :  { %1906 = vrot.lane.b32.xlu0 %v1905_v54, %s5097_s30  ;;  %p5054_p4 = por %p5053_p3, %p5052_p2 }
 0xaaa   :  { %p5055_p5 = pnand %p5054_p4, %p5048_p1 }
 0xaab   :  { %1953 = vrot.lane.b32.xlu1 %v1893_v4, %s5098_s4 }
 0xaac   :  { %1944 = vrot.lane.b32.xlu0 %v1905_v54, %s5099_s8 }
 0xaaf   :  { %1956 = vrot.lane.b32.xlu1 %v1921_v8, %s5100_s9 }
 0xab0   :  { %1922 = vrot.lane.b32.xlu0 %v1921_v8, %s5089_s15 }
 0xacf   :  { %2543 = vadd.xlane.f32.xlu0 %v2542_v11 }
 0xb09   :  { %v1911_v51 = vpop.permute.xlu1 %1910 }
 0xb0a   :  { %v1938_v49 = vpop.permute.xlu0 %1937 }
 0xb0b   :  { %v1959_v24 = vsel %vm1784_vm13, %v1938_v49, %v1897_v23 }
 0xb0d   :  { %v1948_v40 = vpop.permute.xlu1 %1947 }
 0xb0e   :  { %v1899_v42 = vpop.permute.xlu0 %1898 }
 0xb0f   :  { %v1925_v55 = vsel %vm1784_vm13, %v1882_v19, %v1899_v42 }
 0xb11   :  { %v1915_v27 = vpop.permute.xlu1 %1914 }
 0xb12   :  { %v1903_v34 = vpop.permute.xlu0 %1902 }
 0xb13   :  { %v1926_v58 = vsel %vm1837_vm11, %v1925_v55, %v1903_v34 }
 0xb15   :  { %v1951_v22 = vpop.permute.xlu1 %1950 }
 0xb16   :  { %v1942_v7 = vpop.permute.xlu0 %1941 }
 0xb17   :  { %v1960_v26 = vsel %vm1837_vm11, %v1959_v24, %v1942_v7  ;;  %vm2698_vm11 = vcmask 64512  }
 0xb19   :  { %v1919_v57 = vpop.permute.xlu1 %1918 }
 0xb1a   :  { %v1907_v0 = vpop.permute.xlu0 %1906 }
 0xb1b   :  { %v5919_v36 = vsel %vm1927_vm3, %v1926_v58, %v1907_v0  ;;  %v1930_v30 = vsel %vm1929_vm15, %v1907_v0, %v1911_v51 }
 0xb1c   :  { %v1966_v38 = vmul.f32 %v5919_v36, %v5919_v36  ;;  %v1932_v28 = vsel %vm1931_vm0, %v1930_v30, %v1915_v27 }
 0xb1d   :  { %v1954_v59 = vpop.permute.xlu1 %1953  ;;  %v1934_v32 = vsel %vm1933_vm1, %v1932_v28, %v1919_v57 }
 0xb1e   :  { %v1972_v44 = vsel %vm1686_vm7, %v1966_v38, 0.0  ;;  %v1945_v29 = vpop.permute.xlu0 %1944 }
 0xb1f   :  { %v1973_v1 = vrot.slane %v1972_v44, 4  ;;  %v5928_v16 = vsel %vm1927_vm3, %v1960_v26, %v1945_v29  ;;  %v1962_v14 = vsel %vm1929_vm15, %v1945_v29, %v1948_v40 }
 0xb20   :  { %v1963_v56 = vsel %vm1931_vm0, %v1962_v14, %v1951_v22  ;;  %v1969_v43 = vmul.f32 %v5928_v16, %v5928_v16 }
 0xb21   :  { %v1974_v48 = vadd.f32 %v1973_v1, %v1972_v44  ;;  %v5933_v3 = vpop.permute.xlu1 %1956  ;;  %v1964_v20 = vsel %vm1933_vm1, %v1963_v56, %v1954_v59 }
 0xb22   :  { %v1994_v60 = vsel %vm1686_vm7, %v1969_v43, 0.0  ;;  %v5938_v61 = vsel %vm1935_vm4, %v1964_v20, %v5933_v3  ;;  %v1971_v62 = vmul.f32 %v5933_v3, %v5933_v3  ;;  %v5942_v33 = vpop.permute.xlu0 %1922 }
 0xb23   :  { %7291 = vst [vmem:[#allocation19_spill] sm:$0xff] %v5942_v33  ;;  %v1975_v35 = vrot.slane %v1974_v48, 2  ;;  %v1995_v63 = vrot.slane %v1994_v60, 4  ;;  %v1970_v5 = vmul.f32 %v5938_v61, %v5938_v61  ;;  %v5948_v17 = vsel %vm1935_vm4, %v1934_v32, %v5942_v33  ;;  %v5962_v32 = vld [vmem:[#allocation10] sm:$0xff] }
 0xb24   :  { %v2008_v6 = vsel %vm1986_vm12, %v1971_v62, 0.0  ;;  %v1967_v9 = vmul.f32 %v5948_v17, %v5948_v17  ;;  %v1968_v18 = vmul.f32 %v5942_v33, %v5942_v33 }
 0xb25   :  { %v1976_v47 = vadd.f32 %v1975_v35, %v1974_v48  ;;  %v1996_v10 = vadd.f32 %v1995_v63, %v1994_v60  ;;  %v2001_v45 = vsel %vm1686_vm7, %v1970_v5, 0.0  ;;  %v2009_v15 = vrot.slane %v2008_v6, 4  ;;  %v5964_v35 = vld [vmem:[#allocation10 + $0x18] sm:$0xff]  ;;  %v5966_v5 = vld [vmem:[#allocation10 + $0x30] sm:$0xff] }
 0xb26   :  { %v2002_v13 = vrot.slane %v2001_v45, 4  ;;  %v1979_v53 = vsel %vm1686_vm7, %v1967_v9, 0.0  ;;  %v1987_v52 = vsel %vm1986_vm12, %v1968_v18, 0.0  ;;  %v5970_v9 = vld [vmem:[#allocation10 + $0x60] sm:$0xff]  ;;  %vm2689_vm7 = vcmask 1044484  }
 0xb27   :  { %v1977_v19 = vrot.slane %v1976_v47, 1  ;;  %v1997_v31 = vrot.slane %v1996_v10, 2  ;;  %v2010_v46 = vadd.f32 %v2009_v15, %v2008_v6  ;;  %v1980_v23 = vrot.slane %v1979_v53, 4  ;;  %v5968_v6 = vld [vmem:[#allocation10 + $0x48] sm:$0xff] }
 0xb28   :  { %v2003_v2 = vadd.f32 %v2002_v13, %v2001_v45  ;;  %v1988_v41 = vrot.slane %v1987_v52, 4  ;;  %v5973_v45 = vld [vmem:[#allocation10 + $0x78] sm:$0xff] }
 0xb29   :  { %v1978_v50 = vadd.f32 %v1977_v19, %v1976_v47  ;;  %v1998_v4 = vadd.f32 %v1997_v31, %v1996_v10  ;;  %v2011_v54 = vrot.slane %v2010_v46, 2  ;;  %v1981_v8 = vadd.f32 %v1980_v23, %v1979_v53  ;;  %v5980_v19 = vld [vmem:[#allocation10 + $0x90] sm:$0xff]  ;;  %v5982_v31 = vld [vmem:[#allocation10 + $0xa8] sm:$0xff] }
 0xb2a   :  { %v2004_v12 = vrot.slane %v2003_v2, 2  ;;  %v1989_v39 = vadd.f32 %v1988_v41, %v1987_v52 }
 0xb2b   :  { %v2015_v11 = vadd.f32 1e-09, %v1978_v50  ;;  %v2033_v51 = vadd.f32 1.0, %v1978_v50  ;;  %v1999_v49 = vrot.slane %v1998_v4, 1  ;;  %v2012_v40 = vadd.f32 %v2011_v54, %v2010_v46  ;;  %v5984_v46 = vld [vmem:[#allocation10 + $0xc0] sm:$0xff]  ;;  %v5996_v54 = vld [vmem:[#allocation10 + $0x108] sm:$0xff] }
 0xb2c   :  { %v2005_v42 = vadd.f32 %v2004_v12, %v2003_v2  ;;  %v1982_v27 = vrot.slane %v1981_v8, 2  ;;  %v1990_v7 = vrot.slane %v1989_v39, 2 }
 0xb2d   :  { %4753 = vrsqrt.f32 %v2015_v11  ;;  %v2000_v34 = vadd.f32 %v1999_v49, %v1998_v4  ;;  %v2013_v22 = vrot.slane %v2012_v40, 1  ;;  %v5994_v4 = vld [vmem:[#allocation10 + $0xf0] sm:$0xff]  ;;  %v5999_v49 = vld [vmem:[#allocation10 + $0x120] sm:$0xff] }
 0xb2e   :  { %v2006_v55 = vrot.slane %v2005_v42, 1  ;;  %4755 = vrcp.f32 %v2033_v51  ;;  %v1983_v24 = vadd.f32 %v1982_v27, %v1981_v8  ;;  %v1991_v59 = vadd.f32 %v1990_v7, %v1989_v39  ;;  %v7292_v8 = vld [vmem:[#allocation18_spill] sm:$0xff]  ;;  %v2415_v7 = vld [vmem:[#allocation10 + $0x150] sm:$0xff] }
 0xb2f   :  { %v2018_v57 = vadd.f32 1e-09, %v2000_v34  ;;  %v2036_v58 = vadd.f32 1.0, %v2000_v34  ;;  %v2014_v0 = vadd.f32 %v2013_v22, %v2012_v40  ;;  %v2412_v22 = vld [vmem:[#allocation10 + $0x138] sm:$0xff] }
 0xb30   :  { %v2007_v30 = vadd.f32 %v2006_v55, %v2005_v42  ;;  %v1984_v44 = vrot.slane %v1983_v24, 1  ;;  %v1992_v29 = vrot.slane %v1991_v59, 1  ;;  %v2418_v55 = vld [vmem:[#allocation10 + $0x168] sm:$0xff] }
 0xb31   :  { %4757 = vrsqrt.f32 %v2018_v57  ;;  %v2020_v38 = vadd.f32 1e-09, %v2014_v0  ;;  %v2038_v14 = vadd.f32 1.0, %v2014_v0 }
 0xb32   :  { %4759 = vrcp.f32 %v2036_v58  ;;  %v2019_v26 = vadd.f32 1e-09, %v2007_v30  ;;  %v2037_v28 = vadd.f32 1.0, %v2007_v30  ;;  %v5958_v48 = vadd.f32 %v1984_v44, %v1983_v24 }
 0xb33   :  { %4761 = vrsqrt.f32 %v2020_v38  ;;  %v5960_v20 = vadd.f32 %v1992_v29, %v1991_v59 }
 0xb34   :  { %4763 = vrsqrt.f32 %v2019_v26  ;;  %v2016_v15 = vadd.f32 1e-09, %v5958_v48  ;;  %v5978_v53 = vadd.f32 1.0, %v5958_v48 }
 0xb35   :  { %4765 = vrcp.f32 %v2037_v28  ;;  %v2017_v13 = vadd.f32 1e-09, %v5960_v20  ;;  %v5990_v41 = vadd.f32 1.0, %v5960_v20 }
 0xb36   :  { %4767 = vrcp.f32 %v2038_v14 }
 0xb37   :  { %v4754_v1 = vpop.eup %4753  ;;  %4769 = vrsqrt.f32 %v2016_v15 }
 0xb38   :  { %v2027_v56 = vmul.f32 %v4754_v1, %v1978_v50  ;;  %v4756_v43 = vpop.eup %4755  ;;  %v5992_v50 = vld [vmem:[#allocation10 + $0xd8] sm:$0xff]  ;;  %4771 = vrsqrt.f32 %v2017_v13 }
 0xb39   :  { %4773 = vrcp.f32 %v5978_v53 }
 0xb3a   :  { %v2040_v60 = vmul.f32 %v4756_v43, %v2027_v56  ;;  %4775 = vrcp.f32 %v5990_v41 }
 0xb3b   :  { %v4758_v62 = vpop.eup %4757 }
 0xb3c   :  { %v4760_v63 = vpop.eup %4759  ;;  %v2051_v18 = vmul.f32 %v2040_v60, %v5919_v36  ;;  %v2030_v47 = vmul.f32 %v4758_v62, %v2000_v34 }
 0xb3d   :  { %v4762_v10 = vpop.eup %4761 }
 0xb3e   :  { %v4764_v52 = vpop.eup %4763  ;;  %v2072_v36 = vrot.slane %v2051_v18, %v5520_v21  ;;  %v2158_v23 = vrot.slane %v2051_v18, %v5526_v25  ;;  %v2291_v2 = vrot.slane %v2051_v18, %v5535_v37  ;;  %v2424_v12 = vrot.slane %v2051_v18, %v7292_v8 }
 0xb3f   :  { %v2046_v39 = vmul.f32 %v4760_v63, %v2030_v47  ;;  %v2031_v11 = vmul.f32 %v4764_v52, %v2007_v30  ;;  %v2032_v51 = vmul.f32 %v4762_v10, %v2014_v0  ;;  %v4766_v14 = vpop.eup %4765 }
 0xb40   :  { %v2093_v40 = vmul.f32 %v2072_v36, %v5962_v32  ;;  %v2099_v42 = vmul.f32 %v2072_v36, %v5964_v35  ;;  %v2105_v27 = vmul.f32 %v2072_v36, %v5966_v5  ;;  %v2111_v34 = vmul.f32 %v2072_v36, %v5968_v6  ;;  %v4768_v63 = vpop.eup %4767 }
 0xb41   :  { %v2179_v57 = vmul.f32 %v2158_v23, %v5970_v9  ;;  %v2185_v58 = vmul.f32 %v2158_v23, %v5973_v45  ;;  %v2191_v30 = vmul.f32 %v2158_v23, %v5980_v19  ;;  %v2197_v0 = vmul.f32 %v2158_v23, %v5982_v31 }
 0xb42   :  { %v2312_v38 = vmul.f32 %v2291_v2, %v5984_v46  ;;  %v2318_v24 = vmul.f32 %v2291_v2, %v5992_v50  ;;  %v2324_v59 = vmul.f32 %v2291_v2, %v5994_v4  ;;  %v2330_v26 = vmul.f32 %v2291_v2, %v5996_v54 }
 0xb43   :  { %v2227_v44 = vadd.f32 %v2179_v57, %v2093_v40  ;;  %v2233_v29 = vadd.f32 %v2185_v58, %v2099_v42  ;;  %v2239_v28 = vadd.f32 %v2191_v30, %v2105_v27  ;;  %v2245_v1 = vadd.f32 %v2197_v0, %v2111_v34 }
 0xb44   :  { %v2445_v56 = vmul.f32 %v2424_v12, %v5999_v49  ;;  %v2451_v43 = vmul.f32 %v2424_v12, %v2412_v22  ;;  %v2457_v60 = vmul.f32 %v2424_v12, %v2415_v7  ;;  %v2463_v62 = vmul.f32 %v2424_v12, %v2418_v55 }
 0xb45   :  { %v2360_v18 = vadd.f32 %v2312_v38, %v2227_v44  ;;  %v2366_v47 = vadd.f32 %v2318_v24, %v2233_v29  ;;  %v2372_v10 = vadd.f32 %v2324_v59, %v2239_v28  ;;  %v2378_v52 = vadd.f32 %v2330_v26, %v2245_v1  ;;  %v6059_v28 = vld [vmem:[#allocation10 + $0x40] sm:$0xff]  ;;  %v4770_v1 = vpop.eup %4769 }
 0xb46   :  { %v2054_v36 = vmul.f32 %v2046_v39, %v5928_v16  ;;  %v2048_v23 = vmul.f32 %v4766_v14, %v2031_v11  ;;  %v2050_v33 = vmul.f32 %v4768_v63, %v2032_v51  ;;  %v6061_v14 = vld [vmem:[#allocation10 + $0x38] sm:$0xff] }
 0xb47   :  { %v6015_v2 = vadd.f32 %v2445_v56, %v2360_v18  ;;  %v6017_v40 = vadd.f32 %v2451_v43, %v2366_v47  ;;  %v6019_v42 = vadd.f32 %v2457_v60, %v2372_v10  ;;  %v6021_v27 = vadd.f32 %v2463_v62, %v2378_v52  ;;  %v6082_v18 = vld [vmem:[#allocation10 + $0x68] sm:$0xff]  ;;  %v6084_v47 = vld [vmem:[#allocation10 + $0x80] sm:$0xff]  ;;  %v4772_v10 = vpop.eup %4771  ;;  %v6086_v52 = vld [vmem:[#allocation10 + $0x98] sm:$0xff] }
 0xb48   :  { %v2084_v12 = vrot.slane %v2054_v36, %v5520_v21  ;;  %v2170_v34 = vrot.slane %v2054_v36, %v5526_v25  ;;  %v2303_v57 = vrot.slane %v2054_v36, %v5535_v37  ;;  %v2436_v16 = vrot.slane %v2054_v36, %v7292_v8  ;;  %v6088_v36 = vld [vmem:[#allocation10 + $0xb0] sm:$0xff] }
 0xb49   :  { %7293 = vst [vmem:[#allocation20_spill] sm:$0xff] %v6017_v40  ;;  %7294 = vst [vmem:[#allocation21_spill] sm:$0xff] %v6019_v42  ;;  %v6032_v15 = vmul.f32 %v2048_v23, %v5938_v61  ;;  %v6035_v39 = vmul.f32 %v2050_v33, %v5933_v3 }
 0xb4a   :  { %7295 = vst [vmem:[#allocation22_spill] sm:$0xff] %v6021_v27  ;;  %2517 = vst [vmem:[#allocation2] sm:$0xff] %v6015_v2  ;;  %v2096_v13 = vmul.f32 %v2084_v12, %v5962_v32  ;;  %v2102_v11 = vmul.f32 %v2084_v12, %v5964_v35  ;;  %v2108_v51 = vmul.f32 %v2084_v12, %v5966_v5 }
 0xb4b   :  { %2523 = vst [vmem:[#allocation2 + $0x30] sm:$0xff] %v6017_v40  ;;  %2529 = vst [vmem:[#allocation2 + $0x60] sm:$0xff] %v6019_v42  ;;  %v2114_v58 = vmul.f32 %v2084_v12, %v5968_v6  ;;  %v2182_v30 = vmul.f32 %v2170_v34, %v5970_v9  ;;  %v2188_v0 = vmul.f32 %v2170_v34, %v5973_v45 }
 0xb4c   :  { %2535 = vst [vmem:[#allocation2 + $0x90] sm:$0xff] %v6021_v27  ;;  %v2194_v61 = vmul.f32 %v2170_v34, %v5980_v19  ;;  %v2200_v38 = vmul.f32 %v2170_v34, %v5982_v31  ;;  %v2315_v3 = vmul.f32 %v2303_v57, %v5984_v46  ;;  %v2321_v33 = vmul.f32 %v2303_v57, %v5992_v50  ;;  %v6051_v19 = vld [vmem:[#allocation10 + $0x10] sm:$0xff]  ;;  %v6053_v31 = vld [vmem:[#allocation10 + $0x28] sm:$0xff] }
 0xb4d   :  { %v2327_v32 = vmul.f32 %v2303_v57, %v5994_v4  ;;  %v2333_v35 = vmul.f32 %v2303_v57, %v5996_v54  ;;  %v2230_v53 = vadd.f32 %v2182_v30, %v2096_v13  ;;  %v2236_v5 = vadd.f32 %v2188_v0, %v2102_v11  ;;  %v6055_v4 = vld [vmem:[#allocation10 + $0x8] sm:$0xff]  ;;  %v6057_v54 = vld [vmem:[#allocation10 + $0x20] sm:$0xff]  ;;  %v4774_v57 = vpop.eup %4773 }
 0xb4e   :  { %v2242_v24 = vadd.f32 %v2194_v61, %v2108_v51  ;;  %v2248_v6 = vadd.f32 %v2200_v38, %v2114_v58  ;;  %v2448_v9 = vmul.f32 %v2436_v16, %v5999_v49  ;;  %v2454_v59 = vmul.f32 %v2436_v16, %v2412_v22  ;;  %v6063_v49 = vld [vmem:[#allocation10 + $0x50] sm:$0xff]  ;;  %v6065_v22 = vld [vmem:[#allocation10 + $0x58] sm:$0xff]  ;;  %v6106_v0 = vld [vmem:[#allocation10 + $0xc8] sm:$0xff] }
 0xb4f   :  { %v2460_v45 = vmul.f32 %v2436_v16, %v2415_v7  ;;  %v2466_v26 = vmul.f32 %v2436_v16, %v2418_v55  ;;  %v2363_v46 = vadd.f32 %v2315_v3, %v2230_v53  ;;  %v2369_v44 = vadd.f32 %v2321_v33, %v2236_v5  ;;  %v6108_v61 = vld [vmem:[#allocation10 + $0xe0] sm:$0xff]  ;;  %v6119_v53 = vld [vmem:[#allocation10 + $0xf8] sm:$0xff]  ;;  %v6121_v5 = vld [vmem:[#allocation10 + $0x110] sm:$0xff] }
 0xb50   :  { %v2375_v50 = vadd.f32 %v2327_v32, %v2242_v24  ;;  %v2381_v29 = vadd.f32 %v2333_v35, %v2248_v6  ;;  %v2088_v7 = vrot.slane %v6032_v15, %v5520_v21  ;;  %v2092_v55 = vrot.slane %v6035_v39, %v5520_v21  ;;  %v6117_v35 = vld [vmem:[#allocation10 + $0x70] sm:$0xff] }
 0xb51   :  { %v2174_v56 = vrot.slane %v6032_v15, %v5526_v25  ;;  %v6074_v43 = vadd.f32 %v2448_v9, %v2363_v46  ;;  %v6076_v60 = vadd.f32 %v2454_v59, %v2369_v44  ;;  %v2178_v38 = vrot.slane %v6035_v39, %v5526_v25  ;;  %v6125_v59 = vld [vmem:[#allocation10 + $0x88] sm:$0xff]  ;;  %v6131_v44 = vld [vmem:[#allocation10 + $0xb8] sm:$0xff] }
 0xb52   :  { %v6078_v62 = vadd.f32 %v2460_v45, %v2375_v50  ;;  %v6080_v63 = vadd.f32 %v2466_v26, %v2381_v29  ;;  %v2097_v23 = vmul.f32 %v2088_v7, %v6055_v4  ;;  %v2098_v41 = vmul.f32 %v2092_v55, %v6051_v19  ;;  %v6127_v45 = vld [vmem:[#allocation10 + $0xa0] sm:$0xff]  ;;  %v6133_v50 = vld [vmem:[#allocation10 + $0x128] sm:$0xff] }
 0xb53   :  { %7296 = vst [vmem:[#allocation23_spill] sm:$0xff] %v6076_v60  ;;  %v2103_v12 = vmul.f32 %v2088_v7, %v6057_v54  ;;  %v2104_v34 = vmul.f32 %v2092_v55, %v6053_v31  ;;  %2520 = vst [vmem:[#allocation2 + $0x18] sm:$0xff] %v6074_v43  ;;  %v2109_v16 = vmul.f32 %v2088_v7, %v6061_v14 }
 0xb54   :  { %7297 = vst [vmem:[#allocation24_spill] sm:$0xff] %v6078_v62  ;;  %7298 = vst [vmem:[#allocation25_spill] sm:$0xff] %v6080_v63  ;;  %v2110_v13 = vmul.f32 %v2092_v55, %v6059_v28  ;;  %v2115_v11 = vmul.f32 %v2088_v7, %v6063_v49  ;;  %v2116_v51 = vmul.f32 %v2092_v55, %v6065_v22  ;;  %v6138_v55 = vld [vmem:[#allocation10 + $0x140] sm:$0xff] }
 0xb55   :  { %2526 = vst [vmem:[#allocation2 + $0x48] sm:$0xff] %v6076_v60  ;;  %2532 = vst [vmem:[#allocation2 + $0x78] sm:$0xff] %v6078_v62  ;;  %v2183_v58 = vmul.f32 %v2174_v56, %v6082_v18  ;;  %v2189_v30 = vmul.f32 %v2174_v56, %v6084_v47  ;;  %v2195_v3 = vmul.f32 %v2174_v56, %v6086_v52 }
 0xb56   :  { %2538 = vst [vmem:[#allocation2 + $0xa8] sm:$0xff] %v6080_v63  ;;  %2123 = vst.msk [vmem:[#allocation2 + $0x28] sm:$0xff] %vm2119_vm14, %v2098_v41  ;;  %v2201_v33 = vmul.f32 %v2174_v56, %v6088_v36  ;;  %v2028_v32 = vmul.f32 %v4770_v1, %v5958_v48  ;;  %v2307_v9 = vrot.slane %v6032_v15, %v5535_v37  ;;  %v6140_v56 = vld [vmem:[#allocation10 + $0x158] sm:$0xff] }
 0xb57   :  { %2129 = vst.msk [vmem:[#allocation2 + $0x58] sm:$0xff] %vm2119_vm14, %v2104_v34  ;;  %2135 = vst.msk [vmem:[#allocation2 + $0x88] sm:$0xff] %vm2119_vm14, %v2110_v13  ;;  %v2231_v24 = vadd.f32 %v2183_v58, %v2097_v23  ;;  %v2237_v6 = vadd.f32 %v2189_v30, %v2103_v12  ;;  %v2243_v26 = vadd.f32 %v2195_v3, %v2109_v16  ;;  %v4776_v34 = vpop.eup %4775  ;;  %v6145_v16 = vld [vmem:[#allocation10 + $0x170] sm:$0xff] }
 0xb58   :  { %2141 = vst.msk [vmem:[#allocation2 + $0xb8] sm:$0xff] %vm2119_vm14, %v2116_v51  ;;  %v2249_v46 = vadd.f32 %v2201_v33, %v2115_v11  ;;  %v2440_v48 = vrot.slane %v6032_v15, %v7292_v8  ;;  %v2316_v29 = vmul.f32 %v2307_v9, %v6106_v0  ;;  %v2322_v1 = vmul.f32 %v2307_v9, %v6108_v61 }
 0xb59   :  { %v2029_v7 = vmul.f32 %v4772_v10, %v5960_v20  ;;  %v2184_v23 = vmul.f32 %v2178_v38, %v6117_v35  ;;  %v2328_v41 = vmul.f32 %v2307_v9, %v6119_v53  ;;  %v2334_v15 = vmul.f32 %v2307_v9, %v6121_v5 }
 0xb5a   :  { %v2042_v12 = vmul.f32 %v4774_v57, %v2028_v32  ;;  %v2190_v13 = vmul.f32 %v2178_v38, %v6125_v59  ;;  %v2196_v11 = vmul.f32 %v2178_v38, %v6127_v45  ;;  %v2364_v51 = vadd.f32 %v2316_v29, %v2231_v24 }
 0xb5b   :  { %v2370_v20 = vadd.f32 %v2322_v1, %v2237_v6  ;;  %v2202_v10 = vmul.f32 %v2178_v38, %v6131_v44  ;;  %v2376_v3 = vadd.f32 %v2328_v41, %v2243_v26  ;;  %v2382_v33 = vadd.f32 %v2334_v15, %v2249_v46  ;;  %v6156_v6 = vld [vmem:[#allocation10 + $0xd0] sm:$0xff]  ;;  %v6170_v41 = vld [vmem:[#allocation10 + $0x118] sm:$0xff] }
 0xb5c   :  { %v2449_v63 = vmul.f32 %v2440_v48, %v6133_v50  ;;  %v2455_v62 = vmul.f32 %v2440_v48, %v6138_v55  ;;  %v2461_v42 = vmul.f32 %v2440_v48, %v6140_v56  ;;  %v2311_v24 = vrot.slane %v6035_v39, %v5535_v37 }
 0xb5d   :  { %v2208_v58 = vld [vmem:[#allocation2 + $0x28] sm:$0xff]  ;;  %v2467_v38 = vmul.f32 %v2440_v48, %v6145_v16  ;;  %v2044_v1 = vmul.f32 %v4776_v34, %v2029_v7  ;;  %v2444_v48 = vrot.slane %v6035_v39, %v7292_v8  ;;  %v7299_v7 = vld [vmem:[#allocation19_spill] sm:$0xff] }
 0xb5e   :  { %v2214_v30 = vld [vmem:[#allocation2 + $0x58] sm:$0xff]  ;;  %v2220_v27 = vld [vmem:[#allocation2 + $0x88] sm:$0xff]  ;;  %v2232_v57 = vadd.f32 %v2208_v58, %v2184_v23  ;;  %v6160_v26 = vadd.f32 %v2449_v63, %v2364_v51  ;;  %v6162_v46 = vadd.f32 %v2455_v62, %v2370_v20  ;;  %v6164_v29 = vadd.f32 %v2461_v42, %v2376_v3  ;;  %v6168_v23 = vld [vmem:[#allocation10 + $0x100] sm:$0xff] }
 0xb5f   :  { %v2226_v9 = vld [vmem:[#allocation2 + $0xb8] sm:$0xff]  ;;  %v2238_v32 = vadd.f32 %v2214_v30, %v2190_v13  ;;  %v2244_v60 = vadd.f32 %v2220_v27, %v2196_v11  ;;  %v6176_v63 = vadd.f32 %v2467_v38, %v2382_v33  ;;  %v2052_v62 = vmul.f32 %v2042_v12, %v5948_v17  ;;  %v6179_v42 = vld [vmem:[#allocation10 + $0x130] sm:$0xff] }
 0xb60   :  { %v2250_v40 = vadd.f32 %v2226_v9, %v2202_v10  ;;  %2256 = vst.msk [vmem:[#allocation2 + $0x28] sm:$0xff] %vm2119_vm14, %v2232_v57  ;;  %v6166_v27 = vld [vmem:[#allocation10 + $0xe8] sm:$0xff]  ;;  %2521 = vst [vmem:[#allocation2 + $0x20] sm:$0xff] %v6160_v26  ;;  %v6185_v15 = vmul.f32 %v2044_v1, %v7299_v7  ;;  %v2329_v12 = vmul.f32 %v2311_v24, %v6168_v23  ;;  %v6212_v1 = vld [vmem:[#allocation10 + $0x160] sm:$0xff] }
 0xb61   :  { %2262 = vst.msk [vmem:[#allocation2 + $0x58] sm:$0xff] %vm2119_vm14, %v2238_v32  ;;  %2268 = vst.msk [vmem:[#allocation2 + $0x88] sm:$0xff] %vm2119_vm14, %v2244_v60  ;;  %v2076_v39 = vrot.slane %v2052_v62, %v5520_v21  ;;  %v2162_v60 = vrot.slane %v2052_v62, %v5526_v25  ;;  %v2323_v17 = vmul.f32 %v2311_v24, %v6166_v27  ;;  %v6196_v11 = vld [vmem:[#allocation10 + $0x148] sm:$0xff] }
 0xb62   :  { %2274 = vst.msk [vmem:[#allocation2 + $0xb8] sm:$0xff] %vm2119_vm14, %v2250_v40  ;;  %2527 = vst [vmem:[#allocation2 + $0x50] sm:$0xff] %v6162_v46  ;;  %v2317_v40 = vmul.f32 %v2311_v24, %v6156_v6  ;;  %v2335_v34 = vmul.f32 %v2311_v24, %v6170_v41  ;;  %v2080_v13 = vrot.slane %v6185_v15, %v5520_v21 }
 0xb63   :  { %2533 = vst [vmem:[#allocation2 + $0x80] sm:$0xff] %v6164_v29  ;;  %2539 = vst [vmem:[#allocation2 + $0xb0] sm:$0xff] %v6176_v63  ;;  %v6199_v51 = vmul.f32 %v2444_v48, %v6179_v42  ;;  %v2094_v20 = vmul.f32 %v2076_v39, %v6055_v4  ;;  %v2100_v10 = vmul.f32 %v2076_v39, %v6057_v54 }
 0xb64   :  { %v2106_v58 = vmul.f32 %v2076_v39, %v6061_v14  ;;  %v2095_v30 = vmul.f32 %v2080_v13, %v6051_v19  ;;  %v2101_v3 = vmul.f32 %v2080_v13, %v6053_v31  ;;  %v2107_v33 = vmul.f32 %v2080_v13, %v6059_v28 }
 0xb65   :  { %v2113_v9 = vmul.f32 %v2080_v13, %v6065_v22  ;;  %v2112_v24 = vmul.f32 %v2076_v39, %v6063_v49  ;;  %v2180_v38 = vmul.f32 %v2162_v60, %v6082_v18  ;;  %v2186_v4 = vmul.f32 %v2162_v60, %v6084_v47  ;;  %v6220_v22 = vld [vmem:[#allocation10 + $0x178] sm:$0xff] }
 0xb66   :  { %v2295_v54 = vrot.slane %v2052_v62, %v5535_v37  ;;  %v2456_v28 = vmul.f32 %v2444_v48, %v6196_v11  ;;  %2120 = vst.msk [vmem:[#allocation2 + $0x10] sm:$0xff] %vm2119_vm14, %v2095_v30  ;;  %2126 = vst.msk [vmem:[#allocation2 + $0x40] sm:$0xff] %vm2119_vm14, %v2101_v3  ;;  %v2192_v49 = vmul.f32 %v2162_v60, %v6086_v52 }
 0xb67   :  { %v2341_v57 = vld [vmem:[#allocation2 + $0x28] sm:$0xff]  ;;  %2132 = vst.msk [vmem:[#allocation2 + $0x70] sm:$0xff] %vm2119_vm14, %v2107_v33  ;;  %2138 = vst.msk [vmem:[#allocation2 + $0xa0] sm:$0xff] %vm2119_vm14, %v2113_v9  ;;  %v2198_v39 = vmul.f32 %v2162_v60, %v6088_v36  ;;  %v2228_v13 = vadd.f32 %v2180_v38, %v2094_v20  ;;  %v2234_v30 = vadd.f32 %v2186_v4, %v2100_v10 }
 0xb68   :  { %v2347_v32 = vld [vmem:[#allocation2 + $0x58] sm:$0xff]  ;;  %v2353_v14 = vld [vmem:[#allocation2 + $0x88] sm:$0xff]  ;;  %v2365_v7 = vadd.f32 %v2341_v57, %v2317_v40  ;;  %v2166_v40 = vrot.slane %v6185_v15, %v5526_v25  ;;  %v2240_v3 = vadd.f32 %v2192_v49, %v2106_v58  ;;  %v2428_v33 = vrot.slane %v2052_v62, %v7292_v8 }
 0xb69   :  { %v2359_v19 = vld [vmem:[#allocation2 + $0xb8] sm:$0xff]  ;;  %v2371_v31 = vadd.f32 %v2347_v32, %v2323_v17  ;;  %v2377_v18 = vadd.f32 %v2353_v14, %v2329_v12  ;;  %v2544_v17 = vpop.xlane.xlu0 %2543  ;;  %v2462_v52 = vmul.f32 %v2444_v48, %v6212_v1  ;;  %v2246_v12 = vadd.f32 %v2198_v39, %v2112_v24 }
 0xb6a   :  { %v2383_v47 = vadd.f32 %v2359_v19, %v2335_v34  ;;  %2389 = vst.msk [vmem:[#allocation2 + $0x28] sm:$0xff] %vm2119_vm14, %v2365_v7  ;;  %v2313_v34 = vmul.f32 %v2295_v54, %v6106_v0  ;;  %v2319_v36 = vmul.f32 %v2295_v54, %v6108_v61  ;;  %v2468_v60 = vmul.f32 %v2444_v48, %v6220_v22 }
 0xb6b   :  { %2395 = vst.msk [vmem:[#allocation2 + $0x58] sm:$0xff] %vm2119_vm14, %v2371_v31  ;;  %2401 = vst.msk [vmem:[#allocation2 + $0x88] sm:$0xff] %vm2119_vm14, %v2377_v18  ;;  %v2325_v9 = vmul.f32 %v2295_v54, %v6119_v53  ;;  %v2331_v20 = vmul.f32 %v2295_v54, %v6121_v5  ;;  %4777 = vrcp.f32 %v2544_v17  ;;  %v2181_v62 = vmul.f32 %v2166_v40, %v6117_v35 }
 0xb6c   :  { %2407 = vst.msk [vmem:[#allocation2 + $0xb8] sm:$0xff] %vm2119_vm14, %v2383_v47  ;;  %v2187_v10 = vmul.f32 %v2166_v40, %v6125_v59  ;;  %v2361_v58 = vadd.f32 %v2313_v34, %v2228_v13  ;;  %v2367_v57 = vadd.f32 %v2319_v36, %v2234_v30  ;;  %v2193_v32 = vmul.f32 %v2166_v40, %v6127_v45 }
 0xb6d   :  { %v2373_v24 = vadd.f32 %v2325_v9, %v2240_v3  ;;  %v2379_v38 = vadd.f32 %v2331_v20, %v2246_v12  ;;  %v2446_v0 = vmul.f32 %v2428_v33, %v6133_v50  ;;  %v2199_v61 = vmul.f32 %v2166_v40, %v6131_v44  ;;  %v2205_v48 = vld [vmem:[#allocation2 + $0x10] sm:$0xff]  ;;  %v2211_v4 = vld [vmem:[#allocation2 + $0x40] sm:$0xff] }
 0xb6e   :  { %v2217_v53 = vld [vmem:[#allocation2 + $0x70] sm:$0xff]  ;;  %v2452_v5 = vmul.f32 %v2428_v33, %v6138_v55  ;;  %v2458_v54 = vmul.f32 %v2428_v33, %v6140_v56  ;;  %v2464_v35 = vmul.f32 %v2428_v33, %v6145_v16  ;;  %v2223_v59 = vld [vmem:[#allocation2 + $0xa0] sm:$0xff]  ;;  %v2229_v14 = vadd.f32 %v2205_v48, %v2181_v62 }
 0xb6f   :  { %v2235_v19 = vadd.f32 %v2211_v4, %v2187_v10  ;;  %v2241_v7 = vadd.f32 %v2217_v53, %v2193_v32  ;;  %v6244_v45 = vadd.f32 %v2446_v0, %v2361_v58  ;;  %v2247_v50 = vadd.f32 %v2223_v59, %v2199_v61 }
 0xb70   :  { %v6246_v18 = vadd.f32 %v2452_v5, %v2367_v57  ;;  %v6248_v44 = vadd.f32 %v2458_v54, %v2373_v24  ;;  %v6250_v47 = vadd.f32 %v2464_v35, %v2379_v38  ;;  %2253 = vst.msk [vmem:[#allocation2 + $0x10] sm:$0xff] %vm2119_vm14, %v2229_v14 }
 0xb71   :  { %v2474_v31 = vld [vmem:[#allocation2 + $0x28] sm:$0xff]  ;;  %2259 = vst.msk [vmem:[#allocation2 + $0x40] sm:$0xff] %vm2119_vm14, %v2235_v19  ;;  %2265 = vst.msk [vmem:[#allocation2 + $0x70] sm:$0xff] %vm2119_vm14, %v2241_v7 }
 0xb72   :  { %v2480_v49 = vld [vmem:[#allocation2 + $0x58] sm:$0xff]  ;;  %v2486_v55 = vld [vmem:[#allocation2 + $0x88] sm:$0xff]  ;;  %v2498_v56 = vadd.f32 %v2474_v31, %v6199_v51  ;;  %2518 = vst [vmem:[#allocation2 + $0x8] sm:$0xff] %v6244_v45  ;;  %2271 = vst.msk [vmem:[#allocation2 + $0xa0] sm:$0xff] %vm2119_vm14, %v2247_v50  ;;  %v2299_v51 = vrot.slane %v6185_v15, %v5535_v37 }
 0xb73   :  { %v2492_v40 = vld [vmem:[#allocation2 + $0xb8] sm:$0xff]  ;;  %v2504_v16 = vadd.f32 %v2480_v49, %v2456_v28  ;;  %v2510_v39 = vadd.f32 %v2486_v55, %v2462_v52  ;;  %2524 = vst [vmem:[#allocation2 + $0x38] sm:$0xff] %v6246_v18  ;;  %2530 = vst [vmem:[#allocation2 + $0x68] sm:$0xff] %v6248_v44  ;;  %v7301_v50 = vld [vmem:[#allocation23_spill] sm:$0xff] }
 0xb74   :  { %v2516_v17 = vadd.f32 %v2492_v40, %v2468_v60  ;;  %2536 = vst [vmem:[#allocation2 + $0x98] sm:$0xff] %v6250_v47  ;;  %2522 = vst.msk [vmem:[#allocation2 + $0x28] sm:$0xff] %vm2119_vm14, %v2498_v56  ;;  %v2314_v13 = vmul.f32 %v2299_v51, %v6156_v6  ;;  %v2320_v30 = vmul.f32 %v2299_v51, %v6166_v27 }
 0xb75   :  { %2528 = vst.msk [vmem:[#allocation2 + $0x58] sm:$0xff] %vm2119_vm14, %v2504_v16  ;;  %2534 = vst.msk [vmem:[#allocation2 + $0x88] sm:$0xff] %vm2119_vm14, %v2510_v39  ;;  %v6267_v28 = vpop.eup %4777  ;;  %v2326_v3 = vmul.f32 %v2299_v51, %v6168_v23  ;;  %v2332_v33 = vmul.f32 %v2299_v51, %v6170_v41  ;;  %v2432_v41 = vrot.slane %v6185_v15, %v7292_v8 }
 0xb76   :  { %2540 = vst.msk [vmem:[#allocation2 + $0xb8] sm:$0xff] %vm2119_vm14, %v2516_v17  ;;  %v2574_v36 = vmul.f32 %v6267_v28, %v6074_v43  ;;  %v2575_v60 = vmul.f32 %v6267_v28, %v6160_v26  ;;  %v2578_v14 = vmul.f32 %v6267_v28, %v6246_v18  ;;  %v2580_v55 = vmul.f32 %v6267_v28, %v7301_v50 }
 0xb77   :  { %v2338_v52 = vld [vmem:[#allocation2 + $0x10] sm:$0xff]  ;;  %v2447_v24 = vmul.f32 %v2432_v41, %v6179_v42  ;;  %v2453_v38 = vmul.f32 %v2432_v41, %v6196_v11  ;;  %v2459_v0 = vmul.f32 %v2432_v41, %v6212_v1  ;;  %v2465_v61 = vmul.f32 %v2432_v41, %v6220_v22  ;;  %v7300_v1 = vld [vmem:[#allocation20_spill] sm:$0xff] }
 0xb78   :  { %v2344_v12 = vld [vmem:[#allocation2 + $0x40] sm:$0xff]  ;;  %v2350_v34 = vld [vmem:[#allocation2 + $0x70] sm:$0xff]  ;;  %v2362_v20 = vadd.f32 %v2338_v52, %v2314_v13  ;;  %v2600_v23 = vadd.f32 %v2575_v60, %v2574_v36  ;;  %v2571_v42 = vmul.f32 %v6267_v28, %v6015_v2  ;;  %v2572_v11 = vmul.f32 %v6267_v28, %v6244_v45  ;;  %v7303_v60 = vld [vmem:[#allocation24_spill] sm:$0xff] }
 0xb79   :  { %v2356_v9 = vld [vmem:[#allocation2 + $0xa0] sm:$0xff]  ;;  %v2368_v62 = vadd.f32 %v2344_v12, %v2320_v30  ;;  %v2374_v10 = vadd.f32 %v2350_v34, %v2326_v3  ;;  %v2577_v22 = vmul.f32 %v6267_v28, %v7300_v1  ;;  %v2581_v13 = vmul.f32 %v6267_v28, %v6162_v46 }
 0xb7a   :  { %v2380_v6 = vadd.f32 %v2356_v9, %v2332_v33  ;;  %2386 = vst.msk [vmem:[#allocation2 + $0x10] sm:$0xff] %vm2119_vm14, %v2362_v20  ;;  %v2595_v31 = vadd.f32 %v2572_v11, %v2571_v42  ;;  %v7302_v30 = vld [vmem:[#allocation21_spill] sm:$0xff]  ;;  %v2584_v33 = vmul.f32 %v6267_v28, %v6248_v44  ;;  %v2586_v9 = vmul.f32 %v6267_v28, %v7303_v60 }
 0xb7b   :  { %v6277_v58 = vld [vmem:[#allocation2 + $0x28] sm:$0xff]  ;;  %2392 = vst.msk [vmem:[#allocation2 + $0x40] sm:$0xff] %vm2119_vm14, %v2368_v62  ;;  %2398 = vst.msk [vmem:[#allocation2 + $0x70] sm:$0xff] %vm2119_vm14, %v2374_v10  ;;  %v2605_v51 = vadd.f32 %v2578_v14, %v2577_v22  ;;  %v2583_v3 = vmul.f32 %v6267_v28, %v7302_v30  ;;  %v2587_v10 = vmul.f32 %v6267_v28, %v6164_v29 }
 0xb7c   :  { %v2576_v27 = vmul.f32 %v6267_v28, %v6277_v58  ;;  %2404 = vst.msk [vmem:[#allocation2 + $0xa0] sm:$0xff] %vm2119_vm14, %v2380_v6  ;;  %v6304_v19 = vld [vmem:[#allocation2 + $0x58] sm:$0xff]  ;;  %v6328_v52 = vld [vmem:[#allocation2 + $0x88] sm:$0xff]  ;;  %v2593_v11 = vmul.f32 %v6267_v28, %v6176_v63 }
 0xb7d   :  { %v2582_v39 = vmul.f32 %v6267_v28, %v6304_v19  ;;  %v7304_v6 = vld [vmem:[#allocation22_spill] sm:$0xff] }
 0xb7e   :  { %v2601_v57 = vsel %vm2119_vm14, %v2576_v27, 0.0  ;;  %v2589_v27 = vmul.f32 %v6267_v28, %v7304_v6 }
 0xb7f   :  { %v2602_v32 = vadd.f32 %v2601_v57, %v2600_v23  ;;  %v2611_v23 = vsel %vm2119_vm14, %v2582_v39, 0.0  ;;  %v2588_v57 = vmul.f32 %v6267_v28, %v6328_v52  ;;  %v7306_v39 = vld [vmem:[#allocation17_spill] sm:$0xff] }
 0xb81   :  { %2603 = vadd.xlane.f32.xlu0 %v2602_v32  ;;  %v2471_v48 = vld [vmem:[#allocation2 + $0x10] sm:$0xff] }
 0xb82   :  { %v2477_v4 = vld [vmem:[#allocation2 + $0x40] sm:$0xff]  ;;  %v2483_v53 = vld [vmem:[#allocation2 + $0x70] sm:$0xff]  ;;  %v2495_v54 = vadd.f32 %v2471_v48, %v2447_v24  ;;  %v2610_v24 = vadd.f32 %v2581_v13, %v2580_v55 }
 0xb83   :  { %v2489_v5 = vld [vmem:[#allocation2 + $0xa0] sm:$0xff]  ;;  %v2501_v35 = vadd.f32 %v2477_v4, %v2453_v38  ;;  %v2507_v59 = vadd.f32 %v2483_v53, %v2459_v0  ;;  %v2615_v38 = vadd.f32 %v2584_v33, %v2583_v3  ;;  %v2590_v0 = vmul.f32 %v6267_v28, %v6250_v47 }
 0xb84   :  { %v2513_v15 = vadd.f32 %v2489_v5, %v2465_v61  ;;  %2519 = vst.msk [vmem:[#allocation2 + $0x10] sm:$0xff] %vm2119_vm14, %v2495_v54  ;;  %v6348_v61 = vld [vmem:[#allocation2 + $0xb8] sm:$0xff]  ;;  %v2612_v48 = vadd.f32 %v2611_v23, %v2610_v24  ;;  %v2621_v53 = vsel %vm2119_vm14, %v2588_v57, 0.0  ;;  %v7305_v54 = vld [vmem:[#allocation25_spill] sm:$0xff] }
 0xb85   :  { %2525 = vst.msk [vmem:[#allocation2 + $0x40] sm:$0xff] %vm2119_vm14, %v2501_v35  ;;  %2531 = vst.msk [vmem:[#allocation2 + $0x70] sm:$0xff] %vm2119_vm14, %v2507_v59  ;;  %v2592_v35 = vmul.f32 %v6267_v28, %v7305_v54  ;;  %v2594_v59 = vmul.f32 %v6267_v28, %v6348_v61  ;;  %v2625_v42 = vadd.f32 %v2590_v0, %v2589_v27 }
 0xb86   :  { %2537 = vst.msk [vmem:[#allocation2 + $0xa0] sm:$0xff] %vm2119_vm14, %v2513_v15  ;;  %v2620_v15 = vadd.f32 %v2587_v10, %v2586_v9 }
 0xb87   :  { %v2630_v55 = vadd.f32 %v2593_v11, %v2592_v35 }
 0xb88   :  { %v2622_v22 = vadd.f32 %v2621_v53, %v2620_v15 }
 0xb8b   :  { %v6306_v7 = vld [vmem:[#allocation2 + $0x10] sm:$0xff] }
 0xb8c   :  { %v6308_v49 = vld [vmem:[#allocation2 + $0x40] sm:$0xff]  ;;  %v6312_v40 = vld [vmem:[#allocation2 + $0x70] sm:$0xff]  ;;  %v2573_v56 = vmul.f32 %v6267_v28, %v6306_v7 }
 0xb8d   :  { %v2579_v16 = vmul.f32 %v6267_v28, %v6308_v49  ;;  %v2585_v17 = vmul.f32 %v6267_v28, %v6312_v40  ;;  %v6330_v12 = vld [vmem:[#allocation2 + $0xa0] sm:$0xff] }
 0xb8e   :  { %v2596_v34 = vsel %vm2119_vm14, %v2573_v56, 0.0  ;;  %v2591_v32 = vmul.f32 %v6267_v28, %v6330_v12 }
 0xb8f   :  { %v2606_v36 = vsel %vm2119_vm14, %v2579_v16, 0.0  ;;  %v2597_v20 = vadd.f32 %v2596_v34, %v2595_v31  ;;  %v2616_v41 = vsel %vm2119_vm14, %v2585_v17, 0.0  ;;  %v2631_v31 = vsel %vm2119_vm14, %v2594_v59, 0.0  ;;  %v7307_v17 = vld [vmem:[#allocation16_spill] sm:$0xff] }
 0xb90   :  { %v2607_v62 = vadd.f32 %v2606_v36, %v2605_v51  ;;  %v2617_v4 = vadd.f32 %v2616_v41, %v2615_v38  ;;  %v2626_v5 = vsel %vm2119_vm14, %v2591_v32, 0.0  ;;  %v2632_v56 = vadd.f32 %v2631_v31, %v2630_v55 }
 0xb91   :  { %2598 = vadd.xlane.f32.xlu1 %v2597_v20  ;;  %v2627_v14 = vadd.f32 %v2626_v5, %v2625_v42  ;;  %v6361_v51 = vsub.s32 %v7307_v17, %v7306_v39 }
 0xb92   :  { %2608 = vadd.xlane.f32.xlu0 %v2607_v62 }
 0xb95   :  { %2613 = vadd.xlane.f32.xlu1 %v2612_v48 }
 0xb96   :  { %2618 = vadd.xlane.f32.xlu0 %v2617_v4 }
 0xb99   :  { %2623 = vadd.xlane.f32.xlu1 %v2622_v22 }
 0xb9a   :  { %2628 = vadd.xlane.f32.xlu0 %v2627_v14 }
 0xb9d   :  { %2633 = vadd.xlane.f32.xlu1 %v2632_v56 }
 0xc0e   :  { %v2604_v16 = vpop.xlane.xlu0 %2603 }
 0xc0f   :  { %v2636_v13 = vmul.f32 %v2604_v16, %v2604_v16 }
 0xc11   :  { %v2658_v34 = vrot.slane %v2636_v13, %v6361_v51 }
 0xc1e   :  { %v2599_v3 = vpop.xlane.xlu1 %2598 }
 0xc1f   :  { %v2609_v33 = vpop.xlane.xlu0 %2608  ;;  %v2635_v28 = vmul.f32 %v2599_v3, %v2599_v3 }
 0xc20   :  { %v2637_v36 = vmul.f32 %v2609_v33, %v2609_v33 }
 0xc21   :  { %v2654_v9 = vrot.slane %v2635_v28, %v6361_v51 }
 0xc22   :  { %v2662_v20 = vrot.slane %v2637_v36, %v6361_v51  ;;  %v2614_v62 = vpop.xlane.xlu1 %2613 }
 0xc23   :  { %v2619_v10 = vpop.xlane.xlu0 %2618  ;;  %v2684_v27 = vsel %vm2683_vm5, %v2658_v34, %v2654_v9  ;;  %v2638_v23 = vmul.f32 %v2614_v62, %v2614_v62 }
 0xc24   :  { %v2639_v41 = vmul.f32 %v2619_v10, %v2619_v10  ;;  %v2686_v57 = vsel %vm2685_vm6, %v2662_v20, %v2684_v27  ;;  %v6380_v20 = vsub.s32 4, %v7306_v39 }
 0xc25   :  { %v2666_v32 = vrot.slane %v2638_v23, %v6361_v51 }
 0xc26   :  { %v2670_v24 = vrot.slane %v2639_v41, %v6361_v51  ;;  %v2624_v38 = vpop.xlane.xlu1 %2623  ;;  %v6385_v41 = vsub.s32 6, %v7306_v39 }
 0xc27   :  { %v2629_v0 = vpop.xlane.xlu0 %2628  ;;  %v2688_v48 = vsel %vm2687_vm2, %v2666_v32, %v2686_v57  ;;  %v2640_v4 = vmul.f32 %v2624_v38, %v2624_v38 }
 0xc28   :  { %v2641_v53 = vmul.f32 %v2629_v0, %v2629_v0  ;;  %v2690_v5 = vsel %vm2689_vm7, %v2670_v24, %v2688_v48  ;;  %7308 = vst [vmem:[#allocation19_spill] sm:$0xff] %v6385_v41 }
 0xc29   :  { %v2674_v35 = vrot.slane %v2640_v4, %v6361_v51  ;;  %v6390_v4 = vsub.s32 5, %v7306_v39 }
 0xc2a   :  { %v2678_v59 = vrot.slane %v2641_v53, %v6361_v51  ;;  %v2634_v15 = vpop.xlane.xlu1 %2633 }
 0xc2b   :  { %v2642_v42 = vmul.f32 %v2634_v15, %v2634_v15  ;;  %v2692_v11 = vsel %vm2691_vm9, %v2674_v35, %v2690_v5  ;;  %7309 = vst [vmem:[#allocation20_spill] sm:$0xff] %v6390_v4 }
 0xc2c   :  { %v2694_v22 = vsel %vm2693_vm10, %v2678_v59, %v2692_v11  ;;  %v6396_v11 = vsub.s32 7, %v7306_v39 }
 0xc2d   :  { %v2682_v14 = vrot.slane %v2642_v42, %v6361_v51 }
 0xc2e   :  { %7310 = vst [vmem:[#allocation23_spill] sm:$0xff] %v6396_v11 }
 0xc2f   :  { %v2696_v31 = vsel %vm2695_vm8, %v2682_v14, %v2694_v22 }
 0xc30   :  { %v2699_v55 = vsel %vm2698_vm11, %v2696_v31, 0.0 }
 0xc31   :  { %2700 = vadd.xlane.f32.xlu0 %v2699_v55 }
 0xcbe   :  { %v2701_v56 = vpop.xlane.xlu0 %2700 }
 0xcbf   :  { %v2702_v17 = vadd.f32 1e-09, %v2701_v56  ;;  %v2705_v13 = vadd.f32 1.0, %v2701_v56 }
 0xcc1   :  { %4779 = vrsqrt.f32 %v2702_v17 }
 0xcc2   :  { %4781 = vrcp.f32 %v2705_v13 }
 0xccb   :  { %v4780_v34 = vpop.eup %4779 }
 0xccc   :  { %v2704_v28 = vmul.f32 %v4780_v34, %v2701_v56  ;;  %v4782_v36 = vpop.eup %4781 }
 0xcce   :  { %v2707_v9 = vmul.f32 %v4782_v36, %v2704_v28 }
 0xcd0   :  { %v2716_v27 = vrot.slane %v2707_v9, %v5526_v25  ;;  %v2712_v23 = vrot.slane %v2707_v9, %v5520_v21  ;;  %v2728_v24 = vrot.slane %v2707_v9, %v6380_v20  ;;  %v2720_v48 = vrot.slane %v2707_v9, %v5535_v37 }
 0xcd1   :  { %v2736_v35 = vrot.slane %v2707_v9, %v6385_v41  ;;  %v2724_v59 = vrot.slane %v2707_v9, %v7292_v8  ;;  %v2740_v14 = vrot.slane %v2707_v9, %v6396_v11 }
 0xcd2   :  { %v2750_v57 = vmul.f32 %v2716_v27, %v2604_v16  ;;  %v2749_v32 = vmul.f32 %v2712_v23, %v2599_v3  ;;  %v2753_v53 = vmul.f32 %v2728_v24, %v2619_v10  ;;  %v2751_v5 = vmul.f32 %v2720_v48, %v2609_v33 }
 0xcd3   :  { %v2755_v42 = vmul.f32 %v2736_v35, %v2629_v0  ;;  %v2752_v16 = vmul.f32 %v2724_v59, %v2614_v62  ;;  %v2732_v3 = vrot.slane %v2707_v9, %v6390_v4  ;;  %v2756_v33 = vmul.f32 %v2740_v14, %v2634_v15 }
 0xcd4   :  { %2764 = vperm.xlu0 %4552, %v2750_v57   ;;  %2759 = vperm.xlu1 %4551, %v2749_v32  }
 0xcd5   :  { %v2754_v22 = vmul.f32 %v2732_v3, %v2624_v38 }
 0xcd8   :  { %2779 = vperm.xlu0 %4552, %v2753_v53   ;;  %2769 = vperm.xlu1 %4551, %v2751_v5  }
 0xcdc   :  { %2789 = vperm.xlu0 %4552, %v2755_v42   ;;  %2774 = vperm.xlu1 %4551, %v2752_v16  }
 0xce0   :  { %2784 = vperm.xlu1 %4551, %v2754_v22  }
 0xce4   :  { %2794 = vperm.xlu1 %4551, %v2756_v33  }
 0xd53   :  { %v2765_v10 = vpop.permute.xlu0 %2764  ;;  %v2760_v31 = vpop.permute.xlu1 %2759 }
 0xd54   :  { %v2800_v55 = vmul.f32 %v2765_v10, %v6074_v43  ;;  %v2801_v0 = vmul.f32 %v2765_v10, %v6160_v26  ;;  %v2802_v62 = vmul.f32 %v2765_v10, %v6277_v58  ;;  %v2797_v56 = vmul.f32 %v2760_v31, %v6015_v2 }
 0xd55   :  { %v2798_v39 = vmul.f32 %v2760_v31, %v6244_v45  ;;  %v2799_v17 = vmul.f32 %v2760_v31, %v6306_v7 }
 0xd56   :  { %v2840_v38 = vrot.slane %v2800_v55, 4  ;;  %v2846_v13 = vrot.slane %v2801_v0, 4  ;;  %v2852_v34 = vsel %vm2119_vm14, %v2802_v62, 0.0  ;;  %v2821_v15 = vrot.slane %v2797_v56, 4 }
 0xd57   :  { %v2853_v28 = vrot.slane %v2852_v34, 4  ;;  %v2827_v36 = vrot.slane %v2798_v39, 4  ;;  %v2833_v9 = vsel %vm2119_vm14, %v2799_v17, 0.0  ;;  %v2780_v43 = vpop.permute.xlu0 %2779 }
 0xd58   :  { %v2841_v27 = vadd.f32 %v2840_v38, %v2800_v55  ;;  %v2847_v26 = vadd.f32 %v2846_v13, %v2801_v0  ;;  %v2822_v23 = vadd.f32 %v2821_v15, %v2797_v56  ;;  %v2834_v58 = vrot.slane %v2833_v9, 4 }
 0xd59   :  { %v2854_v57 = vadd.f32 %v2853_v28, %v2852_v34  ;;  %v2828_v2 = vadd.f32 %v2827_v36, %v2798_v39  ;;  %v2809_v45 = vmul.f32 %v2780_v43, %v7302_v30  ;;  %v2810_v32 = vmul.f32 %v2780_v43, %v6248_v44  ;;  %v2770_v34 = vpop.permute.xlu1 %2769 }
 0xd5a   :  { %v2842_v24 = vrot.slane %v2841_v27, 2  ;;  %v2848_v48 = vrot.slane %v2847_v26, 2  ;;  %v2823_v53 = vrot.slane %v2822_v23, 2  ;;  %v2835_v5 = vadd.f32 %v2834_v58, %v2833_v9 }
 0xd5b   :  { %v2855_v35 = vrot.slane %v2854_v57, 2  ;;  %v2829_v59 = vrot.slane %v2828_v2, 2  ;;  %v2811_v42 = vmul.f32 %v2780_v43, %v6312_v40  ;;  %v2897_v16 = vrot.slane %v2809_v45, 4 }
 0xd5c   :  { %v2843_v3 = vadd.f32 %v2842_v24, %v2841_v27  ;;  %v2849_v22 = vadd.f32 %v2848_v48, %v2847_v26  ;;  %v2824_v14 = vadd.f32 %v2823_v53, %v2822_v23  ;;  %v2836_v33 = vrot.slane %v2835_v5, 2 }
 0xd5d   :  { %v2856_v10 = vadd.f32 %v2855_v35, %v2854_v57  ;;  %v2830_v31 = vadd.f32 %v2829_v59, %v2828_v2  ;;  %v2898_v55 = vadd.f32 %v2897_v16, %v2809_v45  ;;  %v2903_v0 = vrot.slane %v2810_v32, 4  ;;  %v2790_v2 = vpop.permute.xlu0 %2789 }
 0xd5e   :  { %v2844_v30 = vrot.slane %v2843_v3, 1  ;;  %v2850_v62 = vrot.slane %v2849_v22, 1  ;;  %v2825_v44 = vrot.slane %v2824_v14, 1  ;;  %v2837_v56 = vadd.f32 %v2836_v33, %v2835_v5 }
 0xd5f   :  { %v2857_v39 = vrot.slane %v2856_v10, 1  ;;  %v2831_v17 = vrot.slane %v2830_v31, 1  ;;  %v2899_v38 = vrot.slane %v2898_v55, 2  ;;  %v2904_v13 = vadd.f32 %v2903_v0, %v2810_v32 }
 0xd60   :  { %v6410_v15 = vadd.f32 %v2844_v30, %v2843_v3  ;;  %v6412_v40 = vadd.f32 %v2850_v62, %v2849_v22  ;;  %v6414_v28 = vadd.f32 %v2825_v44, %v2824_v14  ;;  %v2838_v36 = vrot.slane %v2837_v56, 1  ;;  %v2775_v22 = vpop.permute.xlu1 %2774 }
 0xd61   :  { %v6416_v9 = vadd.f32 %v2857_v39, %v2856_v10  ;;  %v6418_v43 = vadd.f32 %v2831_v17, %v2830_v31  ;;  %v2900_v27 = vadd.f32 %v2899_v38, %v2898_v55  ;;  %v2905_v26 = vrot.slane %v2904_v13, 2 }
 0xd62   :  { %v6420_v23 = vadd.f32 %v2838_v36, %v2837_v56  ;;  %v2909_v58 = vsel %vm2119_vm14, %v2811_v42, 0.0  ;;  %v2803_v57 = vmul.f32 %v2770_v34, %v7300_v1  ;;  %v3021_v45 = vsel %vm2683_vm5, %v6410_v15, %v6414_v28 }
 0xd63   :  { %v2901_v32 = vrot.slane %v2900_v27, 1  ;;  %v2906_v24 = vadd.f32 %v2905_v26, %v2904_v13  ;;  %v2910_v48 = vrot.slane %v2909_v58, 4  ;;  %v3028_v53 = vsel %vm2683_vm5, %v6412_v40, %v6418_v43 }
 0xd64   :  { %v2804_v5 = vmul.f32 %v2770_v34, %v6246_v18  ;;  %v2805_v35 = vmul.f32 %v2770_v34, %v6308_v49  ;;  %v2859_v59 = vrot.slane %v2803_v57, 4  ;;  %v6435_v1 = vsel %vm2683_vm5, %v6416_v9, %v6420_v23 }
 0xd65   :  { %v6437_v42 = vadd.f32 %v2901_v32, %v2900_v27  ;;  %v2911_v16 = vadd.f32 %v2910_v48, %v2909_v58  ;;  %v2815_v3 = vmul.f32 %v2790_v2, %v7304_v6  ;;  %v2816_v18 = vmul.f32 %v2790_v2, %v6250_v47 }
 0xd66   :  { %v2860_v14 = vadd.f32 %v2859_v59, %v2803_v57  ;;  %v2865_v33 = vrot.slane %v2804_v5, 4  ;;  %v2871_v10 = vsel %vm2119_vm14, %v2805_v35, 0.0  ;;  %v2907_v31 = vrot.slane %v2906_v24, 1 }
 0xd67   :  { %7311 = vst [vmem:[#allocation21_spill] sm:$0xff] %v6437_v42  ;;  %v2912_v49 = vrot.slane %v2911_v16, 2  ;;  %v2872_v55 = vrot.slane %v2871_v10, 4  ;;  %v2817_v0 = vmul.f32 %v2790_v2, %v6330_v12  ;;  %v2935_v44 = vrot.slane %v2815_v3, 4  ;;  %v2785_v12 = vpop.permute.xlu1 %2784 }
 0xd68   :  { %v2861_v30 = vrot.slane %v2860_v14, 2  ;;  %v2866_v62 = vadd.f32 %v2865_v33, %v2804_v5  ;;  %v2941_v56 = vrot.slane %v2816_v18, 4  ;;  %v2806_v38 = vmul.f32 %v2775_v22, %v7301_v50 }
 0xd69   :  { %v2913_v39 = vadd.f32 %v2912_v49, %v2911_v16  ;;  %v2873_v17 = vadd.f32 %v2872_v55, %v2871_v10  ;;  %v2947_v6 = vsel %vm2119_vm14, %v2817_v0, 0.0  ;;  %v2936_v36 = vadd.f32 %v2935_v44, %v2815_v3 }
 0xd6a   :  { %v2862_v13 = vadd.f32 %v2861_v30, %v2860_v14  ;;  %v2867_v34 = vrot.slane %v2866_v62, 2  ;;  %v2942_v27 = vadd.f32 %v2941_v56, %v2816_v18  ;;  %v2948_v58 = vrot.slane %v2947_v6, 4 }
 0xd6b   :  { %v2914_v47 = vrot.slane %v2913_v39, 1  ;;  %v2874_v26 = vrot.slane %v2873_v17, 2  ;;  %v2807_v57 = vmul.f32 %v2775_v22, %v6162_v46  ;;  %v2937_v48 = vrot.slane %v2936_v36, 2  ;;  %v2795_v56 = vpop.permute.xlu1 %2794 }
 0xd6c   :  { %v2863_v2 = vrot.slane %v2862_v13, 1  ;;  %v2868_v32 = vadd.f32 %v2867_v34, %v2866_v62  ;;  %v2943_v5 = vrot.slane %v2942_v27, 2  ;;  %v6446_v35 = vadd.f32 %v2907_v31, %v2906_v24 }
 0xd6d   :  { %v2875_v59 = vadd.f32 %v2874_v26, %v2873_v17  ;;  %v2949_v16 = vadd.f32 %v2948_v58, %v2947_v6  ;;  %v2808_v50 = vmul.f32 %v2775_v22, %v6304_v19  ;;  %v2938_v33 = vadd.f32 %v2937_v48, %v2936_v36 }
 0xd6e   :  { %7312 = vst [vmem:[#allocation24_spill] sm:$0xff] %v6446_v35  ;;  %v6449_v14 = vadd.f32 %v2863_v2, %v2862_v13  ;;  %v2869_v3 = vrot.slane %v2868_v32, 1  ;;  %v2944_v10 = vadd.f32 %v2943_v5, %v2942_v27  ;;  %v2878_v55 = vrot.slane %v2806_v38, 4 }
 0xd6f   :  { %v2876_v18 = vrot.slane %v2875_v59, 1  ;;  %v2950_v49 = vrot.slane %v2949_v16, 2  ;;  %v2884_v46 = vrot.slane %v2807_v57, 4  ;;  %v6451_v0 = vadd.f32 %v2914_v47, %v2913_v39 }
 0xd70   :  { %v6453_v30 = vadd.f32 %v2869_v3, %v2868_v32  ;;  %v2939_v62 = vrot.slane %v2938_v33, 1  ;;  %v2945_v24 = vrot.slane %v2944_v10, 1  ;;  %v3022_v19 = vsel %vm2685_vm6, %v6449_v14, %v3021_v45 }
 0xd71   :  { %7313 = vst [vmem:[#allocation22_spill] sm:$0xff] %v6451_v0  ;;  %v6455_v31 = vadd.f32 %v2876_v18, %v2875_v59  ;;  %v2879_v22 = vadd.f32 %v2878_v55, %v2806_v38  ;;  %v2885_v44 = vadd.f32 %v2884_v46, %v2807_v57  ;;  %v6463_v13 = vadd.f32 %v2950_v49, %v2949_v16 }
 0xd72   :  { %v3029_v17 = vsel %vm2685_vm6, %v6453_v30, %v3028_v53  ;;  %v6461_v6 = vadd.f32 %v2939_v62, %v2938_v33  ;;  %v2890_v39 = vsel %vm2119_vm14, %v2808_v50, 0.0  ;;  %v6466_v34 = vadd.f32 %v2945_v24, %v2944_v10 }
 0xd73   :  { %v2880_v36 = vrot.slane %v2879_v22, 2  ;;  %v2886_v27 = vrot.slane %v2885_v44, 2  ;;  %v2891_v47 = vrot.slane %v2890_v39, 4  ;;  %v2812_v26 = vmul.f32 %v2785_v12, %v7303_v60 }
 0xd74   :  { %7314 = vst [vmem:[#allocation25_spill] sm:$0xff] %v6461_v6  ;;  %7315 = vst [vmem:[#allocation17_spill] sm:$0xff] %v6466_v34  ;;  %v2813_v45 = vmul.f32 %v2785_v12, %v6164_v29  ;;  %v2814_v38 = vmul.f32 %v2785_v12, %v6328_v52  ;;  %v2818_v58 = vmul.f32 %v2795_v56, %v7305_v54  ;;  %v2952_v54 = vrot.slane %v6463_v13, 1 }
 0xd75   :  { %v2881_v53 = vadd.f32 %v2880_v36, %v2879_v22  ;;  %v2887_v57 = vadd.f32 %v2886_v27, %v2885_v44  ;;  %v2892_v2 = vadd.f32 %v2891_v47, %v2890_v39  ;;  %v2819_v32 = vmul.f32 %v2795_v56, %v6176_v63 }
 0xd76   :  { %v2916_v48 = vrot.slane %v2812_v26, 4  ;;  %v2922_v5 = vrot.slane %v2813_v45, 4  ;;  %v2928_v59 = vsel %vm2119_vm14, %v2814_v38, 0.0  ;;  %v2820_v16 = vmul.f32 %v2795_v56, %v6348_v61 }
 0xd77   :  { %v2882_v50 = vrot.slane %v2881_v53, 1  ;;  %v2888_v3 = vrot.slane %v2887_v57, 1  ;;  %v2893_v60 = vrot.slane %v2892_v2, 2  ;;  %v2929_v33 = vrot.slane %v2928_v59, 4 }
 0xd78   :  { %v2917_v29 = vadd.f32 %v2916_v48, %v2812_v26  ;;  %v2923_v10 = vadd.f32 %v2922_v5, %v2813_v45  ;;  %v2954_v52 = vrot.slane %v2818_v58, 4  ;;  %v2960_v12 = vrot.slane %v2819_v32, 4 }
 0xd79   :  { %v6476_v18 = vadd.f32 %v2882_v50, %v2881_v53  ;;  %v2894_v49 = vadd.f32 %v2893_v60, %v2892_v2  ;;  %v2930_v63 = vadd.f32 %v2929_v33, %v2928_v59  ;;  %v6478_v22 = vadd.f32 %v2888_v3, %v2887_v57 }
 0xd7a   :  { %v2918_v55 = vrot.slane %v2917_v29, 2  ;;  %v2924_v46 = vrot.slane %v2923_v10, 2  ;;  %v2955_v62 = vadd.f32 %v2954_v52, %v2818_v58  ;;  %v2961_v24 = vadd.f32 %v2960_v12, %v2819_v32 }
 0xd7b   :  { %7316 = vst [vmem:[#allocation16_spill] sm:$0xff] %v6478_v22  ;;  %v2895_v61 = vrot.slane %v2894_v49, 1  ;;  %v2931_v44 = vrot.slane %v2930_v63, 2  ;;  %v2966_v56 = vsel %vm2119_vm14, %v2820_v16, 0.0  ;;  %v3023_v53 = vsel %vm2687_vm2, %v6476_v18, %v3022_v19 }
 0xd7c   :  { %v2919_v39 = vadd.f32 %v2918_v55, %v2917_v29  ;;  %v2925_v36 = vadd.f32 %v2924_v46, %v2923_v10  ;;  %v2956_v27 = vrot.slane %v2955_v62, 2  ;;  %v2962_v47 = vrot.slane %v2961_v24, 2 }
 0xd7d   :  { %v6481_v26 = vadd.f32 %v2895_v61, %v2894_v49  ;;  %v2932_v45 = vadd.f32 %v2931_v44, %v2930_v63  ;;  %v2967_v38 = vrot.slane %v2966_v56, 4  ;;  %v3024_v59 = vsel %vm2689_vm7, %v6437_v42, %v3023_v53 }
 0xd7e   :  { %v2920_v2 = vrot.slane %v2919_v39, 1  ;;  %v2926_v58 = vrot.slane %v2925_v36, 1  ;;  %v2957_v32 = vadd.f32 %v2956_v27, %v2955_v62  ;;  %v2963_v57 = vadd.f32 %v2962_v47, %v2961_v24 }
 0xd7f   :  { %7317 = vst [vmem:[#allocation26_spill] sm:$0xff] %v6481_v26  ;;  %v2933_v48 = vrot.slane %v2932_v45, 1  ;;  %v2968_v5 = vadd.f32 %v2967_v38, %v2966_v56  ;;  %v3030_v16 = vsel %vm2687_vm2, %v6478_v22, %v3029_v17  ;;  %v3036_v52 = vsel %vm2685_vm6, %v6455_v31, %v6435_v1 }
 0xd80   :  { %v6489_v50 = vadd.f32 %v2920_v2, %v2919_v39  ;;  %v6491_v3 = vadd.f32 %v2926_v58, %v2925_v36  ;;  %v2958_v60 = vrot.slane %v2957_v32, 1  ;;  %v2964_v33 = vrot.slane %v2963_v57, 1 }
 0xd81   :  { %v6493_v29 = vadd.f32 %v2933_v48, %v2932_v45  ;;  %v2969_v19 = vrot.slane %v2968_v5, 2  ;;  %v3031_v10 = vsel %vm2689_vm7, %v6446_v35, %v3030_v16  ;;  %v3037_v1 = vsel %vm2687_vm2, %v6481_v26, %v3036_v52 }
 0xd82   :  { %7318 = vst [vmem:[#allocation27_spill] sm:$0xff] %v6489_v50  ;;  %7319 = vst [vmem:[#allocation28_spill] sm:$0xff] %v6491_v3  ;;  %v6500_v12 = vadd.f32 %v2958_v60, %v2957_v32  ;;  %v6502_v49 = vadd.f32 %v2964_v33, %v2963_v57  ;;  %v3025_v17 = vsel %vm2691_vm9, %v6489_v50, %v3024_v59 }
 0xd83   :  { %7320 = vst [vmem:[#allocation29_spill] sm:$0xff] %v6493_v29  ;;  %v3032_v63 = vsel %vm2691_vm9, %v6491_v3, %v3031_v10  ;;  %v2970_v55 = vadd.f32 %v2969_v19, %v2968_v5  ;;  %v3026_v46 = vsel %vm2693_vm10, %v6461_v6, %v3025_v17  ;;  %v3038_v44 = vsel %vm2689_vm7, %v6451_v0, %v3037_v1 }
 0xd84   :  { %7321 = vst [vmem:[#allocation30_spill] sm:$0xff] %v6500_v12  ;;  %7322 = vst [vmem:[#allocation31_spill] sm:$0xff] %v6502_v49  ;;  %v3033_v62 = vsel %vm2693_vm10, %v6466_v34, %v3032_v63  ;;  %v3027_v24 = vsel %vm2695_vm8, %v6500_v12, %v3026_v46  ;;  %v3039_v39 = vsel %vm2691_vm9, %v6493_v29, %v3038_v44 }
 0xd85   :  { %v3034_v61 = vsel %vm2695_vm8, %v6502_v49, %v3033_v62  ;;  %v2971_v56 = vrot.slane %v2970_v55, 1  ;;  %v6523_v36 = vadd.f32 %v2952_v54, %v6463_v13 }
 0xd86   :  { %v3046_v47 = vmax.f32 %v3027_v24, %v3034_v61 }
 0xd87   :  { %7323 = vst [vmem:[#allocation32_spill] sm:$0xff] %v6523_v36  ;;  %v6525_v27 = vadd.f32 %v2971_v56, %v2970_v55  ;;  %v3040_v45 = vsel %vm2693_vm10, %v6523_v36, %v3039_v39 }
 0xd89   :  { %7324 = vst [vmem:[#allocation33_spill] sm:$0xff] %v6525_v27  ;;  %v3041_v38 = vsel %vm2695_vm8, %v6525_v27, %v3040_v45 }
 0xd8a   :  { %v3045_v53 = vsel %vm2119_vm14, %v3041_v38, -inf }
 0xd8b   :  { %v3047_v2 = vmax.f32 %v3046_v47, %v3045_v53 }
 0xd8d   :  { %3048 = vmax.xlane.f32.xlu0 %v3047_v2 }
 0xe1a   :  { %v3049_v58 = vpop.xlane.xlu0 %3048 }
 0xe1b   :  { %v3051_v32 = vrot.slane %v3049_v58, 1  ;;  %v3066_v57 = vsub.f32 %v6414_v28, %v3049_v58  ;;  %v3067_v13 = vsub.f32 %v6418_v43, %v3049_v58  ;;  %v3052_v54 = vrot.slane %v3049_v58, 2 }
 0xe1c   :  { %v3068_v48 = vsub.f32 %v6420_v23, %v3049_v58  ;;  %v3053_v5 = vrot.slane %v3049_v58, 3  ;;  %v3054_v63 = vrot.slane %v3049_v58, 4  ;;  %v3055_v56 = vrot.slane %v3049_v58, 5 }
 0xe1d   :  { %v3090_v59 = vmul.f32 1.442695, %v3066_v57  ;;  %v3069_v16 = vsub.f32 %v6410_v15, %v3051_v32  ;;  %v3070_v60 = vsub.f32 %v6412_v40, %v3051_v32  ;;  %v3092_v33 = vmul.f32 1.442695, %v3067_v13 }
 0xe1e   :  { %v3071_v19 = vsub.f32 %v6416_v9, %v3051_v32  ;;  %v3094_v10 = vmul.f32 1.442695, %v3068_v48  ;;  %v3072_v52 = vsub.f32 %v6449_v14, %v3052_v54  ;;  %v3073_v17 = vsub.f32 %v6453_v30, %v3052_v54 }
 0xe1f   :  { %4783 = vpow2.f32 %v3090_v59  ;;  %v3074_v55 = vsub.f32 %v6455_v31, %v3052_v54  ;;  %v3075_v46 = vsub.f32 %v6476_v18, %v3053_v5  ;;  %v3096_v62 = vmul.f32 1.442695, %v3069_v16 }
 0xe20   :  { %4785 = vpow2.f32 %v3092_v33  ;;  %v3098_v1 = vmul.f32 1.442695, %v3070_v60  ;;  %v3100_v24 = vmul.f32 1.442695, %v3071_v19  ;;  %v3076_v61 = vsub.f32 %v6478_v22, %v3053_v5  ;;  %v6716_v22 = vld [vmem:[#allocation2 + $0x60] sm:$0xff] }
 0xe21   :  { %4787 = vpow2.f32 %v3094_v10  ;;  %v3102_v44 = vmul.f32 1.442695, %v3072_v52  ;;  %v3077_v39 = vsub.f32 %v6481_v26, %v3053_v5  ;;  %v3104_v47 = vmul.f32 1.442695, %v3073_v17  ;;  %v6706_v26 = vld [vmem:[#allocation2 + $0x28] sm:$0xff] }
 0xe22   :  { %4789 = vpow2.f32 %v3096_v62  ;;  %v3078_v45 = vsub.f32 %v6437_v42, %v3054_v63  ;;  %v3106_v38 = vmul.f32 1.442695, %v3074_v55  ;;  %v3079_v53 = vsub.f32 %v6446_v35, %v3054_v63  ;;  %v6676_v35 = vld [vmem:[#allocation2 + $0x8] sm:$0xff] }
 0xe23   :  { %4791 = vpow2.f32 %v3098_v1  ;;  %v3108_v2 = vmul.f32 1.442695, %v3075_v46  ;;  %v3056_v32 = vrot.slane %v3049_v58, 6  ;;  %v3080_v57 = vsub.f32 %v6451_v0, %v3054_v63 }
 0xe24   :  { %4793 = vpow2.f32 %v3100_v24  ;;  %v3110_v13 = vmul.f32 1.442695, %v3076_v61  ;;  %v3081_v54 = vsub.f32 %v6489_v50, %v3055_v56  ;;  %v3112_v48 = vmul.f32 1.442695, %v3077_v39 }
 0xe25   :  { %4795 = vpow2.f32 %v3102_v44  ;;  %v3082_v5 = vsub.f32 %v6491_v3, %v3055_v56  ;;  %v3114_v59 = vmul.f32 1.442695, %v3078_v45  ;;  %v3057_v16 = vrot.slane %v3049_v58, 7 }
 0xe26   :  { %4797 = vpow2.f32 %v3104_v47  ;;  %v3083_v60 = vsub.f32 %v6493_v29, %v3055_v56  ;;  %v3116_v33 = vmul.f32 1.442695, %v3079_v53  ;;  %v3084_v10 = vsub.f32 %v6461_v6, %v3056_v32 }
 0xe27   :  { %4799 = vpow2.f32 %v3106_v38  ;;  %v3118_v52 = vmul.f32 1.442695, %v3080_v57  ;;  %v3085_v63 = vsub.f32 %v6466_v34, %v3056_v32  ;;  %v3120_v55 = vmul.f32 1.442695, %v3081_v54 }
 0xe28   :  { %4801 = vpow2.f32 %v3108_v2  ;;  %v3086_v58 = vsub.f32 %v6523_v36, %v3056_v32  ;;  %v3122_v62 = vmul.f32 1.442695, %v3082_v5  ;;  %v3087_v24 = vsub.f32 %v6500_v12, %v3057_v16 }
 0xe29   :  { %v6550_v19 = vpop.eup %4783  ;;  %4803 = vpow2.f32 %v3110_v13  ;;  %v3124_v61 = vmul.f32 1.442695, %v3083_v60  ;;  %v3088_v56 = vsub.f32 %v6502_v49, %v3057_v16  ;;  %v3126_v39 = vmul.f32 1.442695, %v3084_v10 }
 0xe2a   :  { %v6553_v17 = vpop.eup %4785  ;;  %4805 = vpow2.f32 %v3112_v48  ;;  %v3089_v38 = vsub.f32 %v6525_v27, %v3057_v16  ;;  %v3128_v53 = vmul.f32 1.442695, %v3085_v63  ;;  %v3130_v57 = vmul.f32 1.442695, %v3086_v58 }
 0xe2b   :  { %v6556_v46 = vpop.eup %4787  ;;  %4807 = vpow2.f32 %v3114_v59  ;;  %v3132_v5 = vmul.f32 1.442695, %v3087_v24 }
 0xe2c   :  { %v6559_v1 = vpop.eup %4789  ;;  %4809 = vpow2.f32 %v3116_v33  ;;  %v3134_v33 = vmul.f32 1.442695, %v3088_v56 }
 0xe2d   :  { %v6562_v44 = vpop.eup %4791  ;;  %4811 = vpow2.f32 %v3118_v52  ;;  %v3162_v47 = vrot.slane %v6559_v1, 7 }
 0xe2e   :  { %v6566_v45 = vpop.eup %4793  ;;  %4813 = vpow2.f32 %v3120_v55  ;;  %v3176_v2 = vrot.slane %v6562_v44, 7  ;;  %v3136_v55 = vmul.f32 1.442695, %v3089_v38 }
 0xe2f   :  { %v6570_v32 = vpop.eup %4795  ;;  %4815 = vpow2.f32 %v3122_v62  ;;  %v3163_v13 = vsel %vm2683_vm5, %v3162_v47, %v6550_v19  ;;  %v3190_v54 = vrot.slane %v6566_v45, 7 }
 0xe30   :  { %v6575_v48 = vpop.eup %4797  ;;  %4817 = vpow2.f32 %v3124_v61  ;;  %v3164_v59 = vrot.slane %v6570_v32, 6  ;;  %v3177_v16 = vsel %vm2683_vm5, %v3176_v2, %v6553_v17 }
 0xe31   :  { %v6580_v60 = vpop.eup %4799  ;;  %4819 = vpow2.f32 %v3126_v39  ;;  %v3178_v10 = vrot.slane %v6575_v48, 6  ;;  %v3191_v52 = vsel %vm2683_vm5, %v3190_v54, %v6556_v46 }
 0xe32   :  { %v6585_v63 = vpop.eup %4801  ;;  %4821 = vpow2.f32 %v3128_v53  ;;  %v3165_v58 = vsel %vm2685_vm6, %v3164_v59, %v3163_v13  ;;  %v3192_v62 = vrot.slane %v6580_v60, 6 }
 0xe33   :  { %v6589_v24 = vpop.eup %4803  ;;  %4823 = vpow2.f32 %v3130_v57  ;;  %v3166_v61 = vrot.slane %v6585_v63, 5  ;;  %v3179_v56 = vsel %vm2685_vm6, %v3178_v10, %v3177_v16 }
 0xe34   :  { %v6593_v39 = vpop.eup %4805  ;;  %4825 = vpow2.f32 %v3132_v5  ;;  %v3180_v47 = vrot.slane %v6589_v24, 5  ;;  %v3193_v2 = vsel %vm2685_vm6, %v3192_v62, %v3191_v52 }
 0xe35   :  { %v6597_v53 = vpop.eup %4807  ;;  %4827 = vpow2.f32 %v3134_v33  ;;  %v3167_v38 = vsel %vm2687_vm2, %v3166_v61, %v3165_v58  ;;  %v3194_v13 = vrot.slane %v6593_v39, 5 }
 0xe36   :  { %v6601_v54 = vpop.eup %4809  ;;  %4829 = vpow2.f32 %v3136_v55  ;;  %v3168_v57 = vrot.slane %v6597_v53, 4  ;;  %v3181_v59 = vsel %vm2687_vm2, %v3180_v47, %v3179_v56 }
 0xe37   :  { %v6605_v16 = vpop.eup %4811  ;;  %v3182_v5 = vrot.slane %v6601_v54, 4  ;;  %v3195_v10 = vsel %vm2687_vm2, %v3194_v13, %v3193_v2 }
 0xe38   :  { %v6609_v52 = vpop.eup %4813  ;;  %v3169_v33 = vsel %vm2689_vm7, %v3168_v57, %v3167_v38  ;;  %v3196_v58 = vrot.slane %v6605_v16, 4 }
 0xe39   :  { %v6613_v62 = vpop.eup %4815  ;;  %v3170_v55 = vrot.slane %v6609_v52, 3  ;;  %v3183_v61 = vsel %vm2689_vm7, %v3182_v5, %v3181_v59 }
 0xe3a   :  { %v6617_v27 = vpop.eup %4817  ;;  %v3184_v56 = vrot.slane %v6613_v62, 3  ;;  %v3197_v47 = vsel %vm2689_vm7, %v3196_v58, %v3195_v10 }
 0xe3b   :  { %v6621_v49 = vpop.eup %4819  ;;  %v3171_v2 = vsel %vm2691_vm9, %v3170_v55, %v3169_v33  ;;  %v3198_v38 = vrot.slane %v6617_v27, 3 }
 0xe3c   :  { %v6625_v13 = vpop.eup %4821  ;;  %v3172_v57 = vrot.slane %v6621_v49, 2  ;;  %v3185_v36 = vsel %vm2691_vm9, %v3184_v56, %v3183_v61 }
 0xe3d   :  { %v6629_v29 = vpop.eup %4823  ;;  %v3186_v59 = vrot.slane %v6625_v13, 2  ;;  %v3199_v5 = vsel %vm2691_vm9, %v3198_v38, %v3197_v47 }
 0xe3e   :  { %v6633_v12 = vpop.eup %4825  ;;  %v3173_v10 = vsel %vm2693_vm10, %v3172_v57, %v3171_v2  ;;  %v3200_v33 = vrot.slane %v6629_v29, 2 }
 0xe3f   :  { %v6637_v58 = vpop.eup %4827  ;;  %v3174_v55 = vrot.slane %v6633_v12, 1  ;;  %v3187_v34 = vsel %vm2693_vm10, %v3186_v59, %v3185_v36 }
 0xe40   :  { %v6641_v6 = vpop.eup %4829  ;;  %v3188_v61 = vrot.slane %v6637_v58, 1  ;;  %v3201_v56 = vsel %vm2693_vm10, %v3200_v33, %v3199_v5 }
 0xe41   :  { %v3175_v47 = vsel %vm2695_vm8, %v3174_v55, %v3173_v10  ;;  %v3202_v38 = vrot.slane %v6641_v6, 1 }
 0xe42   :  { %v3189_v2 = vsel %vm2695_vm8, %v3188_v61, %v3187_v34 }
 0xe43   :  { %v3203_v57 = vsel %vm2695_vm8, %v3202_v38, %v3201_v56  ;;  %v3207_v3 = vadd.f32 %v3189_v2, %v3175_v47 }
 0xe44   :  { %v3208_v50 = vsel %vm2119_vm14, %v3203_v57, 0.0  ;;  %v6673_v57 = vld [vmem:[#allocation2] sm:$0xff] }
 0xe45   :  { %v3209_v0 = vadd.f32 %v3208_v50, %v3207_v3 }
 0xe47   :  { %3210 = vadd.xlane.f32.xlu1 %v3209_v0 }
 0xed4   :  { %v3211_v36 = vpop.xlane.xlu1 %3210 }
 0xed5   :  { %4831 = vrcp.f32 %v3211_v36 }
 0xedf   :  { %v6650_v59 = vpop.eup %4831 }
 0xee0   :  { %v3230_v5 = vmul.f32 %v6650_v59, %v6550_v19  ;;  %v3231_v10 = vmul.f32 %v6650_v59, %v6553_v17  ;;  %v3232_v34 = vmul.f32 %v6650_v59, %v6556_v46  ;;  %v3216_v33 = vrot.slane %v6650_v59, 2 }
 0xee1   :  { %v3215_v55 = vrot.slane %v6650_v59, 1  ;;  %v3218_v50 = vrot.slane %v6650_v59, 4  ;;  %v3217_v0 = vrot.slane %v6650_v59, 3  ;;  %v6663_v3 = vrot.slane %v6650_v59, 6 }
 0xee2   :  { %v3257_v61 = vrot.slane %v3230_v5, %v5520_v21  ;;  %v3261_v19 = vrot.slane %v3231_v10, %v5520_v21  ;;  %v3265_v17 = vrot.slane %v3232_v34, %v5520_v21  ;;  %v3236_v56 = vmul.f32 %v6570_v32, %v3216_v33 }
 0xee3   :  { %v3237_v46 = vmul.f32 %v6575_v48, %v3216_v33  ;;  %v3238_v47 = vmul.f32 %v6580_v60, %v3216_v33  ;;  %v3233_v38 = vmul.f32 %v6559_v1, %v3215_v55  ;;  %v3234_v2 = vmul.f32 %v6562_v44, %v3215_v55 }
 0xee4   :  { %v3350_v36 = vmul.f32 %v6673_v57, %v3257_v61  ;;  %v3351_v5 = vmul.f32 %v6676_v35, %v3261_v19  ;;  %v3352_v10 = vmul.f32 %v3265_v17, %v6306_v7  ;;  %v3281_v32 = vrot.slane %v3236_v56, %v5520_v21  ;;  %v6686_v61 = vld [vmem:[#allocation2 + $0x30] sm:$0xff]  ;;  %v6690_v7 = vld [vmem:[#allocation2 + $0x38] sm:$0xff]  ;;  %v6693_v56 = vld [vmem:[#allocation2 + $0x40] sm:$0xff] }
 0xee5   :  { %v3285_v48 = vrot.slane %v3237_v46, %v5520_v21  ;;  %v3289_v60 = vrot.slane %v3238_v47, %v5520_v21  ;;  %v3235_v1 = vmul.f32 %v6566_v45, %v3215_v55  ;;  %v3269_v44 = vrot.slane %v3233_v38, %v5520_v21  ;;  %v6697_v55 = vld [vmem:[#allocation2 + $0x18] sm:$0xff] }
 0xee6   :  { %v3374_v34 = vadd.f32 %v3351_v5, %v3350_v36  ;;  %v3375_v33 = vsel %vm2119_vm14, %v3352_v10, 0.0  ;;  %v3356_v42 = vmul.f32 %v6686_v61, %v3281_v32  ;;  %v3273_v19 = vrot.slane %v3234_v2, %v5520_v21  ;;  %v6700_v36 = vld [vmem:[#allocation2 + $0x20] sm:$0xff] }
 0xee7   :  { %v3357_v17 = vmul.f32 %v6690_v7, %v3285_v48  ;;  %v3358_v46 = vmul.f32 %v6693_v56, %v3289_v60  ;;  %v3277_v45 = vrot.slane %v3235_v1, %v5520_v21  ;;  %v3353_v47 = vmul.f32 %v6697_v55, %v3269_v44 }
 0xee8   :  { %v3376_v38 = vadd.f32 %v3375_v33, %v3374_v34  ;;  %v3354_v5 = vmul.f32 %v6700_v36, %v3273_v19  ;;  %v3242_v2 = vmul.f32 %v6597_v53, %v3218_v50  ;;  %v3243_v10 = vmul.f32 %v6601_v54, %v3218_v50 }
 0xee9   :  { %v3384_v32 = vadd.f32 %v3357_v17, %v3356_v42  ;;  %v3385_v48 = vsel %vm2119_vm14, %v3358_v46, 0.0  ;;  %v3355_v60 = vmul.f32 %v6706_v26, %v3277_v45  ;;  %v3244_v1 = vmul.f32 %v6605_v16, %v3218_v50  ;;  %v6719_v50 = vld [vmem:[#allocation2 + $0x68] sm:$0xff] }
 0xeea   :  { %3377 = vadd.xlane.f32.xlu0 %v3376_v38  ;;  %v3379_v44 = vadd.f32 %v3354_v5, %v3353_v47  ;;  %v3305_v34 = vrot.slane %v3242_v2, %v5520_v21  ;;  %v3309_v33 = vrot.slane %v3243_v10, %v5520_v21  ;;  %v3239_v19 = vmul.f32 %v6585_v63, %v3217_v0  ;;  %v6723_v63 = vld [vmem:[#allocation2 + $0x70] sm:$0xff] }
 0xeeb   :  { %v3386_v53 = vadd.f32 %v3385_v48, %v3384_v32  ;;  %v3380_v54 = vsel %vm2119_vm14, %v3355_v60, 0.0  ;;  %v3313_v42 = vrot.slane %v3244_v1, %v5520_v21  ;;  %v3240_v17 = vmul.f32 %v6589_v24, %v3217_v0  ;;  %v6736_v60 = vld [vmem:[#allocation2 + $0x48] sm:$0xff] }
 0xeec   :  { %v3381_v46 = vadd.f32 %v3380_v54, %v3379_v44  ;;  %v3362_v16 = vmul.f32 %v6716_v22, %v3305_v34  ;;  %v3363_v45 = vmul.f32 %v6719_v50, %v3309_v33  ;;  %v3241_v47 = vmul.f32 %v6593_v39, %v3217_v0  ;;  %v6739_v44 = vld [vmem:[#allocation2 + $0x50] sm:$0xff] }
 0xeed   :  { %3387 = vadd.xlane.f32.xlu1 %v3386_v53  ;;  %v3364_v38 = vmul.f32 %v6723_v63, %v3313_v42  ;;  %v3293_v5 = vrot.slane %v3239_v19, %v5520_v21  ;;  %v3297_v24 = vrot.slane %v3240_v17, %v5520_v21  ;;  %v3248_v2 = vmul.f32 %v6621_v49, %v6663_v3  ;;  %v6743_v19 = vld [vmem:[#allocation2 + $0x58] sm:$0xff]  ;;  %v6748_v54 = vld [vmem:[#allocation2 + $0x90] sm:$0xff] }
 0xeee   :  { %3382 = vadd.xlane.f32.xlu0 %v3381_v46  ;;  %v3394_v10 = vadd.f32 %v3363_v45, %v3362_v16  ;;  %v3301_v32 = vrot.slane %v3241_v47, %v5520_v21  ;;  %v3249_v48 = vmul.f32 %v6625_v13, %v6663_v3  ;;  %v3250_v39 = vmul.f32 %v6629_v29, %v6663_v3  ;;  %v6754_v45 = vld [vmem:[#allocation2 + $0x98] sm:$0xff] }
 0xeef   :  { %v3395_v0 = vsel %vm2119_vm14, %v3364_v38, 0.0  ;;  %v3359_v1 = vmul.f32 %v6736_v60, %v3293_v5  ;;  %v3360_v49 = vmul.f32 %v6739_v44, %v3297_v24  ;;  %v3329_v34 = vrot.slane %v3248_v2, %v5520_v21  ;;  %v6757_v38 = vld [vmem:[#allocation2 + $0xa0] sm:$0xff] }
 0xef0   :  { %v3396_v33 = vadd.f32 %v3395_v0, %v3394_v10  ;;  %v3361_v13 = vmul.f32 %v6743_v19, %v3301_v32  ;;  %v3333_v53 = vrot.slane %v3249_v48, %v5520_v21  ;;  %v3337_v29 = vrot.slane %v3250_v39, %v5520_v21 }
 0xef1   :  { %v3389_v3 = vadd.f32 %v3360_v49, %v3359_v1  ;;  %v3368_v42 = vmul.f32 %v6748_v54, %v3329_v34  ;;  %v3219_v17 = vrot.slane %v6650_v59, 5  ;;  %v3221_v46 = vrot.slane %v6650_v59, 7 }
 0xef2   :  { %3397 = vadd.xlane.f32.xlu1 %v3396_v33  ;;  %v3390_v16 = vsel %vm2119_vm14, %v3361_v13, 0.0  ;;  %v3369_v47 = vmul.f32 %v6754_v45, %v3333_v53  ;;  %v3370_v5 = vmul.f32 %v6757_v38, %v3337_v29  ;;  %v6772_v13 = vld [vmem:[#allocation2 + $0x78] sm:$0xff]  ;;  %v6775_v53 = vld [vmem:[#allocation2 + $0x80] sm:$0xff]  ;;  %v6778_v29 = vld [vmem:[#allocation2 + $0x88] sm:$0xff] }
 0xef3   :  { %v3391_v24 = vadd.f32 %v3390_v16, %v3389_v3  ;;  %v3245_v2 = vmul.f32 %v6609_v52, %v3219_v17  ;;  %v3246_v10 = vmul.f32 %v6613_v62, %v3219_v17  ;;  %v3247_v32 = vmul.f32 %v6617_v27, %v3219_v17 }
 0xef4   :  { %v3404_v48 = vadd.f32 %v3369_v47, %v3368_v42  ;;  %v3405_v59 = vsel %vm2119_vm14, %v3370_v5, 0.0  ;;  %v3251_v39 = vmul.f32 %v6633_v12, %v3221_v46  ;;  %v3252_v0 = vmul.f32 %v6637_v58, %v3221_v46 }
 0xef5   :  { %3392 = vadd.xlane.f32.xlu0 %v3391_v24  ;;  %v3317_v1 = vrot.slane %v3245_v2, %v5520_v21  ;;  %v3321_v49 = vrot.slane %v3246_v10, %v5520_v21  ;;  %v3325_v34 = vrot.slane %v3247_v32, %v5520_v21  ;;  %v3253_v52 = vmul.f32 %v6641_v6, %v3221_v46  ;;  %v6782_v6 = vld [vmem:[#allocation2 + $0xa8] sm:$0xff]  ;;  %v6785_v46 = vld [vmem:[#allocation2 + $0xb0] sm:$0xff]  ;;  %v6789_v24 = vld [vmem:[#allocation2 + $0xb8] sm:$0xff] }
 0xef6   :  { %v3406_v33 = vadd.f32 %v3405_v59, %v3404_v48  ;;  %v3341_v62 = vrot.slane %v3251_v39, %v5520_v21  ;;  %v3345_v27 = vrot.slane %v3252_v0, %v5520_v21  ;;  %7325 = vst [vmem:[#allocation34_spill] sm:$0xff] %v6785_v46  ;;  %7326 = vst [vmem:[#allocation35_spill] sm:$0xff] %v6789_v24 }
 0xef7   :  { %v3365_v12 = vmul.f32 %v6772_v13, %v3317_v1  ;;  %v3366_v58 = vmul.f32 %v6775_v53, %v3321_v49  ;;  %v3367_v3 = vmul.f32 %v6778_v29, %v3325_v34  ;;  %v3349_v42 = vrot.slane %v3253_v52, %v5520_v21 }
 0xef8   :  { %3407 = vadd.xlane.f32.xlu1 %v3406_v33  ;;  %v3371_v17 = vmul.f32 %v6782_v6, %v3341_v62  ;;  %v3372_v16 = vmul.f32 %v6785_v46, %v3345_v27 }
 0xef9   :  { %v3399_v47 = vadd.f32 %v3366_v58, %v3365_v12  ;;  %v3400_v5 = vsel %vm2119_vm14, %v3367_v3, 0.0  ;;  %v3373_v2 = vmul.f32 %v6789_v24, %v3349_v42 }
 0xefa   :  { %v3409_v32 = vadd.f32 %v3372_v16, %v3371_v17 }
 0xefb   :  { %v3401_v10 = vadd.f32 %v3400_v5, %v3399_v47  ;;  %v3410_v48 = vsel %vm2119_vm14, %v3373_v2, 0.0 }
 0xefc   :  { %v3411_v59 = vadd.f32 %v3410_v48, %v3409_v32 }
 0xefd   :  { %3402 = vadd.xlane.f32.xlu0 %v3401_v10 }
 0xf01   :  { %3412 = vadd.xlane.f32.xlu0 %v3411_v59 }
 0xf77   :  { %v3378_v39 = vpop.xlane.xlu0 %3377 }
 0xf78   :  { %v3414_v34 = vmul.f32 %v3378_v39, %v3378_v39 }
 0xf7a   :  { %v3388_v1 = vpop.xlane.xlu1 %3387  ;;  %v3433_v58 = vrot.slane %v3414_v34, %v6361_v51 }
 0xf7b   :  { %v3383_v0 = vpop.xlane.xlu0 %3382  ;;  %v3416_v12 = vmul.f32 %v3388_v1, %v3388_v1 }
 0xf7c   :  { %v3415_v49 = vmul.f32 %v3383_v0, %v3383_v0 }
 0xf7d   :  { %v3441_v17 = vrot.slane %v3416_v12, %v6361_v51 }
 0xf7e   :  { %v3437_v33 = vrot.slane %v3415_v49, %v6361_v51 }
 0xf7f   :  { %v3398_v62 = vpop.xlane.xlu1 %3397 }
 0xf80   :  { %v3462_v3 = vsel %vm2683_vm5, %v3437_v33, %v3433_v58  ;;  %v3418_v16 = vmul.f32 %v3398_v62, %v3398_v62 }
 0xf81   :  { %v3463_v5 = vsel %vm2685_vm6, %v3441_v17, %v3462_v3 }
 0xf82   :  { %v3393_v52 = vpop.xlane.xlu0 %3392  ;;  %v3449_v48 = vrot.slane %v3418_v16, %v6361_v51 }
 0xf83   :  { %v3417_v27 = vmul.f32 %v3393_v52, %v3393_v52 }
 0xf85   :  { %v3445_v42 = vrot.slane %v3417_v27, %v6361_v51  ;;  %v3408_v47 = vpop.xlane.xlu1 %3407 }
 0xf86   :  { %v3420_v59 = vmul.f32 %v3408_v47, %v3408_v47 }
 0xf87   :  { %v3464_v10 = vsel %vm2687_vm2, %v3445_v42, %v3463_v5 }
 0xf88   :  { %v3465_v33 = vsel %vm2689_vm7, %v3449_v48, %v3464_v10  ;;  %v3457_v12 = vrot.slane %v3420_v59, %v6361_v51 }
 0xf8a   :  { %v3403_v2 = vpop.xlane.xlu0 %3402 }
 0xf8b   :  { %v3419_v32 = vmul.f32 %v3403_v2, %v3403_v2 }
 0xf8d   :  { %v3453_v49 = vrot.slane %v3419_v32, %v6361_v51 }
 0xf8e   :  { %v3413_v34 = vpop.xlane.xlu0 %3412 }
 0xf8f   :  { %v3421_v58 = vmul.f32 %v3413_v34, %v3413_v34  ;;  %v3466_v27 = vsel %vm2691_vm9, %v3453_v49, %v3465_v33 }
 0xf90   :  { %v3467_v3 = vsel %vm2693_vm10, %v3457_v12, %v3466_v27 }
 0xf91   :  { %v3461_v24 = vrot.slane %v3421_v58, %v6361_v51 }
 0xf93   :  { %v3468_v42 = vsel %vm2695_vm8, %v3461_v24, %v3467_v3 }
 0xf94   :  { %v3470_v17 = vsel %vm2698_vm11, %v3468_v42, 0.0 }
 0xf95   :  { %3471 = vadd.xlane.f32.xlu1 %v3470_v17 }
0x1022   :  { %v3472_v16 = vpop.xlane.xlu1 %3471 }
0x1023   :  { %v3473_v5 = vadd.f32 1e-09, %v3472_v16  ;;  %v3476_v32 = vadd.f32 1.0, %v3472_v16 }
0x1025   :  { %4833 = vrsqrt.f32 %v3473_v5 }
0x1026   :  { %4835 = vrcp.f32 %v3476_v32 }
0x102f   :  { %v4834_v10 = vpop.eup %4833 }
0x1030   :  { %v3475_v48 = vmul.f32 %v4834_v10, %v3472_v16  ;;  %v4836_v46 = vpop.eup %4835 }
0x1032   :  { %v3478_v49 = vmul.f32 %v4836_v46, %v3475_v48 }
0x1034   :  { %v3487_v59 = vrot.slane %v3478_v49, %v5526_v25  ;;  %v3483_v33 = vrot.slane %v3478_v49, %v5520_v21  ;;  %v3491_v24 = vrot.slane %v3478_v49, %v5535_v37  ;;  %v3495_v12 = vrot.slane %v3478_v49, %v7292_v8 }
0x1035   :  { %v3499_v17 = vrot.slane %v3478_v49, %v6380_v20  ;;  %v3503_v16 = vrot.slane %v3478_v49, %v6390_v4  ;;  %v3507_v32 = vrot.slane %v3478_v49, %v6385_v41 }
0x1036   :  { %v3521_v58 = vmul.f32 %v3487_v59, %v3383_v0  ;;  %v3520_v27 = vmul.f32 %v3483_v33, %v3378_v39  ;;  %v3522_v3 = vmul.f32 %v3491_v24, %v3388_v1  ;;  %v3523_v42 = vmul.f32 %v3495_v12, %v3393_v52 }
0x1037   :  { %v3524_v46 = vmul.f32 %v3499_v17, %v3398_v62  ;;  %v3525_v5 = vmul.f32 %v3503_v16, %v3403_v2  ;;  %v3511_v39 = vrot.slane %v3478_v49, %v6396_v11  ;;  %v3526_v0 = vmul.f32 %v3507_v32, %v3408_v47 }
0x1038   :  { %3535 = vperm.xlu1 %4551, %v3521_v58   ;;  %3530 = vperm.xlu0 %4552, %v3520_v27   ;;  %v6822_v58 = vld [vmem:[#allocation2 + $0x10] sm:$0xff] }
0x1039   :  { %v3527_v10 = vmul.f32 %v3511_v39, %v3413_v34 }
0x103c   :  { %3540 = vperm.xlu1 %4551, %v3522_v3   ;;  %3545 = vperm.xlu0 %4552, %v3523_v42  }
0x1040   :  { %3550 = vperm.xlu1 %4551, %v3524_v46   ;;  %3555 = vperm.xlu0 %4552, %v3525_v5  }
0x1044   :  { %3560 = vperm.xlu1 %4551, %v3526_v0   ;;  %3565 = vperm.xlu0 %4552, %v3527_v10  }
0x10b7   :  { %v3536_v1 = vpop.permute.xlu1 %3535  ;;  %v3531_v52 = vpop.permute.xlu0 %3530 }
0x10b8   :  { %v3571_v48 = vmul.f32 %v6697_v55, %v3536_v1  ;;  %v3572_v59 = vmul.f32 %v6700_v36, %v3536_v1  ;;  %v3573_v33 = vmul.f32 %v6706_v26, %v3536_v1  ;;  %v3568_v62 = vmul.f32 %v6673_v57, %v3531_v52 }
0x10b9   :  { %v3569_v2 = vmul.f32 %v6676_v35, %v3531_v52  ;;  %v3570_v49 = vmul.f32 %v6822_v58, %v3531_v52 }
0x10ba   :  { %v3611_v47 = vrot.slane %v3571_v48, 4  ;;  %v3617_v34 = vrot.slane %v3572_v59, 4  ;;  %v3623_v27 = vsel %vm2119_vm14, %v3573_v33, 0.0  ;;  %v3592_v24 = vrot.slane %v3568_v62, 4 }
0x10bb   :  { %v3624_v12 = vrot.slane %v3623_v27, 4  ;;  %v3598_v3 = vrot.slane %v3569_v2, 4  ;;  %v3604_v55 = vsel %vm2119_vm14, %v3570_v49, 0.0  ;;  %v3541_v36 = vpop.permute.xlu1 %3540 }
0x10bc   :  { %v3612_v42 = vadd.f32 %v3611_v47, %v3571_v48  ;;  %v3618_v26 = vadd.f32 %v3617_v34, %v3572_v59  ;;  %v3593_v17 = vadd.f32 %v3592_v24, %v3568_v62  ;;  %v3605_v57 = vrot.slane %v3604_v55, 4 }
0x10bd   :  { %v3625_v16 = vadd.f32 %v3624_v12, %v3623_v27  ;;  %v3599_v35 = vadd.f32 %v3598_v3, %v3569_v2  ;;  %v3574_v46 = vmul.f32 %v6686_v61, %v3541_v36  ;;  %v3575_v5 = vmul.f32 %v6690_v7, %v3541_v36 }
0x10be   :  { %v3613_v32 = vrot.slane %v3612_v42, 2  ;;  %v3619_v39 = vrot.slane %v3618_v26, 2  ;;  %v3594_v0 = vrot.slane %v3593_v17, 2  ;;  %v3606_v10 = vadd.f32 %v3605_v57, %v3604_v55 }
0x10bf   :  { %v3626_v1 = vrot.slane %v3625_v16, 2  ;;  %v3600_v52 = vrot.slane %v3599_v35, 2  ;;  %v3576_v33 = vmul.f32 %v6693_v56, %v3541_v36  ;;  %v3630_v49 = vrot.slane %v3574_v46, 4 }
0x10c0   :  { %v3614_v11 = vadd.f32 %v3613_v32, %v3612_v42  ;;  %v3620_v48 = vadd.f32 %v3619_v39, %v3618_v26  ;;  %v3595_v59 = vadd.f32 %v3594_v0, %v3593_v17  ;;  %v3607_v62 = vrot.slane %v3606_v10, 2 }
0x10c1   :  { %v3627_v47 = vadd.f32 %v3626_v1, %v3625_v16  ;;  %v3601_v34 = vadd.f32 %v3600_v52, %v3599_v35  ;;  %v3631_v2 = vadd.f32 %v3630_v49, %v3574_v46  ;;  %v3636_v27 = vrot.slane %v3575_v5, 4  ;;  %v3546_v16 = vpop.permute.xlu0 %3545  ;;  %v3551_v1 = vpop.permute.xlu1 %3550 }
0x10c2   :  { %v3615_v61 = vrot.slane %v3614_v11, 1  ;;  %v3621_v24 = vrot.slane %v3620_v48, 1  ;;  %v3596_v7 = vrot.slane %v3595_v59, 1  ;;  %v3608_v12 = vadd.f32 %v3607_v62, %v3606_v10 }
0x10c3   :  { %v3628_v3 = vrot.slane %v3627_v47, 1  ;;  %v3602_v4 = vrot.slane %v3601_v34, 1  ;;  %v3632_v55 = vrot.slane %v3631_v2, 2  ;;  %v3637_v57 = vadd.f32 %v3636_v27, %v3575_v5 }
0x10c4   :  { %v3616_v8 = vadd.f32 %v3615_v61, %v3614_v11  ;;  %v3622_v41 = vadd.f32 %v3621_v24, %v3620_v48  ;;  %v3597_v56 = vadd.f32 %v3596_v7, %v3595_v59  ;;  %v3609_v36 = vrot.slane %v3608_v12, 1 }
0x10c5   :  { %v3629_v42 = vadd.f32 %v3628_v3, %v3627_v47  ;;  %v3603_v26 = vadd.f32 %v3602_v4, %v3601_v34  ;;  %v3633_v17 = vadd.f32 %v3632_v55, %v3631_v2  ;;  %v3638_v32 = vrot.slane %v3637_v57, 2 }
0x10c6   :  { %v6831_v35 = vadd.f32 %v3616_v8, %v6410_v15  ;;  %v3610_v46 = vadd.f32 %v3609_v36, %v3608_v12  ;;  %v6834_v39 = vadd.f32 %v3597_v56, %v6414_v28  ;;  %v6837_v0 = vadd.f32 %v3622_v41, %v6412_v40 }
0x10c7   :  { %v6840_v11 = vadd.f32 %v3603_v26, %v6418_v43  ;;  %v3634_v5 = vrot.slane %v3633_v17, 1  ;;  %v3639_v10 = vadd.f32 %v3638_v32, %v3637_v57  ;;  %v6843_v4 = vadd.f32 %v3629_v42, %v6416_v9 }
0x10c8   :  { %v3642_v52 = vsel %vm2119_vm14, %v3576_v33, 0.0  ;;  %v3577_v8 = vmul.f32 %v6736_v60, %v3546_v16  ;;  %v6848_v15 = vadd.f32 %v3610_v46, %v6420_v23  ;;  %v6853_v41 = vsel %vm2683_vm5, %v6831_v35, %v6834_v39 }
0x10c9   :  { %v3640_v40 = vrot.slane %v3639_v10, 1  ;;  %v3643_v28 = vrot.slane %v3642_v52, 4  ;;  %v3578_v43 = vmul.f32 %v6739_v44, %v3546_v16  ;;  %v3579_v49 = vmul.f32 %v6743_v19, %v3546_v16 }
0x10ca   :  { %v3649_v9 = vrot.slane %v3577_v8, 4  ;;  %v3580_v48 = vmul.f32 %v6716_v22, %v3551_v1  ;;  %v6861_v60 = vsel %vm2683_vm5, %v6837_v0, %v6840_v11  ;;  %v3635_v23 = vadd.f32 %v3634_v5, %v3633_v17  ;;  %v3556_v22 = vpop.permute.xlu0 %3555 }
0x10cb   :  { %v3644_v33 = vadd.f32 %v3643_v28, %v3642_v52  ;;  %v3581_v59 = vmul.f32 %v6719_v50, %v3551_v1  ;;  %v3655_v47 = vrot.slane %v3578_v43, 4  ;;  %v3661_v34 = vsel %vm2119_vm14, %v3579_v49, 0.0 }
0x10cc   :  { %v3650_v62 = vadd.f32 %v3649_v9, %v3577_v8  ;;  %v3582_v44 = vmul.f32 %v6723_v63, %v3551_v1  ;;  %v3641_v2 = vadd.f32 %v3640_v40, %v3639_v10  ;;  %v3662_v27 = vrot.slane %v3661_v34, 4 }
0x10cd   :  { %v3645_v19 = vrot.slane %v3644_v33, 2  ;;  %v3668_v61 = vrot.slane %v3580_v48, 4  ;;  %v3656_v7 = vadd.f32 %v3655_v47, %v3578_v43  ;;  %v3674_v12 = vrot.slane %v3581_v59, 4 }
0x10ce   :  { %v3651_v24 = vrot.slane %v3650_v62, 2  ;;  %v3680_v3 = vsel %vm2119_vm14, %v3582_v44, 0.0  ;;  %v3663_v57 = vadd.f32 %v3662_v27, %v3661_v34  ;;  %v3583_v17 = vmul.f32 %v6772_v13, %v3556_v22 }
0x10cf   :  { %v3646_v55 = vadd.f32 %v3645_v19, %v3644_v33  ;;  %v3669_v56 = vadd.f32 %v3668_v61, %v3580_v48  ;;  %v3681_v50 = vrot.slane %v3680_v3, 4  ;;  %v3657_v42 = vrot.slane %v3656_v7, 2 }
0x10d0   :  { %v3652_v36 = vadd.f32 %v3651_v24, %v3650_v62  ;;  %v3675_v26 = vadd.f32 %v3674_v12, %v3581_v59  ;;  %v3664_v32 = vrot.slane %v3663_v57, 2  ;;  %v3584_v52 = vmul.f32 %v6775_v53, %v3556_v22  ;;  %v3561_v12 = vpop.permute.xlu1 %3560 }
0x10d1   :  { %v3647_v63 = vrot.slane %v3646_v55, 1  ;;  %v3670_v16 = vrot.slane %v3669_v56, 2  ;;  %v3682_v46 = vadd.f32 %v3681_v50, %v3680_v3  ;;  %v3658_v10 = vadd.f32 %v3657_v42, %v3656_v7  ;;  %v3566_v50 = vpop.permute.xlu0 %3565 }
0x10d2   :  { %v3653_v5 = vrot.slane %v3652_v36, 1  ;;  %v3676_v1 = vrot.slane %v3675_v26, 2  ;;  %v3665_v40 = vadd.f32 %v3664_v32, %v3663_v57  ;;  %v3585_v33 = vmul.f32 %v6778_v29, %v3556_v22  ;;  %v7327_v22 = vld [vmem:[#allocation16_spill] sm:$0xff] }
0x10d3   :  { %v3648_v8 = vadd.f32 %v3647_v63, %v3646_v55  ;;  %v3671_v28 = vadd.f32 %v3670_v16, %v3669_v56  ;;  %v3683_v43 = vrot.slane %v3682_v46, 2  ;;  %v3659_v9 = vrot.slane %v3658_v10, 1  ;;  %v7329_v63 = vld [vmem:[#allocation21_spill] sm:$0xff] }
0x10d4   :  { %v3654_v49 = vadd.f32 %v3653_v5, %v3652_v36  ;;  %v3677_v48 = vadd.f32 %v3676_v1, %v3675_v26  ;;  %v6871_v13 = vadd.f32 %v3635_v23, %v6449_v14  ;;  %v3666_v59 = vrot.slane %v3665_v40, 1 }
0x10d5   :  { %v3672_v62 = vrot.slane %v3671_v28, 1  ;;  %v3684_v47 = vadd.f32 %v3683_v43, %v3682_v46  ;;  %v6874_v34 = vadd.f32 %v3641_v2, %v6453_v30  ;;  %v3660_v44 = vadd.f32 %v3659_v9, %v3658_v10  ;;  %v7328_v2 = vld [vmem:[#allocation26_spill] sm:$0xff] }
0x10d6   :  { %v3678_v53 = vrot.slane %v3677_v48, 1  ;;  %v3687_v19 = vrot.slane %v3583_v17, 4  ;;  %v3667_v27 = vadd.f32 %v3666_v59, %v3665_v40  ;;  %v3693_v7 = vrot.slane %v3584_v52, 4 }
0x10d7   :  { %v3673_v61 = vadd.f32 %v3672_v62, %v3671_v28  ;;  %v3685_v24 = vrot.slane %v3684_v47, 1  ;;  %v6877_v3 = vadd.f32 %v3648_v8, %v6455_v31  ;;  %v6880_v14 = vadd.f32 %v3654_v49, %v6476_v18  ;;  %v7330_v28 = vld [vmem:[#allocation34_spill] sm:$0xff] }
0x10d8   :  { %v3688_v29 = vadd.f32 %v3687_v19, %v3583_v17  ;;  %v3699_v23 = vsel %vm2119_vm14, %v3585_v33, 0.0  ;;  %v6884_v30 = vadd.f32 %v3660_v44, %v7327_v22  ;;  %v6887_v55 = vadd.f32 %v3667_v27, %v7328_v2 }
0x10d9   :  { %v3679_v57 = vadd.f32 %v3678_v53, %v3677_v48  ;;  %v3694_v56 = vadd.f32 %v3693_v7, %v3584_v52  ;;  %v3686_v36 = vadd.f32 %v3685_v24, %v3684_v47  ;;  %v3700_v26 = vrot.slane %v3699_v23, 4 }
0x10da   :  { %v3689_v42 = vrot.slane %v3688_v29, 2  ;;  %v3586_v31 = vmul.f32 %v6748_v54, %v3561_v12  ;;  %v6891_v18 = vadd.f32 %v3673_v61, %v7329_v63  ;;  %v3587_v32 = vmul.f32 %v6754_v45, %v3561_v12  ;;  %v7331_v45 = vld [vmem:[#allocation35_spill] sm:$0xff] }
0x10db   :  { %v3695_v17 = vrot.slane %v3694_v56, 2  ;;  %v3588_v16 = vmul.f32 %v6757_v38, %v3561_v12  ;;  %v3701_v5 = vadd.f32 %v3700_v26, %v3699_v23  ;;  %v3589_v1 = vmul.f32 %v6782_v6, %v3566_v50  ;;  %v7332_v6 = vld [vmem:[#allocation24_spill] sm:$0xff]  ;;  %v7333_v12 = vld [vmem:[#allocation22_spill] sm:$0xff] }
0x10dc   :  { %v3690_v46 = vadd.f32 %v3689_v42, %v3688_v29  ;;  %v3706_v10 = vrot.slane %v3586_v31, 4  ;;  %v3712_v8 = vrot.slane %v3587_v32, 4  ;;  %v3590_v43 = vmul.f32 %v7330_v28, %v3566_v50 }
0x10dd   :  { %v3696_v52 = vadd.f32 %v3695_v17, %v3694_v56  ;;  %v3718_v40 = vsel %vm2119_vm14, %v3588_v16, 0.0  ;;  %v3702_v49 = vrot.slane %v3701_v5, 2  ;;  %v3591_v62 = vmul.f32 %v7331_v45, %v3566_v50 }
0x10de   :  { %v3691_v54 = vrot.slane %v3690_v46, 1  ;;  %v3707_v9 = vadd.f32 %v3706_v10, %v3586_v31  ;;  %v3719_v48 = vrot.slane %v3718_v40, 4  ;;  %v3713_v59 = vadd.f32 %v3712_v8, %v3587_v32  ;;  %v7334_v31 = vld [vmem:[#allocation27_spill] sm:$0xff] }
0x10df   :  { %v3697_v33 = vrot.slane %v3696_v52, 1  ;;  %v3725_v38 = vrot.slane %v3589_v1, 4  ;;  %v3703_v44 = vadd.f32 %v3702_v49, %v3701_v5  ;;  %v6900_v27 = vadd.f32 %v3679_v57, %v7332_v6 }
0x10e0   :  { %v3692_v47 = vadd.f32 %v3691_v54, %v3690_v46  ;;  %v3708_v53 = vrot.slane %v3707_v9, 2  ;;  %v3720_v19 = vadd.f32 %v3719_v48, %v3718_v40  ;;  %v3714_v61 = vrot.slane %v3713_v59, 2 }
0x10e1   :  { %v3726_v24 = vadd.f32 %v3725_v38, %v3589_v1  ;;  %v3731_v7 = vrot.slane %v3590_v43, 4  ;;  %v6903_v29 = vadd.f32 %v3686_v36, %v7333_v12  ;;  %v3698_v23 = vadd.f32 %v3697_v33, %v3696_v52  ;;  %v7335_v36 = vld [vmem:[#allocation28_spill] sm:$0xff]  ;;  %v7336_v33 = vld [vmem:[#allocation25_spill] sm:$0xff] }
0x10e2   :  { %v3709_v22 = vadd.f32 %v3708_v53, %v3707_v9  ;;  %v3721_v2 = vrot.slane %v3720_v19, 2  ;;  %v3704_v56 = vrot.slane %v3703_v44, 1  ;;  %v3715_v42 = vadd.f32 %v3714_v61, %v3713_v59 }
0x10e3   :  { %v3727_v50 = vrot.slane %v3726_v24, 2  ;;  %v3732_v26 = vadd.f32 %v3731_v7, %v3590_v43  ;;  %v6906_v63 = vadd.f32 %v3692_v47, %v7334_v31  ;;  %v3737_v57 = vsel %vm2119_vm14, %v3591_v62, 0.0  ;;  %v7338_v7 = vld [vmem:[#allocation30_spill] sm:$0xff]  ;;  %v7340_v31 = vld [vmem:[#allocation32_spill] sm:$0xff] }
0x10e4   :  { %v3710_v17 = vrot.slane %v3709_v22, 1  ;;  %v3722_v32 = vadd.f32 %v3721_v2, %v3720_v19  ;;  %v3716_v16 = vrot.slane %v3715_v42, 1  ;;  %v3738_v10 = vrot.slane %v3737_v57, 4 }
0x10e5   :  { %v3728_v46 = vadd.f32 %v3727_v50, %v3726_v24  ;;  %v3733_v5 = vrot.slane %v3732_v26, 2  ;;  %v6910_v1 = vadd.f32 %v3698_v23, %v7335_v36  ;;  %v3793_v40 = vsel %vm2685_vm6, %v6871_v13, %v6853_v41  ;;  %v7337_v41 = vld [vmem:[#allocation17_spill] sm:$0xff] }
0x10e6   :  { %v3711_v52 = vadd.f32 %v3710_v17, %v3709_v22  ;;  %v3723_v8 = vrot.slane %v3722_v32, 1  ;;  %v3717_v28 = vadd.f32 %v3716_v16, %v3715_v42  ;;  %v3739_v49 = vadd.f32 %v3738_v10, %v3737_v57  ;;  %v7339_v22 = vld [vmem:[#allocation29_spill] sm:$0xff] }
0x10e7   :  { %v3729_v43 = vrot.slane %v3728_v46, 1  ;;  %v3734_v54 = vadd.f32 %v3733_v5, %v3732_v26  ;;  %v3705_v9 = vadd.f32 %v3704_v56, %v3703_v44  ;;  %v3800_v45 = vsel %vm2685_vm6, %v6874_v34, %v6861_v60 }
0x10e8   :  { %v3724_v48 = vadd.f32 %v3723_v8, %v3722_v32  ;;  %v6916_v59 = vadd.f32 %v3711_v52, %v7336_v33  ;;  %v3740_v47 = vrot.slane %v3739_v49, 2  ;;  %v3794_v53 = vsel %vm2687_vm2, %v6880_v14, %v3793_v40  ;;  %v7341_v32 = vld [vmem:[#allocation31_spill] sm:$0xff] }
0x10e9   :  { %v3730_v62 = vadd.f32 %v3729_v43, %v3728_v46  ;;  %v3735_v38 = vrot.slane %v3734_v54, 1  ;;  %v6924_v19 = vadd.f32 %v3717_v28, %v7337_v41  ;;  %v3795_v44 = vsel %vm2689_vm7, %v6891_v18, %v3794_v53  ;;  %v7342_v28 = vld [vmem:[#allocation33_spill] sm:$0xff] }
0x10ea   :  { %v3801_v6 = vsel %vm2687_vm2, %v6884_v30, %v3800_v45  ;;  %v3806_v61 = vsel %vm2683_vm5, %v6843_v4, %v6848_v15  ;;  %v3741_v24 = vadd.f32 %v3740_v47, %v3739_v49  ;;  %v3796_v23 = vsel %vm2691_vm9, %v6906_v63, %v3795_v44 }
0x10eb   :  { %v3736_v60 = vadd.f32 %v3735_v38, %v3734_v54  ;;  %v6934_v12 = vadd.f32 %v3730_v62, %v7338_v7  ;;  %v6939_v2 = vadd.f32 %v3705_v9, %v7339_v22  ;;  %v3797_v56 = vsel %vm2693_vm10, %v6916_v59, %v3796_v23 }
0x10ec   :  { %v3802_v42 = vsel %vm2689_vm7, %v6900_v27, %v3801_v6  ;;  %v3807_v50 = vsel %vm2685_vm6, %v6877_v3, %v3806_v61  ;;  %v3742_v26 = vrot.slane %v3741_v24, 1  ;;  %v6948_v17 = vadd.f32 %v3724_v48, %v7340_v31 }
0x10ed   :  { %v6951_v57 = vadd.f32 %v3736_v60, %v7341_v32  ;;  %v3803_v16 = vsel %vm2691_vm9, %v6910_v1, %v3802_v42  ;;  %v3798_v46 = vsel %vm2695_vm8, %v6934_v12, %v3797_v56  ;;  %v3808_v10 = vsel %vm2687_vm2, %v6887_v55, %v3807_v50 }
0x10ee   :  { %v3804_v5 = vsel %vm2693_vm10, %v6924_v19, %v3803_v16  ;;  %v3743_v36 = vadd.f32 %v3742_v26, %v3741_v24  ;;  %v3809_v8 = vsel %vm2689_vm7, %v6903_v29, %v3808_v10 }
0x10ef   :  { %v3805_v52 = vsel %vm2695_vm8, %v6951_v57, %v3804_v5  ;;  %v3810_v40 = vsel %vm2691_vm9, %v6939_v2, %v3809_v8 }
0x10f0   :  { %v6968_v43 = vadd.f32 %v3743_v36, %v7342_v28  ;;  %v3811_v54 = vsel %vm2693_vm10, %v6948_v17, %v3810_v40  ;;  %v3817_v49 = vmax.f32 %v3798_v46, %v3805_v52 }
0x10f2   :  { %v3812_v9 = vsel %vm2695_vm8, %v6968_v43, %v3811_v54 }
0x10f3   :  { %v3816_v48 = vsel %vm2119_vm14, %v3812_v9, -inf }
0x10f4   :  { %v3818_v33 = vmax.f32 %v3817_v49, %v3816_v48 }
0x10f6   :  { %3819 = vmax.xlane.f32.xlu1 %v3818_v33 }
0x1183   :  { %v3820_v45 = vpop.xlane.xlu1 %3819 }
0x1184   :  { %v3822_v62 = vrot.slane %v3820_v45, 1  ;;  %v3837_v38 = vsub.f32 %v6834_v39, %v3820_v45  ;;  %v3838_v47 = vsub.f32 %v6840_v11, %v3820_v45  ;;  %v3823_v53 = vrot.slane %v3820_v45, 2 }
0x1185   :  { %v3839_v41 = vsub.f32 %v6848_v15, %v3820_v45  ;;  %v3824_v44 = vrot.slane %v3820_v45, 3  ;;  %v3825_v39 = vrot.slane %v3820_v45, 4  ;;  %v3827_v16 = vrot.slane %v3820_v45, 6 }
0x1186   :  { %v3861_v6 = vmul.f32 1.442695, %v3837_v38  ;;  %v3840_v61 = vsub.f32 %v6831_v35, %v3822_v62  ;;  %v3841_v60 = vsub.f32 %v6837_v0, %v3822_v62  ;;  %v3863_v24 = vmul.f32 1.442695, %v3838_v47 }
0x1187   :  { %v3842_v7 = vsub.f32 %v6843_v4, %v3822_v62  ;;  %v3865_v23 = vmul.f32 1.442695, %v3839_v41  ;;  %v3843_v22 = vsub.f32 %v6871_v13, %v3823_v53  ;;  %v3844_v56 = vsub.f32 %v6874_v34, %v3823_v53 }
0x1188   :  { %4837 = vpow2.f32 %v3861_v6  ;;  %v3845_v11 = vsub.f32 %v6877_v3, %v3823_v53  ;;  %v3846_v15 = vsub.f32 %v6880_v14, %v3824_v44  ;;  %v3867_v42 = vmul.f32 1.442695, %v3840_v61 }
0x1189   :  { %4839 = vpow2.f32 %v3863_v24  ;;  %v3869_v50 = vmul.f32 1.442695, %v3841_v60  ;;  %v3871_v35 = vmul.f32 1.442695, %v3842_v7  ;;  %v3847_v0 = vsub.f32 %v6884_v30, %v3824_v44 }
0x118a   :  { %4841 = vpow2.f32 %v3865_v23  ;;  %v3873_v26 = vmul.f32 1.442695, %v3843_v22  ;;  %v3826_v4 = vrot.slane %v3820_v45, 5  ;;  %v3848_v31 = vsub.f32 %v6887_v55, %v3824_v44 }
0x118b   :  { %4843 = vpow2.f32 %v3867_v42  ;;  %v3875_v13 = vmul.f32 1.442695, %v3844_v56  ;;  %v3849_v34 = vsub.f32 %v6891_v18, %v3825_v39  ;;  %v3877_v32 = vmul.f32 1.442695, %v3845_v11 }
0x118c   :  { %4845 = vpow2.f32 %v3869_v50  ;;  %v3850_v3 = vsub.f32 %v6900_v27, %v3825_v39  ;;  %v3879_v14 = vmul.f32 1.442695, %v3846_v15  ;;  %v3851_v46 = vsub.f32 %v6903_v29, %v3825_v39 }
0x118d   :  { %4847 = vpow2.f32 %v3871_v35  ;;  %v3881_v5 = vmul.f32 1.442695, %v3847_v0  ;;  %v3852_v30 = vsub.f32 %v6906_v63, %v3826_v4  ;;  %v3883_v10 = vmul.f32 1.442695, %v3848_v31 }
0x118e   :  { %4849 = vpow2.f32 %v3873_v26  ;;  %v3853_v55 = vsub.f32 %v6910_v1, %v3826_v4  ;;  %v3885_v36 = vmul.f32 1.442695, %v3849_v34  ;;  %v3828_v18 = vrot.slane %v3820_v45, 7 }
0x118f   :  { %4851 = vpow2.f32 %v3875_v13  ;;  %v3854_v52 = vsub.f32 %v6939_v2, %v3826_v4  ;;  %v3887_v27 = vmul.f32 1.442695, %v3850_v3  ;;  %v3855_v40 = vsub.f32 %v6916_v59, %v3827_v16 }
0x1190   :  { %4853 = vpow2.f32 %v3877_v32  ;;  %v3889_v29 = vmul.f32 1.442695, %v3851_v46  ;;  %v3856_v63 = vsub.f32 %v6924_v19, %v3827_v16  ;;  %v3891_v54 = vmul.f32 1.442695, %v3852_v30 }
0x1191   :  { %4855 = vpow2.f32 %v3879_v14  ;;  %v3857_v49 = vsub.f32 %v6948_v17, %v3827_v16  ;;  %v3893_v2 = vmul.f32 1.442695, %v3853_v55  ;;  %v3858_v48 = vsub.f32 %v6934_v12, %v3828_v18 }
0x1192   :  { %v6993_v8 = vpop.eup %4837  ;;  %4857 = vpow2.f32 %v3881_v5  ;;  %v3895_v59 = vmul.f32 1.442695, %v3854_v52  ;;  %v3859_v45 = vsub.f32 %v6951_v57, %v3828_v18  ;;  %v3897_v19 = vmul.f32 1.442695, %v3855_v40 }
0x1193   :  { %v6996_v28 = vpop.eup %4839  ;;  %4859 = vpow2.f32 %v3883_v10  ;;  %v3860_v17 = vsub.f32 %v6968_v43, %v3828_v18  ;;  %v3899_v47 = vmul.f32 1.442695, %v3856_v63  ;;  %v3901_v12 = vmul.f32 1.442695, %v3857_v49 }
0x1194   :  { %v6999_v1 = vpop.eup %4841  ;;  %4861 = vpow2.f32 %v3885_v36  ;;  %v3903_v61 = vmul.f32 1.442695, %v3858_v48  ;;  %v3905_v7 = vmul.f32 1.442695, %v3859_v45 }
0x1195   :  { %v7002_v9 = vpop.eup %4843  ;;  %4863 = vpow2.f32 %v3887_v27  ;;  %v3907_v39 = vmul.f32 1.442695, %v3860_v17 }
0x1196   :  { %v7005_v33 = vpop.eup %4845  ;;  %4865 = vpow2.f32 %v3889_v29  ;;  %v3933_v62 = vrot.slane %v7002_v9, 7 }
0x1197   :  { %v7009_v38 = vpop.eup %4847  ;;  %4867 = vpow2.f32 %v3891_v54  ;;  %v3947_v53 = vrot.slane %v7005_v33, 7 }
0x1198   :  { %v7013_v41 = vpop.eup %4849  ;;  %4869 = vpow2.f32 %v3893_v2  ;;  %v3934_v44 = vsel %vm2683_vm5, %v3933_v62, %v6993_v8  ;;  %v3961_v57 = vrot.slane %v7009_v38, 7 }
0x1199   :  { %v7018_v6 = vpop.eup %4851  ;;  %4871 = vpow2.f32 %v3895_v59  ;;  %v3935_v60 = vrot.slane %v7013_v41, 6  ;;  %v3948_v43 = vsel %vm2683_vm5, %v3947_v53, %v6996_v28 }
0x119a   :  { %v7023_v24 = vpop.eup %4853  ;;  %4873 = vpow2.f32 %v3897_v19  ;;  %v3949_v23 = vrot.slane %v7018_v6, 6  ;;  %v3962_v22 = vsel %vm2683_vm5, %v3961_v57, %v6999_v1 }
0x119b   :  { %v7028_v56 = vpop.eup %4855  ;;  %4875 = vpow2.f32 %v3899_v47  ;;  %v3936_v11 = vsel %vm2685_vm6, %v3935_v60, %v3934_v44  ;;  %v3963_v15 = vrot.slane %v7023_v24, 6 }
0x119c   :  { %v7032_v42 = vpop.eup %4857  ;;  %4877 = vpow2.f32 %v3901_v12  ;;  %v3937_v50 = vrot.slane %v7028_v56, 5  ;;  %v3950_v35 = vsel %vm2685_vm6, %v3949_v23, %v3948_v43 }
0x119d   :  { %v7036_v0 = vpop.eup %4859  ;;  %4879 = vpow2.f32 %v3903_v61  ;;  %v3951_v26 = vrot.slane %v7032_v42, 5  ;;  %v3964_v4 = vsel %vm2685_vm6, %v3963_v15, %v3962_v22 }
0x119e   :  { %v7040_v31 = vpop.eup %4861  ;;  %4881 = vpow2.f32 %v3905_v7  ;;  %v3938_v13 = vsel %vm2687_vm2, %v3937_v50, %v3936_v11  ;;  %v3965_v34 = vrot.slane %v7036_v0, 5 }
0x119f   :  { %v7044_v32 = vpop.eup %4863  ;;  %4883 = vpow2.f32 %v3907_v39  ;;  %v3939_v3 = vrot.slane %v7040_v31, 4  ;;  %v3952_v14 = vsel %vm2687_vm2, %v3951_v26, %v3950_v35 }
0x11a0   :  { %v7048_v16 = vpop.eup %4865  ;;  %v3953_v46 = vrot.slane %v7044_v32, 4  ;;  %v3966_v5 = vsel %vm2687_vm2, %v3965_v34, %v3964_v4 }
0x11a1   :  { %v7052_v30 = vpop.eup %4867  ;;  %v3940_v10 = vsel %vm2689_vm7, %v3939_v3, %v3938_v13  ;;  %v3967_v55 = vrot.slane %v7048_v16, 4 }
0x11a2   :  { %v7056_v36 = vpop.eup %4869  ;;  %v3941_v18 = vrot.slane %v7052_v30, 3  ;;  %v3954_v52 = vsel %vm2689_vm7, %v3953_v46, %v3952_v14 }
0x11a3   :  { %v7060_v27 = vpop.eup %4871  ;;  %v3955_v40 = vrot.slane %v7056_v36, 3  ;;  %v3968_v29 = vsel %vm2689_vm7, %v3967_v55, %v3966_v5 }
0x11a4   :  { %v7064_v63 = vpop.eup %4873  ;;  %v3942_v54 = vsel %vm2691_vm9, %v3941_v18, %v3940_v10  ;;  %v3969_v49 = vrot.slane %v7060_v27, 3 }
0x11a5   :  { %v7068_v2 = vpop.eup %4875  ;;  %v3943_v48 = vrot.slane %v7064_v63, 2  ;;  %v3956_v59 = vsel %vm2691_vm9, %v3955_v40, %v3954_v52 }
0x11a6   :  { %v7072_v45 = vpop.eup %4877  ;;  %v3957_v19 = vrot.slane %v7068_v2, 2  ;;  %v3970_v62 = vsel %vm2691_vm9, %v3969_v49, %v3968_v29 }
0x11a7   :  { %v7076_v17 = vpop.eup %4879  ;;  %v3944_v47 = vsel %vm2693_vm10, %v3943_v48, %v3942_v54  ;;  %v3971_v53 = vrot.slane %v7072_v45, 2  ;;  %v4946_v54 = vld [vmem:[#allocation2] sm:$0xff]  ;;  %v4947_v48 = vld [vmem:[#allocation2 + $0x8] sm:$0xff] }
0x11a8   :  { %v7080_v12 = vpop.eup %4881  ;;  %v3945_v44 = vrot.slane %v7076_v17, 1  ;;  %v3958_v57 = vsel %vm2693_vm10, %v3957_v19, %v3956_v59 }
0x11a9   :  { %v7084_v61 = vpop.eup %4883  ;;  %v3959_v60 = vrot.slane %v7080_v12, 1  ;;  %v3972_v43 = vsel %vm2693_vm10, %v3971_v53, %v3970_v62 }
0x11aa   :  { %v3946_v7 = vsel %vm2695_vm8, %v3945_v44, %v3944_v47  ;;  %v3973_v23 = vrot.slane %v7084_v61, 1 }
0x11ab   :  { %v3960_v22 = vsel %vm2695_vm8, %v3959_v60, %v3958_v57  ;;  %v4949_v60 = vld [vmem:[#allocation2 + $0x20] sm:$0xff] }
0x11ac   :  { %v3974_v39 = vsel %vm2695_vm8, %v3973_v23, %v3972_v43  ;;  %v3978_v11 = vadd.f32 %v3960_v22, %v3946_v7  ;;  %v4951_v22 = vld [vmem:[#allocation2 + $0x30] sm:$0xff] }
0x11ad   :  { %v3979_v15 = vsel %vm2119_vm14, %v3974_v39, 0.0 }
0x11ae   :  { %v3980_v50 = vadd.f32 %v3979_v15, %v3978_v11  ;;  %v4952_v15 = vld [vmem:[#allocation2 + $0x38] sm:$0xff] }
0x11b0   :  { %3981 = vadd.xlane.f32.xlu0 %v3980_v50 }
0x123d   :  { %v3982_v35 = vpop.xlane.xlu0 %3981 }
0x123e   :  { %4885 = vrcp.f32 %v3982_v35 }
0x1248   :  { %v7093_v26 = vpop.eup %4885 }
0x1249   :  { %v4001_v4 = vmul.f32 %v7093_v26, %v6993_v8  ;;  %v4002_v13 = vmul.f32 %v7093_v26, %v6996_v28  ;;  %v4003_v34 = vmul.f32 %v7093_v26, %v6999_v1  ;;  %v3986_v3 = vrot.slane %v7093_v26, 1 }
0x124a   :  { %v3987_v14 = vrot.slane %v7093_v26, 2  ;;  %v3988_v46 = vrot.slane %v7093_v26, 3  ;;  %v3989_v5 = vrot.slane %v7093_v26, 4  ;;  %v7106_v10 = vrot.slane %v7093_v26, 5 }
0x124b   :  { %v4028_v55 = vrot.slane %v4001_v4, %v5520_v21  ;;  %v4032_v8 = vrot.slane %v4002_v13, %v5520_v21  ;;  %v4036_v28 = vrot.slane %v4003_v34, %v5520_v21  ;;  %v4004_v18 = vmul.f32 %v7002_v9, %v3986_v3  ;;  %v4953_v34 = vld [vmem:[#allocation2 + $0x40] sm:$0xff] }
0x124c   :  { %v4005_v1 = vmul.f32 %v7005_v33, %v3986_v3  ;;  %v4006_v52 = vmul.f32 %v7009_v38, %v3986_v3  ;;  %v4007_v40 = vmul.f32 %v7013_v41, %v3987_v14  ;;  %v4008_v29 = vmul.f32 %v7018_v6, %v3987_v14  ;;  %v4948_v6 = vld [vmem:[#allocation2 + $0x18] sm:$0xff] }
0x124d   :  { %v4121_v49 = vmul.f32 %v4946_v54, %v4028_v55  ;;  %v4122_v59 = vmul.f32 %v4947_v48, %v4032_v8  ;;  %v4123_v19 = vmul.f32 %v6822_v58, %v4036_v28  ;;  %v4040_v62 = vrot.slane %v4004_v18, %v5520_v21  ;;  %v4950_v58 = vld [vmem:[#allocation2 + $0x28] sm:$0xff]  ;;  %v4956_v48 = vld [vmem:[#allocation2 + $0x58] sm:$0xff] }
0x124e   :  { %v4044_v47 = vrot.slane %v4005_v1, %v5520_v21  ;;  %v4048_v9 = vrot.slane %v4006_v52, %v5520_v21  ;;  %v4009_v33 = vmul.f32 %v7023_v24, %v3987_v14  ;;  %v4052_v38 = vrot.slane %v4007_v40, %v5520_v21 }
0x124f   :  { %v4145_v53 = vadd.f32 %v4122_v59, %v4121_v49  ;;  %v4146_v41 = vsel %vm2119_vm14, %v4123_v19, 0.0  ;;  %v4124_v44 = vmul.f32 %v4948_v6, %v4040_v62  ;;  %v4056_v57 = vrot.slane %v4008_v29, %v5520_v21  ;;  %v4954_v29 = vld [vmem:[#allocation2 + $0x48] sm:$0xff]  ;;  %v4955_v49 = vld [vmem:[#allocation2 + $0x50] sm:$0xff] }
0x1250   :  { %v4125_v43 = vmul.f32 %v4949_v60, %v4044_v47  ;;  %v4126_v7 = vmul.f32 %v4950_v58, %v4048_v9  ;;  %v4060_v23 = vrot.slane %v4009_v33, %v5520_v21  ;;  %v4127_v39 = vmul.f32 %v4951_v22, %v4052_v38  ;;  %v4957_v33 = vld [vmem:[#allocation2 + $0x60] sm:$0xff] }
0x1251   :  { %v4147_v11 = vadd.f32 %v4146_v41, %v4145_v53  ;;  %v4128_v24 = vmul.f32 %v4952_v15, %v4056_v57  ;;  %v4010_v50 = vmul.f32 %v7028_v56, %v3988_v46  ;;  %v4011_v35 = vmul.f32 %v7032_v42, %v3988_v46  ;;  %v4958_v53 = vld [vmem:[#allocation2 + $0x68] sm:$0xff]  ;;  %v4961_v22 = vld [vmem:[#allocation2 + $0x80] sm:$0xff] }
0x1252   :  { %v4150_v4 = vadd.f32 %v4125_v43, %v4124_v44  ;;  %v4151_v13 = vsel %vm2119_vm14, %v4126_v7, 0.0  ;;  %v4129_v3 = vmul.f32 %v4953_v34, %v4060_v23  ;;  %v4012_v14 = vmul.f32 %v7036_v0, %v3988_v46 }
0x1253   :  { %4148 = vadd.xlane.f32.xlu0 %v4147_v11  ;;  %v4155_v55 = vadd.f32 %v4128_v24, %v4127_v39  ;;  %v4064_v8 = vrot.slane %v4010_v50, %v5520_v21  ;;  %v4068_v28 = vrot.slane %v4011_v35, %v5520_v21  ;;  %v4013_v18 = vmul.f32 %v7040_v31, %v3989_v5  ;;  %v4962_v11 = vld [vmem:[#allocation2 + $0x88] sm:$0xff] }
0x1254   :  { %v4152_v1 = vadd.f32 %v4151_v13, %v4150_v4  ;;  %v4156_v56 = vsel %vm2119_vm14, %v4129_v3, 0.0  ;;  %v4072_v42 = vrot.slane %v4012_v14, %v5520_v21  ;;  %v4014_v52 = vmul.f32 %v7044_v32, %v3989_v5 }
0x1255   :  { %v4157_v40 = vadd.f32 %v4156_v56, %v4155_v55  ;;  %v4130_v54 = vmul.f32 %v4954_v29, %v4064_v8  ;;  %v4131_v0 = vmul.f32 %v4955_v49, %v4068_v28  ;;  %v4015_v46 = vmul.f32 %v7048_v16, %v3989_v5  ;;  %v4964_v56 = vld [vmem:[#allocation2 + $0x98] sm:$0xff] }
0x1256   :  { %4153 = vadd.xlane.f32.xlu1 %v4152_v1  ;;  %v4132_v59 = vmul.f32 %v4956_v48, %v4072_v42  ;;  %v4076_v19 = vrot.slane %v4013_v18, %v5520_v21  ;;  %v4080_v31 = vrot.slane %v4014_v52, %v5520_v21  ;;  %v4016_v62 = vmul.f32 %v7052_v30, %v7106_v10  ;;  %v4959_v30 = vld [vmem:[#allocation2 + $0x70] sm:$0xff]  ;;  %v4965_v42 = vld [vmem:[#allocation2 + $0xa0] sm:$0xff] }
0x1257   :  { %4158 = vadd.xlane.f32.xlu0 %v4157_v40  ;;  %v4160_v47 = vadd.f32 %v4131_v0, %v4130_v54  ;;  %v4084_v32 = vrot.slane %v4015_v46, %v5520_v21  ;;  %v4017_v9 = vmul.f32 %v7056_v36, %v7106_v10  ;;  %v4018_v16 = vmul.f32 %v7060_v27, %v7106_v10  ;;  %v4960_v36 = vld [vmem:[#allocation2 + $0x78] sm:$0xff]  ;;  %v4963_v18 = vld [vmem:[#allocation2 + $0x90] sm:$0xff]  ;;  %v4966_v40 = vld [vmem:[#allocation2 + $0xa8] sm:$0xff] }
0x1258   :  { %v4161_v5 = vsel %vm2119_vm14, %v4132_v59, 0.0  ;;  %v4133_v38 = vmul.f32 %v4957_v33, %v4076_v19  ;;  %v4134_v41 = vmul.f32 %v4958_v53, %v4080_v31  ;;  %v4088_v6 = vrot.slane %v4016_v62, %v5520_v21  ;;  %v4967_v54 = vld [vmem:[#allocation2 + $0xb0] sm:$0xff]  ;;  %v4968_v46 = vld [vmem:[#allocation2 + $0xb8] sm:$0xff] }
0x1259   :  { %v4162_v44 = vadd.f32 %v4161_v5, %v4160_v47  ;;  %v4135_v57 = vmul.f32 %v4959_v30, %v4084_v32  ;;  %v4092_v60 = vrot.slane %v4017_v9, %v5520_v21  ;;  %v4096_v43 = vrot.slane %v4018_v16, %v5520_v21 }
0x125a   :  { %v4165_v58 = vadd.f32 %v4134_v41, %v4133_v38  ;;  %v4136_v7 = vmul.f32 %v4960_v36, %v4088_v6  ;;  %v3991_v27 = vrot.slane %v7093_v26, 6  ;;  %v3992_v10 = vrot.slane %v7093_v26, 7 }
0x125b   :  { %4163 = vadd.xlane.f32.xlu1 %v4162_v44  ;;  %v4166_v23 = vsel %vm2119_vm14, %v4135_v57, 0.0  ;;  %v4137_v39 = vmul.f32 %v4961_v22, %v4092_v60  ;;  %v4138_v15 = vmul.f32 %v4962_v11, %v4096_v43 }
0x125c   :  { %v4167_v24 = vadd.f32 %v4166_v23, %v4165_v58  ;;  %v4019_v50 = vmul.f32 %v7064_v63, %v3991_v27  ;;  %v4020_v35 = vmul.f32 %v7068_v2, %v3991_v27  ;;  %v4021_v4 = vmul.f32 %v7072_v45, %v3991_v27 }
0x125d   :  { %v4170_v13 = vadd.f32 %v4137_v39, %v4136_v7  ;;  %v4171_v34 = vsel %vm2119_vm14, %v4138_v15, 0.0  ;;  %v4022_v3 = vmul.f32 %v7076_v17, %v3992_v10  ;;  %v4023_v26 = vmul.f32 %v7080_v12, %v3992_v10 }
0x125e   :  { %4168 = vadd.xlane.f32.xlu0 %v4167_v24  ;;  %v4100_v14 = vrot.slane %v4019_v50, %v5520_v21  ;;  %v4104_v55 = vrot.slane %v4020_v35, %v5520_v21  ;;  %v4108_v8 = vrot.slane %v4021_v4, %v5520_v21  ;;  %v4024_v63 = vmul.f32 %v7084_v61, %v3992_v10 }
0x125f   :  { %v4172_v28 = vadd.f32 %v4171_v34, %v4170_v13  ;;  %v4112_v2 = vrot.slane %v4022_v3, %v5520_v21  ;;  %v4116_v45 = vrot.slane %v4023_v26, %v5520_v21 }
0x1260   :  { %v4139_v1 = vmul.f32 %v4963_v18, %v4100_v14  ;;  %v4140_v17 = vmul.f32 %v4964_v56, %v4104_v55  ;;  %v4141_v12 = vmul.f32 %v4965_v42, %v4108_v8  ;;  %v4120_v52 = vrot.slane %v4024_v63, %v5520_v21 }
0x1261   :  { %4173 = vadd.xlane.f32.xlu1 %v4172_v28  ;;  %v4142_v29 = vmul.f32 %v4966_v40, %v4112_v2  ;;  %v4143_v49 = vmul.f32 %v4967_v54, %v4116_v45  ;;  %v7343_v40 = vld [vmem:[#allocation19_spill] sm:$0xff]  ;;  %v7344_v54 = vld [vmem:[#allocation18_spill] sm:$0xff] }
0x1262   :  { %v4175_v0 = vadd.f32 %v4140_v17, %v4139_v1  ;;  %v4176_v61 = vsel %vm2119_vm14, %v4141_v12, 0.0  ;;  %v4144_v48 = vmul.f32 %v4968_v46, %v4120_v52 }
0x1263   :  { %v4180_v59 = vadd.f32 %v4143_v49, %v4142_v29 }
0x1264   :  { %v4177_v19 = vadd.f32 %v4176_v61, %v4175_v0  ;;  %v4181_v31 = vsel %vm2119_vm14, %v4144_v48, 0.0  ;;  %v7345_v61 = vld [vmem:[#allocation20_spill] sm:$0xff] }
0x1265   :  { %v4182_v62 = vadd.f32 %v4181_v31, %v4180_v59 }
0x1266   :  { %4178 = vadd.xlane.f32.xlu0 %v4177_v19 }
0x1267   :  { %4183 = vadd.xlane.f32.xlu1 %v4182_v62 }
0x12e0   :  { %v4149_v47 = vpop.xlane.xlu0 %4148 }
0x12e1   :  { %v4185_v32 = vmul.f32 %v4149_v47, %v4149_v47 }
0x12e3   :  { %v4154_v9 = vpop.xlane.xlu1 %4153  ;;  %v4204_v53 = vrot.slane %v4185_v32, %v6361_v51 }
0x12e4   :  { %v4186_v16 = vmul.f32 %v4154_v9, %v4154_v9  ;;  %v4159_v5 = vpop.xlane.xlu0 %4158 }
0x12e5   :  { %v4187_v33 = vmul.f32 %v4159_v5, %v4159_v5 }
0x12e6   :  { %v4208_v38 = vrot.slane %v4186_v16, %v6361_v51 }
0x12e7   :  { %v4212_v41 = vrot.slane %v4187_v33, %v6361_v51 }
0x12e8   :  { %v4164_v6 = vpop.xlane.xlu1 %4163  ;;  %v4233_v44 = vsel %vm2683_vm5, %v4208_v38, %v4204_v53 }
0x12e9   :  { %v4188_v30 = vmul.f32 %v4164_v6, %v4164_v6  ;;  %v4234_v43 = vsel %vm2685_vm6, %v4212_v41, %v4233_v44 }
0x12eb   :  { %v4216_v57 = vrot.slane %v4188_v30, %v6361_v51  ;;  %v4169_v60 = vpop.xlane.xlu0 %4168 }
0x12ec   :  { %v4189_v58 = vmul.f32 %v4169_v60, %v4169_v60 }
0x12ed   :  { %v4235_v27 = vsel %vm2687_vm2, %v4216_v57, %v4234_v43 }
0x12ee   :  { %v4220_v36 = vrot.slane %v4189_v58, %v6361_v51  ;;  %v4174_v7 = vpop.xlane.xlu1 %4173 }
0x12ef   :  { %v4190_v10 = vmul.f32 %v4174_v7, %v4174_v7 }
0x12f0   :  { %v4236_v22 = vsel %vm2689_vm7, %v4220_v36, %v4235_v27 }
0x12f1   :  { %v4224_v23 = vrot.slane %v4190_v10, %v6361_v51 }
0x12f3   :  { %v4179_v39 = vpop.xlane.xlu0 %4178  ;;  %v4237_v50 = vsel %vm2691_vm9, %v4224_v23, %v4236_v22 }
0x12f4   :  { %v4191_v11 = vmul.f32 %v4179_v39, %v4179_v39  ;;  %v4184_v15 = vpop.xlane.xlu1 %4183 }
0x12f5   :  { %v4192_v24 = vmul.f32 %v4184_v15, %v4184_v15 }
0x12f6   :  { %v4228_v35 = vrot.slane %v4191_v11, %v6361_v51 }
0x12f7   :  { %v4232_v4 = vrot.slane %v4192_v24, %v6361_v51 }
0x12f8   :  { %v4238_v13 = vsel %vm2693_vm10, %v4228_v35, %v4237_v50 }
0x12f9   :  { %v4239_v34 = vsel %vm2695_vm8, %v4232_v4, %v4238_v13 }
0x12fa   :  { %v4241_v3 = vsel %vm2698_vm11, %v4239_v34, 0.0 }
0x12fb   :  { %4242 = vadd.xlane.f32.xlu0 %v4241_v3 }
0x1388   :  { %v4243_v26 = vpop.xlane.xlu0 %4242 }
0x1389   :  { %v4244_v14 = vadd.f32 1e-09, %v4243_v26  ;;  %v4247_v55 = vadd.f32 1.0, %v4243_v26 }
0x138b   :  { %4887 = vrsqrt.f32 %v4244_v14 }
0x138c   :  { %4889 = vrcp.f32 %v4247_v55 }
0x1395   :  { %v4888_v8 = vpop.eup %4887 }
0x1396   :  { %v4246_v63 = vmul.f32 %v4888_v8, %v4243_v26  ;;  %v4890_v28 = vpop.eup %4889 }
0x1398   :  { %v4249_v2 = vmul.f32 %v4890_v28, %v4246_v63 }
0x139a   :  { %v4258_v45 = vrot.slane %v4249_v2, %v5526_v25  ;;  %v4254_v18 = vrot.slane %v4249_v2, %v5520_v21  ;;  %v4270_v17 = vrot.slane %v4249_v2, %v6380_v20  ;;  %v4262_v42 = vrot.slane %v4249_v2, %v5535_v37  ;;  %v7346_v20 = vld [vmem:[#allocation23_spill] sm:$0xff] }
0x139b   :  { %v4278_v29 = vrot.slane %v4249_v2, %v7343_v40  ;;  %v4266_v49 = vrot.slane %v4249_v2, %v7344_v54  ;;  %v4274_v21 = vrot.slane %v4249_v2, %v7345_v61  ;;  %v4282_v48 = vrot.slane %v4249_v2, %v7346_v20 }
0x139c   :  { %v4292_v1 = vmul.f32 %v4258_v45, %v4154_v9  ;;  %v4291_v56 = vmul.f32 %v4254_v18, %v4149_v47  ;;  %v4295_v12 = vmul.f32 %v4270_v17, %v4169_v60  ;;  %v4293_v52 = vmul.f32 %v4262_v42, %v4159_v5 }
0x139d   :  { %v4297_v0 = vmul.f32 %v4278_v29, %v4179_v39  ;;  %v4294_v25 = vmul.f32 %v4266_v49, %v4164_v6  ;;  %v4296_v46 = vmul.f32 %v4274_v21, %v4174_v7  ;;  %v4298_v37 = vmul.f32 %v4282_v48, %v4184_v15 }
0x139e   :  { %4311 = vperm.xlu0 %4552, %v4292_v1   ;;  %4308 = vperm.xlu1 %4551, %v4291_v56  }
0x13a2   :  { %4320 = vperm.xlu0 %4552, %v4295_v12   ;;  %4314 = vperm.xlu1 %4551, %v4293_v52  }
0x13a6   :  { %4326 = vperm.xlu0 %4552, %v4297_v0   ;;  %4317 = vperm.xlu1 %4551, %v4294_v25  }
0x13aa   :  { %4323 = vperm.xlu1 %4551, %v4296_v46  }
0x13ae   :  { %4329 = vperm.xlu1 %4551, %v4298_v37  }
0x141d   :  { %v4309_v59 = vpop.permute.xlu1 %4308  ;;  %v4312_v19 = vpop.permute.xlu0 %4311 }
0x141e   :  { %v4338_v62 = vrot.slane %v4312_v19, %v6361_v51  ;;  %v4334_v47 = vrot.slane %v4309_v59, %v6361_v51 }
0x1420   :  { %v4363_v5 = vsel %vm2683_vm5, %v4338_v62, %v4334_v47 }
0x1421   :  { %v4315_v31 = vpop.permute.xlu1 %4314  ;;  %v4321_v9 = vpop.permute.xlu0 %4320 }
0x1422   :  { %v4342_v32 = vrot.slane %v4315_v31, %v6361_v51  ;;  %v4350_v41 = vrot.slane %v4321_v9, %v6361_v51 }
0x1424   :  { %v4364_v38 = vsel %vm2685_vm6, %v4342_v32, %v4363_v5 }
0x1425   :  { %v4318_v16 = vpop.permute.xlu1 %4317  ;;  %v4327_v44 = vpop.permute.xlu0 %4326 }
0x1426   :  { %v4346_v33 = vrot.slane %v4318_v16, %v6361_v51  ;;  %v4358_v43 = vrot.slane %v4327_v44, %v6361_v51 }
0x1428   :  { %v4365_v53 = vsel %vm2687_vm2, %v4346_v33, %v4364_v38 }
0x1429   :  { %v4324_v6 = vpop.permute.xlu1 %4323  ;;  %v4366_v57 = vsel %vm2689_vm7, %v4350_v41, %v4365_v53 }
0x142a   :  { %v4354_v30 = vrot.slane %v4324_v6, %v6361_v51 }
0x142c   :  { %v4367_v60 = vsel %vm2691_vm9, %v4354_v30, %v4366_v57 }
0x142d   :  { %v4330_v58 = vpop.permute.xlu1 %4329  ;;  %v4368_v7 = vsel %vm2693_vm10, %v4358_v43, %v4367_v60 }
0x142e   :  { %v4362_v36 = vrot.slane %v4330_v58, %v6361_v51 }
0x1430   :  { %v4369_v27 = vsel %vm2695_vm8, %v4362_v36, %v4368_v7 }
0x1431   :  { %4371 = vst.msk [vmem:[#allocation11] sm:$0xff] %vm2698_vm11, %v4369_v27 }
0x1432   :  { %5058 = shalt.err (!%p5055_p5)
}
0x1433   :  { %s5059_s13 = scalar_lea.hbm %s7226_s7, 128 }
0x1434   :  { %p5060_p6 = scmp.ne.s32.totalorder %s7226_s7, %s5059_s13  ;;  %p5063_p7 = scmp.lt.u32.totalorder %s5059_s13, %s7226_s7 }
0x1436   :  { %p5065_p8 = pnand %p5063_p7, %p5060_p6 }
0x1438   :  { %5068 = shalt.err (!%p5065_p8)
}
0x1439   :  { %4381 = dma.vmem_to_hbm [thread:$0]  %s4379_s10, 128, %s7226_s7, [#allocation5]  }
0x143a   :  { %5075 = dma.done.wait [#allocation5], 128  }
0x143b   :  { %5076 = vsyncadd [#allocation5], 4294967168 }
0x143c   :  { %4385 = vsyncpa [#allocation4], 1 }
0x143d   :  { %4386 = vsyncpa [#allocation9], 1 }
0x143e   :  { %4387 = vsyncpa [#allocation5], 1 }
0x143f   :  { %4388 = vsyncpa [#allocation6], 1 }

</bundles_post_ra>
